<compile_context>
chip_gen: v7x
topology: tpu7x:2x2x1
jax: 0.10.0
libtpu: 0.0.40
codegen_flags: <defaults>
</compile_context>

<pallas_src>
import jax
import jax.numpy as jnp
from jax import lax
from jax.experimental import pallas as pl
from jax.experimental.pallas import tpu as pltpu


_BN_EPS = 1e-5
_LANE = 128
# 32 MiB: raises v5e's 16 MiB default scoped-VMEM, stays within v6e/v7x limits.
_VMEM_LIMIT = 32 * 1024 * 1024


def _round_up(n, m):
    return (n + m - 1) // m * m


def _pick_tm(m, row_bytes, budget=4 * 1024 * 1024):
    """Row-tile size: as big as practical (<=512) for HBM-roofline efficiency,
    but fits a double-buffering VMEM budget and keeps >=2 grid steps when
    possible so v7x's two TensorCores both get work."""
    tm = 512
    while tm > 128 and 2 * tm * row_bytes > budget:
        tm //= 2
    while tm > 128 and m < 2 * tm:
        tm //= 2
    return min(tm, _round_up(m, 16))


# ---------------------------------------------------------------------------
# Pallas kernels
# ---------------------------------------------------------------------------
def _conv1x1_kernel(x_ref, w_ref, b_ref, o_ref):
    # (tm, Cin) @ (Cin, Coutp) on the MXU (bf16 operands, f32 accumulate),
    # then folded-BN bias add and SiLU in f32.
    y = jnp.dot(x_ref[...], w_ref[...], preferred_element_type=jnp.float32)
    y = y + b_ref[...]
    y = y * lax.logistic(y)
    o_ref[...] = y.astype(o_ref.dtype)


def _make_cv2_kernel(num_branches):
    """cv2 over the (virtual) concat of the y-branches, without materializing
    the concat: acc = sum_i  y_i @ w[i]  with per-branch weight slices."""
    def kernel(*refs):
        y_refs = refs[:num_branches]
        w_ref, b_ref, o_ref = refs[num_branches:num_branches + 3]
        acc = jnp.dot(y_refs[0][...], w_ref[0],
                      preferred_element_type=jnp.float32)
        for i in range(1, num_branches):
            acc = acc + jnp.dot(y_refs[i][...], w_ref[i],
                                preferred_element_type=jnp.float32)
        y = acc + b_ref[...]
        y = y * lax.logistic(y)
        o_ref[...] = y.astype(o_ref.dtype)
    return kernel


def _make_bottleneck_kernel(H, W, bh_p, pad_rows):
    """Fused Bottleneck:  out = x + SiLU(BN(conv3x3(SiLU(BN(conv1x1(x)))))).

    The 1x1 result `h` stays in VMEM.  It is written (flattened row-major)
    into a zero-padded scratch, so each (dy, dx) tap of the padded 3x3 conv is
    a plain static sublane-offset load of shape (H*W, bh_p); rows that fall
    outside the image hit the zero pad, wrapped columns are masked.
    """
    P = pad_rows

    def kernel(x_ref, w1_ref, b1_ref, w2_ref, b2_ref, o_ref, hpad_ref):
        Cp = x_ref.shape[-1]                      # hidden_p
        x = x_ref[0]                              # (H, W, Cp)  bf16
        # ---- cv1: 1x1 conv (+ folded-BN bias + SiLU), f32 epilogue --------
        h = jnp.dot(x.reshape(H * W, Cp), w1_ref[...],
                    preferred_element_type=jnp.float32)
        h = h + b1_ref[...]
        h = h * lax.logistic(h)                   # (H*W, bh_p) f32
        # ---- write h into the flat zero-padded scratch ---------------------
        # (pad regions re-zeroed every step: safe under megacore splitting,
        #  and only 2*P rows -> negligible next to the 9 MXU dots below)
        zpad = jnp.zeros((P, bh_p), jnp.float32)
        hpad_ref[0:P, :] = zpad
        hpad_ref[P + H * W:P + H * W + P, :] = zpad
        hpad_ref[P:P + H * W, :] = h
        # ---- 3x3 conv, padding=1: 9 shifted MXU dots into an f32 acc ------
        col = lax.broadcasted_iota(jnp.int32, (H, W, 1), 1).reshape(H * W, 1)
        ok_left = col >= 1                        # tap reads h[:, x-1]
        ok_right = col <= W - 2                   # tap reads h[:, x+1]
        acc = jnp.zeros((H * W, Cp), jnp.float32)
        for ky in range(3):
            dy = ky - 1
            for kx in range(3):
                dx = kx - 1
                off = P + dy * W + dx             # static per-tap row offset
                tap = hpad_ref[off:off + H * W, :]
                if dx == -1:
                    tap = jnp.where(ok_left, tap, 0.0)
                elif dx == 1:
                    tap = jnp.where(ok_right, tap, 0.0)
                acc = acc + jnp.dot(tap.astype(jnp.bfloat16),
                                    w2_ref[ky * 3 + kx],
                                    preferred_element_type=jnp.float32)
        y = acc + b2_ref[...]
        y = y * lax.logistic(y)
        # ---- Bottleneck residual, done in f32 ------------------------------
        o_ref[0] = (x.astype(jnp.float32) + y.reshape(H, W, Cp)).astype(o_ref.dtype)

    return kernel


# ---------------------------------------------------------------------------
# Wrappers (pallas_call plumbing)
# ---------------------------------------------------------------------------
def conv1x1_bn_silu(x2, w, b, out_dtype):
    """x2: (M, Cin) bf16;  w: (Cin, Coutp) bf16 (BN scale folded);
    b: (1, Coutp) f32.  Returns (M, Coutp) in out_dtype."""
    M, Cin = x2.shape
    Coutp = w.shape[1]
    row_bytes = 2 * Cin + (2 + jnp.dtype(out_dtype).itemsize) * Coutp
    tm = _pick_tm(M, row_bytes)
    Mp = _round_up(M, tm)
    if Mp != M:
        x2 = jnp.pad(x2, ((0, Mp - M), (0, 0)))
    out = pl.pallas_call(
        _conv1x1_kernel,
        out_shape=jax.ShapeDtypeStruct((Mp, Coutp), out_dtype),
        grid_spec=pltpu.PrefetchScalarGridSpec(
            num_scalar_prefetch=0,
            grid=(Mp // tm,),
            in_specs=[
                pl.BlockSpec((tm, Cin), lambda i: (i, 0)),
                pl.BlockSpec((Cin, Coutp), lambda i: (0, 0)),
                pl.BlockSpec((1, Coutp), lambda i: (0, 0)),
            ],
            out_specs=pl.BlockSpec((tm, Coutp), lambda i: (i, 0)),
        ),
        compiler_params=pltpu.CompilerParams(
            dimension_semantics=("parallel",), vmem_limit_bytes=_VMEM_LIMIT),
    )(x2, w, b)
    return out if Mp == M else out[:M]


def conv1x1_branches_bn_silu(branches, w, b, out_dtype):
    """cv2 without materializing torch.cat: branches is a list of (M, Cbp)
    bf16 arrays; w: (nb, Cbp, Coutp) bf16 (scale folded); b: (1, Coutp) f32."""
    nb = len(branches)
    M, Cbp = branches[0].shape
    Coutp = w.shape[2]
    row_bytes = 2 * Cbp * nb + jnp.dtype(out_dtype).itemsize * Coutp
    tm = _pick_tm(M, row_bytes)
    Mp = _round_up(M, tm)
    if Mp != M:
        branches = [jnp.pad(yb, ((0, Mp - M), (0, 0))) for yb in branches]
    in_specs = ([pl.BlockSpec((tm, Cbp), lambda i: (i, 0)) for _ in range(nb)]
                + [pl.BlockSpec((nb, Cbp, Coutp), lambda i: (0, 0, 0)),
                   pl.BlockSpec((1, Coutp), lambda i: (0, 0))])
    out = pl.pallas_call(
        _make_cv2_kernel(nb),
        out_shape=jax.ShapeDtypeStruct((Mp, Coutp), out_dtype),
        grid_spec=pltpu.PrefetchScalarGridSpec(
            num_scalar_prefetch=0,
            grid=(Mp // tm,),
            in_specs=in_specs,
            out_specs=pl.BlockSpec((tm, Coutp), lambda i: (i, 0)),
        ),
        compiler_params=pltpu.CompilerParams(
            dimension_semantics=("parallel",), vmem_limit_bytes=_VMEM_LIMIT),
    )(*branches, w, b)
    return out if Mp == M else out[:M]


def bottleneck_fused(x4, w1, b1, w2, b2):
    """x4: (N, H, W, hidden_p) bf16.
    w1: (hidden_p, bh_p) bf16, b1: (1, bh_p) f32      (cv1 1x1, scale folded)
    w2: (9, bh_p, hidden_p) bf16, b2: (1, hidden_p)   (cv2 3x3, tap-major)."""
    N, H, W, Cp = x4.shape
    bh_p = w1.shape[1]
    P = _round_up(W + 1, 16)      # flat zero-pad rows on each side of h
    # TODO(synk): one image per grid step; very large H*W*C would need row
    # tiles with a manually DMA'd halo (memory_space=pl.ANY + make_async_copy).
    return pl.pallas_call(
        _make_bottleneck_kernel(H, W, bh_p, P),
        out_shape=jax.ShapeDtypeStruct((N, H, W, Cp), x4.dtype),
        grid_spec=pltpu.PrefetchScalarGridSpec(
            num_scalar_prefetch=0,
            grid=(N,),
            in_specs=[
                pl.BlockSpec((1, H, W, Cp), lambda n: (n, 0, 0, 0)),
                pl.BlockSpec((Cp, bh_p), lambda n: (0, 0)),
                pl.BlockSpec((1, bh_p), lambda n: (0, 0)),
                pl.BlockSpec((9, bh_p, Cp), lambda n: (0, 0, 0)),
                pl.BlockSpec((1, Cp), lambda n: (0, 0)),
            ],
            out_specs=pl.BlockSpec((1, H, W, Cp), lambda n: (n, 0, 0, 0)),
            scratch_shapes=[pltpu.VMEM((H * W + 2 * P, bh_p), jnp.float32)],
        ),
        compiler_params=pltpu.CompilerParams(
            dimension_semantics=("parallel",), vmem_limit_bytes=_VMEM_LIMIT),
    )(x4, w1, b1, w2, b2)


# ---------------------------------------------------------------------------
# Parameter init (deterministic, synthetic), BN folding and channel padding
# ---------------------------------------------------------------------------
def _make_conv_params(key, cin, cout, ksize):
    k1, k2, k3, k4, k5 = jax.random.split(key, 5)
    fan_in = cin * ksize * ksize
    w = jax.random.normal(k1, (ksize, ksize, cin, cout), jnp.float32) / jnp.sqrt(fan_in)
    gamma = 1.0 + 0.1 * jax.random.normal(k2, (cout,), jnp.float32)
    beta = 0.1 * jax.random.normal(k3, (cout,), jnp.float32)
    mean = 0.1 * jax.random.normal(k4, (cout,), jnp.float32)
    var = jnp.abs(jax.random.normal(k5, (cout,), jnp.float32)) + 0.5
    return {"w": w, "gamma": gamma, "beta": beta, "mean": mean, "var": var}


def _fold_bn(p):
    scale = p["gamma"] / jnp.sqrt(p["var"] + _BN_EPS)
    bias = p["beta"] - p["mean"] * scale
    return scale, bias


def _fold_pad_1x1(p, cin_pad, cout_pad):
    scale, bias = _fold_bn(p)
    w = p["w"][0, 0] * scale[None, :]                 # scale folded into weight
    cin, cout = w.shape
    w = jnp.pad(w, ((0, cin_pad - cin), (0, cout_pad - cout)))
    b = jnp.pad(bias, (0, cout_pad - cout)).reshape(1, cout_pad)
    return w.astype(jnp.bfloat16), b.astype(jnp.float32)


def _fold_pad_3x3(p, cin_pad, cout_pad):
    scale, bias = _fold_bn(p)
    w = p["w"] * scale[None, None, None, :]           # (3,3,cin,cout)
    _, _, cin, cout = w.shape
    w = jnp.pad(w, ((0, 0), (0, 0), (0, cin_pad - cin), (0, cout_pad - cout)))
    w = w.reshape(9, cin_pad, cout_pad)               # tap-major (ky*3 + kx)
    b = jnp.pad(bias, (0, cout_pad - cout)).reshape(1, cout_pad)
    return w.astype(jnp.bfloat16), b.astype(jnp.float32)


def _fold_pad_cv2(p, hidden, hidden_pad, cout_pad, num_branches):
    scale, bias = _fold_bn(p)
    w = p["w"][0, 0] * scale[None, :]                 # (hidden*nb, cout)
    cout = w.shape[1]
    slices = []
    for i in range(num_branches):
        wi = w[i * hidden:(i + 1) * hidden]
        slices.append(jnp.pad(wi, ((0, hidden_pad - hidden), (0, cout_pad - cout))))
    wst = jnp.stack(slices, axis=0)                   # (nb, hidden_p, cout_p)
    b = jnp.pad(bias, (0, cout_pad - cout)).reshape(1, cout_pad)
    return wst.astype(jnp.bfloat16), b.astype(jnp.float32)


def init_c2f_params(key, c_in, c_out, num_bottlenecks):
    """Deterministic synthetic params.  Returns (raw_params_for_reference,
    folded/padded kernel params)."""
    hidden = c_out // 2
    bh = hidden // 2
    hidden_p = _round_up(hidden, _LANE)
    bh_p = _round_up(bh, _LANE)
    cout_p = _round_up(c_out, _LANE)
    keys = jax.random.split(key, 2 + 2 * num_bottlenecks)
    raw = {
        "cv1": _make_conv_params(keys[0], c_in, hidden, 1),
        "cv2": _make_conv_params(keys[1], hidden * (num_bottlenecks + 1), c_out, 1),
        "bottlenecks": [],
    }
    for i in range(num_bottlenecks):
        raw["bottlenecks"].append({
            "cv1": _make_conv_params(keys[2 + 2 * i], hidden, bh, 1),
            "cv2": _make_conv_params(keys[3 + 2 * i], bh, hidden, 3),
        })

    cv1_w, cv1_b = _fold_pad_1x1(raw["cv1"], c_in, hidden_p)
    cv2_w, cv2_b = _fold_pad_cv2(raw["cv2"], hidden, hidden_p, cout_p,
                                 num_bottlenecks + 1)
    kparams = {"cv1_w": cv1_w, "cv1_b": cv1_b,
               "cv2_w": cv2_w, "cv2_b": cv2_b, "bottlenecks": []}
    for bp in raw["bottlenecks"]:
        w1, b1 = _fold_pad_1x1(bp["cv1"], hidden_p, bh_p)
        w2, b2 = _fold_pad_3x3(bp["cv2"], bh_p, hidden_p)
        kparams["bottlenecks"].append({"w1": w1, "b1": b1, "w2": w2, "b2": b2})
    return raw, kparams


# ---------------------------------------------------------------------------
# Module forward (NCHW at the boundary, channels-last + padded lanes inside)
# ---------------------------------------------------------------------------
def c2f_forward(params, x_nchw, c_out):
    # TODO(synk): the boundary NCHW<->NHWC transposes are XLA ops; keep the
    # surrounding model channels-last to drop them entirely.
    N, Cin, H, W = x_nchw.shape
    hidden_p = params["cv1_w"].shape[1]
    M = N * H * W
    x2 = jnp.transpose(x_nchw, (0, 2, 3, 1)).reshape(M, Cin).astype(jnp.bfloat16)

    y = [conv1x1_bn_silu(x2, params["cv1_w"], params["cv1_b"], jnp.bfloat16)]
    for bp in params["bottlenecks"]:
        x4 = y[-1].reshape(N, H, W, hidden_p)
        yb = bottleneck_fused(x4, bp["w1"], bp["b1"], bp["w2"], bp["b2"])
        y.append(yb.reshape(M, hidden_p))

    out = conv1x1_branches_bn_silu(y, params["cv2_w"], params["cv2_b"], jnp.float32)
    out = out[:, :c_out].reshape(N, H, W, c_out)
    return jnp.transpose(out, (0, 3, 1, 2))


# ---------------------------------------------------------------------------
# Pure-JAX reference (for correctness check)
# ---------------------------------------------------------------------------
def _conv_bn_silu_ref(x, p, pad):
    scale, bias = _fold_bn(p)
    y = lax.conv_general_dilated(
        x, p["w"], (1, 1), [(pad, pad), (pad, pad)],
        dimension_numbers=("NHWC", "HWIO", "NHWC"))
    y = y * scale + bias
    return y * jax.nn.sigmoid(y)


def c2f_ref(raw, x_nchw):
    x = jnp.transpose(x_nchw, (0, 2, 3, 1))
    y = [_conv_bn_silu_ref(x, raw["cv1"], 0)]
    for bp in raw["bottlenecks"]:
        h = _conv_bn_silu_ref(y[-1], bp["cv1"], 0)
        y.append(y[-1] + _conv_bn_silu_ref(h, bp["cv2"], 1))
    out = _conv_bn_silu_ref(jnp.concatenate(y, axis=-1), raw["cv2"], 0)
    return jnp.transpose(out, (0, 3, 1, 2))


# ---------------------------------------------------------------------------
if __name__ == "__main__":
    key = jax.random.PRNGKey(0)
    kx, kp = jax.random.split(key)

    in_channels, out_channels, num_bottlenecks = 4, 8, 2
    N, H, W = 2, 16, 16

    x = jax.random.normal(kx, (N, in_channels, H, W), jnp.float32)
    raw_params, kparams = init_c2f_params(kp, in_channels, out_channels,
                                          num_bottlenecks)

    fwd = jax.jit(c2f_forward, static_argnums=2)
    out = jax.block_until_ready(fwd(kparams, x, out_channels))

    assert out.shape == (N, out_channels, H, W), out.shape
    ref = jax.block_until_ready(c2f_ref(raw_params, x))
    err = float(jnp.max(jnp.abs(out - ref)))
    # bf16 MXU operands + bf16 branch activations carried through the chain of
    # pallas_calls -> compare against the f32 reference with bf16-appropriate
    # tolerances.
    assert jnp.allclose(out, ref, rtol=5e-2, atol=1e-1), \
        f"mismatch: max|err|={err}"

    print("KERNEL_OK")
</pallas_src>

<mosaic_0001>
module attributes {stable_mosaic.version = 11 : i64} {
  func.func @kernel(%arg0: i32, %arg1: memref<1x16x16x128xbf16, #tpu.memory_space<vmem>>, %arg2: memref<128x128xbf16, #tpu.memory_space<vmem>>, %arg3: memref<1x128xf32, #tpu.memory_space<vmem>>, %arg4: memref<9x128x128xbf16, #tpu.memory_space<vmem>>, %arg5: memref<1x128xf32, #tpu.memory_space<vmem>>, %arg6: memref<1x16x16x128xbf16, #tpu.memory_space<vmem>>, %arg7: memref<320x128xf32, #tpu.memory_space<vmem>>) attributes {dimension_semantics = [#tpu.dimension_semantics<parallel>], iteration_bounds = array<i64: 2>, scalar_prefetch = 0 : i64, scratch_operands = 1 : i64, tpu.core_type = #tpu.core_type<tc>, window_params = [{transform_indices = @transform_0, window_bounds = array<i64: 1, 16, 16, 128>}, {pipeline_mode = #tpu.pipeline_mode<synchronous>, transform_indices = @transform_1, window_bounds = array<i64: 128, 128>}, {pipeline_mode = #tpu.pipeline_mode<synchronous>, transform_indices = @transform_2, window_bounds = array<i64: 1, 128>}, {pipeline_mode = #tpu.pipeline_mode<synchronous>, transform_indices = @transform_3, window_bounds = array<i64: 9, 128, 128>}, {pipeline_mode = #tpu.pipeline_mode<synchronous>, transform_indices = @transform_4, window_bounds = array<i64: 1, 128>}, {transform_indices = @transform_5, window_bounds = array<i64: 1, 16, 16, 128>}]} {
    %c0 = arith.constant 0 : index
    %c0_0 = arith.constant 0 : index
    %c0_1 = arith.constant 0 : index
    %c0_2 = arith.constant 0 : index
    %0 = vector.load %arg1[%c0, %c0_0, %c0_1, %c0_2] : memref<1x16x16x128xbf16, #tpu.memory_space<vmem>>, vector<1x16x16x128xbf16>
    %1 = vector.shape_cast %0 : vector<1x16x16x128xbf16> to vector<16x16x128xbf16>
    %2 = vector.shape_cast %1 : vector<16x16x128xbf16> to vector<256x128xbf16>
    %c0_3 = arith.constant 0 : index
    %c0_4 = arith.constant 0 : index
    %3 = vector.load %arg2[%c0_3, %c0_4] : memref<128x128xbf16, #tpu.memory_space<vmem>>, vector<128x128xbf16>
    %cst = arith.constant dense<0.000000e+00> : vector<256x128xf32>
    %4 = tpu.matmul %2, %3, %cst {dimension_numbers = #tpu.dot_dimension_numbers<[1], [0], [0], [1], [0, 0, 1, 1], [], []>} : vector<256x128xbf16>, vector<128x128xbf16>, vector<256x128xf32> -> vector<256x128xf32>
    %c0_5 = arith.constant 0 : index
    %c0_6 = arith.constant 0 : index
    %5 = vector.load %arg3[%c0_5, %c0_6] : memref<1x128xf32, #tpu.memory_space<vmem>>, vector<1x128xf32>
    %6 = vector.broadcast %5 : vector<1x128xf32> to vector<256x128xf32>
    %7 = arith.addf %4, %6 : vector<256x128xf32>
    %8 = arith.negf %7 : vector<256x128xf32>
    %9 = math.exp %8 : vector<256x128xf32>
    %cst_7 = arith.constant 1.000000e+00 : f32
    %10 = vector.broadcast %cst_7 : f32 to vector<256x128xf32>
    %11 = arith.addf %10, %9 : vector<256x128xf32>
    %12 = arith.divf %10, %11 : vector<256x128xf32>
    %13 = arith.mulf %7, %12 : vector<256x128xf32>
    %cst_8 = arith.constant 0.000000e+00 : f32
    %14 = vector.broadcast %cst_8 : f32 to vector<32x128xf32>
    %c0_9 = arith.constant 0 : index
    %c0_10 = arith.constant 0 : index
    %15 = vector.load %arg7[%c0_9, %c0_10] : memref<320x128xf32, #tpu.memory_space<vmem>>, vector<32x128xf32>
    tpu.vector_store %arg7[%c0_9, %c0_10], %14 {strides = array<i32>} : memref<320x128xf32, #tpu.memory_space<vmem>>, vector<32x128xf32>,
    %c288 = arith.constant 288 : index
    %c0_11 = arith.constant 0 : index
    %16 = vector.load %arg7[%c288, %c0_11] : memref<320x128xf32, #tpu.memory_space<vmem>>, vector<32x128xf32>
    tpu.vector_store %arg7[%c288, %c0_11], %14 {strides = array<i32>} : memref<320x128xf32, #tpu.memory_space<vmem>>, vector<32x128xf32>,
    %c32 = arith.constant 32 : index
    %c0_12 = arith.constant 0 : index
    %17 = vector.load %arg7[%c32, %c0_12] : memref<320x128xf32, #tpu.memory_space<vmem>>, vector<256x128xf32>
    tpu.vector_store %arg7[%c32, %c0_12], %13 {strides = array<i32>} : memref<320x128xf32, #tpu.memory_space<vmem>>, vector<256x128xf32>,
    %18 = tpu.iota {dimensions = array<i32: 1>} : vector<16x16x1xi32>
    %19 = vector.shape_cast %18 : vector<16x16x1xi32> to vector<256x1xi32>
    %c1_i32 = arith.constant 1 : i32
    %20 = vector.broadcast %c1_i32 : i32 to vector<256x1xi32>
    %21 = arith.cmpi sge, %19, %20 : vector<256x1xi32>
    %c14_i32 = arith.constant 14 : i32
    %22 = vector.broadcast %c14_i32 : i32 to vector<256x1xi32>
    %23 = arith.cmpi sle, %19, %22 : vector<256x1xi32>
    %cst_13 = arith.constant 0.000000e+00 : f32
    %24 = vector.broadcast %cst_13 : f32 to vector<256x128xf32>
    %c15 = arith.constant 15 : index
    %c0_14 = arith.constant 0 : index
    %25 = vector.load %arg7[%c15, %c0_14] : memref<320x128xf32, #tpu.memory_space<vmem>>, vector<256x128xf32>
    %cst_15 = arith.constant 0.000000e+00 : f32
    %26 = vector.shape_cast %21 : vector<256x1xi1> to vector<256x1xi1>
    %27 = vector.broadcast %26 : vector<256x1xi1> to vector<256x128xi1>
    %28 = vector.broadcast %cst_15 : f32 to vector<256x128xf32>
    %29 = arith.select %27, %25, %28 : vector<256x128xi1>, vector<256x128xf32>
    %30 = arith.truncf %29 : vector<256x128xf32> to vector<256x128xbf16>
    %c0_16 = arith.constant 0 : index
    %c0_17 = arith.constant 0 : index
    %c0_18 = arith.constant 0 : index
    %31 = vector.load %arg4[%c0_16, %c0_17, %c0_18] : memref<9x128x128xbf16, #tpu.memory_space<vmem>>, vector<1x128x128xbf16>
    %32 = vector.shape_cast %31 : vector<1x128x128xbf16> to vector<128x128xbf16>
    %cst_19 = arith.constant dense<0.000000e+00> : vector<256x128xf32>
    %33 = tpu.matmul %30, %32, %cst_19 {dimension_numbers = #tpu.dot_dimension_numbers<[1], [0], [0], [1], [0, 0, 1, 1], [], []>} : vector<256x128xbf16>, vector<128x128xbf16>, vector<256x128xf32> -> vector<256x128xf32>
    %34 = arith.addf %24, %33 : vector<256x128xf32>
    %c16 = arith.constant 16 : index
    %c0_20 = arith.constant 0 : index
    %35 = vector.load %arg7[%c16, %c0_20] : memref<320x128xf32, #tpu.memory_space<vmem>>, vector<256x128xf32>
    %36 = arith.truncf %35 : vector<256x128xf32> to vector<256x128xbf16>
    %c1 = arith.constant 1 : index
    %c0_21 = arith.constant 0 : index
    %c0_22 = arith.constant 0 : index
    %37 = vector.load %arg4[%c1, %c0_21, %c0_22] : memref<9x128x128xbf16, #tpu.memory_space<vmem>>, vector<1x128x128xbf16>
    %38 = vector.shape_cast %37 : vector<1x128x128xbf16> to vector<128x128xbf16>
    %cst_23 = arith.constant dense<0.000000e+00> : vector<256x128xf32>
    %39 = tpu.matmul %36, %38, %cst_23 {dimension_numbers = #tpu.dot_dimension_numbers<[1], [0], [0], [1], [0, 0, 1, 1], [], []>} : vector<256x128xbf16>, vector<128x128xbf16>, vector<256x128xf32> -> vector<256x128xf32>
    %40 = arith.addf %34, %39 : vector<256x128xf32>
    %c17 = arith.constant 17 : index
    %c0_24 = arith.constant 0 : index
    %41 = vector.load %arg7[%c17, %c0_24] : memref<320x128xf32, #tpu.memory_space<vmem>>, vector<256x128xf32>
    %cst_25 = arith.constant 0.000000e+00 : f32
    %42 = vector.shape_cast %23 : vector<256x1xi1> to vector<256x1xi1>
    %43 = vector.broadcast %42 : vector<256x1xi1> to vector<256x128xi1>
    %44 = vector.broadcast %cst_25 : f32 to vector<256x128xf32>
    %45 = arith.select %43, %41, %44 : vector<256x128xi1>, vector<256x128xf32>
    %46 = arith.truncf %45 : vector<256x128xf32> to vector<256x128xbf16>
    %c2 = arith.constant 2 : index
    %c0_26 = arith.constant 0 : index
    %c0_27 = arith.constant 0 : index
    %47 = vector.load %arg4[%c2, %c0_26, %c0_27] : memref<9x128x128xbf16, #tpu.memory_space<vmem>>, vector<1x128x128xbf16>
    %48 = vector.shape_cast %47 : vector<1x128x128xbf16> to vector<128x128xbf16>
    %cst_28 = arith.constant dense<0.000000e+00> : vector<256x128xf32>
    %49 = tpu.matmul %46, %48, %cst_28 {dimension_numbers = #tpu.dot_dimension_numbers<[1], [0], [0], [1], [0, 0, 1, 1], [], []>} : vector<256x128xbf16>, vector<128x128xbf16>, vector<256x128xf32> -> vector<256x128xf32>
    %50 = arith.addf %40, %49 : vector<256x128xf32>
    %c31 = arith.constant 31 : index
    %c0_29 = arith.constant 0 : index
    %51 = vector.load %arg7[%c31, %c0_29] : memref<320x128xf32, #tpu.memory_space<vmem>>, vector<256x128xf32>
    %cst_30 = arith.constant 0.000000e+00 : f32
    %52 = vector.shape_cast %21 : vector<256x1xi1> to vector<256x1xi1>
    %53 = vector.broadcast %52 : vector<256x1xi1> to vector<256x128xi1>
    %54 = vector.broadcast %cst_30 : f32 to vector<256x128xf32>
    %55 = arith.select %53, %51, %54 : vector<256x128xi1>, vector<256x128xf32>
    %56 = arith.truncf %55 : vector<256x128xf32> to vector<256x128xbf16>
    %c3 = arith.constant 3 : index
    %c0_31 = arith.constant 0 : index
    %c0_32 = arith.constant 0 : index
    %57 = vector.load %arg4[%c3, %c0_31, %c0_32] : memref<9x128x128xbf16, #tpu.memory_space<vmem>>, vector<1x128x128xbf16>
    %58 = vector.shape_cast %57 : vector<1x128x128xbf16> to vector<128x128xbf16>
    %cst_33 = arith.constant dense<0.000000e+00> : vector<256x128xf32>
    %59 = tpu.matmul %56, %58, %cst_33 {dimension_numbers = #tpu.dot_dimension_numbers<[1], [0], [0], [1], [0, 0, 1, 1], [], []>} : vector<256x128xbf16>, vector<128x128xbf16>, vector<256x128xf32> -> vector<256x128xf32>
    %60 = arith.addf %50, %59 : vector<256x128xf32>
    %c32_34 = arith.constant 32 : index
    %c0_35 = arith.constant 0 : index
    %61 = vector.load %arg7[%c32_34, %c0_35] : memref<320x128xf32, #tpu.memory_space<vmem>>, vector<256x128xf32>
    %62 = arith.truncf %61 : vector<256x128xf32> to vector<256x128xbf16>
    %c4 = arith.constant 4 : index
    %c0_36 = arith.constant 0 : index
    %c0_37 = arith.constant 0 : index
    %63 = vector.load %arg4[%c4, %c0_36, %c0_37] : memref<9x128x128xbf16, #tpu.memory_space<vmem>>, vector<1x128x128xbf16>
    %64 = vector.shape_cast %63 : vector<1x128x128xbf16> to vector<128x128xbf16>
    %cst_38 = arith.constant dense<0.000000e+00> : vector<256x128xf32>
    %65 = tpu.matmul %62, %64, %cst_38 {dimension_numbers = #tpu.dot_dimension_numbers<[1], [0], [0], [1], [0, 0, 1, 1], [], []>} : vector<256x128xbf16>, vector<128x128xbf16>, vector<256x128xf32> -> vector<256x128xf32>
    %66 = arith.addf %60, %65 : vector<256x128xf32>
    %c33 = arith.constant 33 : index
    %c0_39 = arith.constant 0 : index
    %67 = vector.load %arg7[%c33, %c0_39] : memref<320x128xf32, #tpu.memory_space<vmem>>, vector<256x128xf32>
    %cst_40 = arith.constant 0.000000e+00 : f32
    %68 = vector.shape_cast %23 : vector<256x1xi1> to vector<256x1xi1>
    %69 = vector.broadcast %68 : vector<256x1xi1> to vector<256x128xi1>
    %70 = vector.broadcast %cst_40 : f32 to vector<256x128xf32>
    %71 = arith.select %69, %67, %70 : vector<256x128xi1>, vector<256x128xf32>
    %72 = arith.truncf %71 : vector<256x128xf32> to vector<256x128xbf16>
    %c5 = arith.constant 5 : index
    %c0_41 = arith.constant 0 : index
    %c0_42 = arith.constant 0 : index
    %73 = vector.load %arg4[%c5, %c0_41, %c0_42] : memref<9x128x128xbf16, #tpu.memory_space<vmem>>, vector<1x128x128xbf16>
    %74 = vector.shape_cast %73 : vector<1x128x128xbf16> to vector<128x128xbf16>
    %cst_43 = arith.constant dense<0.000000e+00> : vector<256x128xf32>
    %75 = tpu.matmul %72, %74, %cst_43 {dimension_numbers = #tpu.dot_dimension_numbers<[1], [0], [0], [1], [0, 0, 1, 1], [], []>} : vector<256x128xbf16>, vector<128x128xbf16>, vector<256x128xf32> -> vector<256x128xf32>
    %76 = arith.addf %66, %75 : vector<256x128xf32>
    %c47 = arith.constant 47 : index
    %c0_44 = arith.constant 0 : index
    %77 = vector.load %arg7[%c47, %c0_44] : memref<320x128xf32, #tpu.memory_space<vmem>>, vector<256x128xf32>
    %cst_45 = arith.constant 0.000000e+00 : f32
    %78 = vector.shape_cast %21 : vector<256x1xi1> to vector<256x1xi1>
    %79 = vector.broadcast %78 : vector<256x1xi1> to vector<256x128xi1>
    %80 = vector.broadcast %cst_45 : f32 to vector<256x128xf32>
    %81 = arith.select %79, %77, %80 : vector<256x128xi1>, vector<256x128xf32>
    %82 = arith.truncf %81 : vector<256x128xf32> to vector<256x128xbf16>
    %c6 = arith.constant 6 : index
    %c0_46 = arith.constant 0 : index
    %c0_47 = arith.constant 0 : index
    %83 = vector.load %arg4[%c6, %c0_46, %c0_47] : memref<9x128x128xbf16, #tpu.memory_space<vmem>>, vector<1x128x128xbf16>
    %84 = vector.shape_cast %83 : vector<1x128x128xbf16> to vector<128x128xbf16>
    %cst_48 = arith.constant dense<0.000000e+00> : vector<256x128xf32>
    %85 = tpu.matmul %82, %84, %cst_48 {dimension_numbers = #tpu.dot_dimension_numbers<[1], [0], [0], [1], [0, 0, 1, 1], [], []>} : vector<256x128xbf16>, vector<128x128xbf16>, vector<256x128xf32> -> vector<256x128xf32>
    %86 = arith.addf %76, %85 : vector<256x128xf32>
    %c48 = arith.constant 48 : index
    %c0_49 = arith.constant 0 : index
    %87 = vector.load %arg7[%c48, %c0_49] : memref<320x128xf32, #tpu.memory_space<vmem>>, vector<256x128xf32>
    %88 = arith.truncf %87 : vector<256x128xf32> to vector<256x128xbf16>
    %c7 = arith.constant 7 : index
    %c0_50 = arith.constant 0 : index
    %c0_51 = arith.constant 0 : index
    %89 = vector.load %arg4[%c7, %c0_50, %c0_51] : memref<9x128x128xbf16, #tpu.memory_space<vmem>>, vector<1x128x128xbf16>
    %90 = vector.shape_cast %89 : vector<1x128x128xbf16> to vector<128x128xbf16>
    %cst_52 = arith.constant dense<0.000000e+00> : vector<256x128xf32>
    %91 = tpu.matmul %88, %90, %cst_52 {dimension_numbers = #tpu.dot_dimension_numbers<[1], [0], [0], [1], [0, 0, 1, 1], [], []>} : vector<256x128xbf16>, vector<128x128xbf16>, vector<256x128xf32> -> vector<256x128xf32>
    %92 = arith.addf %86, %91 : vector<256x128xf32>
    %c49 = arith.constant 49 : index
    %c0_53 = arith.constant 0 : index
    %93 = vector.load %arg7[%c49, %c0_53] : memref<320x128xf32, #tpu.memory_space<vmem>>, vector<256x128xf32>
    %cst_54 = arith.constant 0.000000e+00 : f32
    %94 = vector.shape_cast %23 : vector<256x1xi1> to vector<256x1xi1>
    %95 = vector.broadcast %94 : vector<256x1xi1> to vector<256x128xi1>
    %96 = vector.broadcast %cst_54 : f32 to vector<256x128xf32>
    %97 = arith.select %95, %93, %96 : vector<256x128xi1>, vector<256x128xf32>
    %98 = arith.truncf %97 : vector<256x128xf32> to vector<256x128xbf16>
    %c8 = arith.constant 8 : index
    %c0_55 = arith.constant 0 : index
    %c0_56 = arith.constant 0 : index
    %99 = vector.load %arg4[%c8, %c0_55, %c0_56] : memref<9x128x128xbf16, #tpu.memory_space<vmem>>, vector<1x128x128xbf16>
    %100 = vector.shape_cast %99 : vector<1x128x128xbf16> to vector<128x128xbf16>
    %cst_57 = arith.constant dense<0.000000e+00> : vector<256x128xf32>
    %101 = tpu.matmul %98, %100, %cst_57 {dimension_numbers = #tpu.dot_dimension_numbers<[1], [0], [0], [1], [0, 0, 1, 1], [], []>} : vector<256x128xbf16>, vector<128x128xbf16>, vector<256x128xf32> -> vector<256x128xf32>
    %102 = arith.addf %92, %101 : vector<256x128xf32>
    %c0_58 = arith.constant 0 : index
    %c0_59 = arith.constant 0 : index
    %103 = vector.load %arg5[%c0_58, %c0_59] : memref<1x128xf32, #tpu.memory_space<vmem>>, vector<1x128xf32>
    %104 = vector.broadcast %103 : vector<1x128xf32> to vector<256x128xf32>
    %105 = arith.addf %102, %104 : vector<256x128xf32>
    %106 = arith.negf %105 : vector<256x128xf32>
    %107 = math.exp %106 : vector<256x128xf32>
    %cst_60 = arith.constant 1.000000e+00 : f32
    %108 = vector.broadcast %cst_60 : f32 to vector<256x128xf32>
    %109 = arith.addf %108, %107 : vector<256x128xf32>
    %110 = arith.divf %108, %109 : vector<256x128xf32>
    %111 = arith.mulf %105, %110 : vector<256x128xf32>
    %112 = arith.extf %1 : vector<16x16x128xbf16> to vector<16x16x128xf32>
    %113 = vector.shape_cast %111 : vector<256x128xf32> to vector<16x16x128xf32>
    %114 = arith.addf %112, %113 : vector<16x16x128xf32>
    %115 = arith.truncf %114 : vector<16x16x128xf32> to vector<16x16x128xbf16>
    %c0_61 = arith.constant 0 : index
    %c0_62 = arith.constant 0 : index
    %c0_63 = arith.constant 0 : index
    %c0_64 = arith.constant 0 : index
    %116 = vector.load %arg6[%c0_61, %c0_62, %c0_63, %c0_64] : memref<1x16x16x128xbf16, #tpu.memory_space<vmem>>, vector<1x16x16x128xbf16>
    %117 = vector.shape_cast %116 : vector<1x16x16x128xbf16> to vector<16x16x128xbf16>
    %118 = vector.shape_cast %115 : vector<16x16x128xbf16> to vector<1x16x16x128xbf16>
    tpu.vector_store %arg6[%c0_61, %c0_62, %c0_63, %c0_64], %118 {strides = array<i32>} : memref<1x16x16x128xbf16, #tpu.memory_space<vmem>>, vector<1x16x16x128xbf16>,
    return
  }
  func.func @transform_0(%arg0: i32) -> (i32, i32, i32, i32) {
    %c0_i32 = arith.constant 0 : i32
    %c0_i32_0 = arith.constant 0 : i32
    %c0_i32_1 = arith.constant 0 : i32
    %c0_i32_2 = arith.constant 0 : i32
    return %arg0, %c0_i32, %c0_i32_0, %c0_i32_1 : i32, i32, i32, i32
  }
  func.func @transform_1(%arg0: i32) -> (i32, i32) {
    %c0_i32 = arith.constant 0 : i32
    %c0_i32_0 = arith.constant 0 : i32
    %c0_i32_1 = arith.constant 0 : i32
    return %c0_i32, %c0_i32_0 : i32, i32
  }
  func.func @transform_2(%arg0: i32) -> (i32, i32) {
    %c0_i32 = arith.constant 0 : i32
    %c0_i32_0 = arith.constant 0 : i32
    %c0_i32_1 = arith.constant 0 : i32
    return %c0_i32, %c0_i32_0 : i32, i32
  }
  func.func @transform_3(%arg0: i32) -> (i32, i32, i32) {
    %c0_i32 = arith.constant 0 : i32
    %c0_i32_0 = arith.constant 0 : i32
    %c0_i32_1 = arith.constant 0 : i32
    %c0_i32_2 = arith.constant 0 : i32
    return %c0_i32, %c0_i32_0, %c0_i32_1 : i32, i32, i32
  }
  func.func @transform_4(%arg0: i32) -> (i32, i32) {
    %c0_i32 = arith.constant 0 : i32
    %c0_i32_0 = arith.constant 0 : i32
    %c0_i32_1 = arith.constant 0 : i32
    return %c0_i32, %c0_i32_0 : i32, i32
  }
  func.func @transform_5(%arg0: i32) -> (i32, i32, i32, i32) {
    %c0_i32 = arith.constant 0 : i32
    %c0_i32_0 = arith.constant 0 : i32
    %c0_i32_1 = arith.constant 0 : i32
    %c0_i32_2 = arith.constant 0 : i32
    return %arg0, %c0_i32, %c0_i32_0, %c0_i32_1 : i32, i32, i32, i32
  }
}

module attributes {stable_mosaic.version = 11 : i64} {
  func.func @_conv1x1_kernel(%arg0: i32, %arg1: memref<256x4xbf16, #tpu.memory_space<vmem>>, %arg2: memref<4x128xbf16, #tpu.memory_space<vmem>>, %arg3: memref<1x128xf32, #tpu.memory_space<vmem>>, %arg4: memref<256x128xbf16, #tpu.memory_space<vmem>>) attributes {dimension_semantics = [#tpu.dimension_semantics<parallel>], iteration_bounds = array<i64: 2>, scalar_prefetch = 0 : i64, scratch_operands = 0 : i64, tpu.core_type = #tpu.core_type<tc>, window_params = [{transform_indices = @transform_0, window_bounds = array<i64: 256, 4>}, {pipeline_mode = #tpu.pipeline_mode<synchronous>, transform_indices = @transform_1, window_bounds = array<i64: 4, 128>}, {pipeline_mode = #tpu.pipeline_mode<synchronous>, transform_indices = @transform_2, window_bounds = array<i64: 1, 128>}, {transform_indices = @transform_3, window_bounds = array<i64: 256, 128>}]} {
    %c0 = arith.constant 0 : index
    %c0_0 = arith.constant 0 : index
    %0 = vector.load %arg1[%c0, %c0_0] : memref<256x4xbf16, #tpu.memory_space<vmem>>, vector<256x4xbf16>
    %c0_1 = arith.constant 0 : index
    %c0_2 = arith.constant 0 : index
    %1 = vector.load %arg2[%c0_1, %c0_2] : memref<4x128xbf16, #tpu.memory_space<vmem>>, vector<4x128xbf16>
    %cst = arith.constant dense<0.000000e+00> : vector<256x128xf32>
    %2 = tpu.matmul %0, %1, %cst {dimension_numbers = #tpu.dot_dimension_numbers<[1], [0], [0], [1], [0, 0, 1, 1], [], []>} : vector<256x4xbf16>, vector<4x128xbf16>, vector<256x128xf32> -> vector<256x128xf32>
    %c0_3 = arith.constant 0 : index
    %c0_4 = arith.constant 0 : index
    %3 = vector.load %arg3[%c0_3, %c0_4] : memref<1x128xf32, #tpu.memory_space<vmem>>, vector<1x128xf32>
    %4 = vector.broadcast %3 : vector<1x128xf32> to vector<256x128xf32>
    %5 = arith.addf %2, %4 : vector<256x128xf32>
    %6 = arith.negf %5 : vector<256x128xf32>
    %7 = math.exp %6 : vector<256x128xf32>
    %cst_5 = arith.constant 1.000000e+00 : f32
    %8 = vector.broadcast %cst_5 : f32 to vector<256x128xf32>
    %9 = arith.addf %8, %7 : vector<256x128xf32>
    %10 = arith.divf %8, %9 : vector<256x128xf32>
    %11 = arith.mulf %5, %10 : vector<256x128xf32>
    %12 = arith.truncf %11 : vector<256x128xf32> to vector<256x128xbf16>
    %c0_6 = arith.constant 0 : index
    %c0_7 = arith.constant 0 : index
    %13 = vector.load %arg4[%c0_6, %c0_7] : memref<256x128xbf16, #tpu.memory_space<vmem>>, vector<256x128xbf16>
    tpu.vector_store %arg4[%c0_6, %c0_7], %12 {strides = array<i32>} : memref<256x128xbf16, #tpu.memory_space<vmem>>, vector<256x128xbf16>,
    return
  }
  func.func @transform_0(%arg0: i32) -> (i32, i32) {
    %c0_i32 = arith.constant 0 : i32
    %c0_i32_0 = arith.constant 0 : i32
    return %arg0, %c0_i32 : i32, i32
  }
  func.func @transform_1(%arg0: i32) -> (i32, i32) {
    %c0_i32 = arith.constant 0 : i32
    %c0_i32_0 = arith.constant 0 : i32
    %c0_i32_1 = arith.constant 0 : i32
    return %c0_i32, %c0_i32_0 : i32, i32
  }
  func.func @transform_2(%arg0: i32) -> (i32, i32) {
    %c0_i32 = arith.constant 0 : i32
    %c0_i32_0 = arith.constant 0 : i32
    %c0_i32_1 = arith.constant 0 : i32
    return %c0_i32, %c0_i32_0 : i32, i32
  }
  func.func @transform_3(%arg0: i32) -> (i32, i32) {
    %c0_i32 = arith.constant 0 : i32
    %c0_i32_0 = arith.constant 0 : i32
    return %arg0, %c0_i32 : i32, i32
  }
}

module attributes {stable_mosaic.version = 11 : i64} {
  func.func @kernel(%arg0: i32, %arg1: memref<256x128xbf16, #tpu.memory_space<vmem>>, %arg2: memref<256x128xbf16, #tpu.memory_space<vmem>>, %arg3: memref<256x128xbf16, #tpu.memory_space<vmem>>, %arg4: memref<3x128x128xbf16, #tpu.memory_space<vmem>>, %arg5: memref<1x128xf32, #tpu.memory_space<vmem>>, %arg6: memref<256x128xf32, #tpu.memory_space<vmem>>) attributes {dimension_semantics = [#tpu.dimension_semantics<parallel>], iteration_bounds = array<i64: 2>, scalar_prefetch = 0 : i64, scratch_operands = 0 : i64, tpu.core_type = #tpu.core_type<tc>, window_params = [{transform_indices = @transform_0, window_bounds = array<i64: 256, 128>}, {transform_indices = @transform_1, window_bounds = array<i64: 256, 128>}, {transform_indices = @transform_2, window_bounds = array<i64: 256, 128>}, {pipeline_mode = #tpu.pipeline_mode<synchronous>, transform_indices = @transform_3, window_bounds = array<i64: 3, 128, 128>}, {pipeline_mode = #tpu.pipeline_mode<synchronous>, transform_indices = @transform_4, window_bounds = array<i64: 1, 128>}, {transform_indices = @transform_5, window_bounds = array<i64: 256, 128>}]} {
    %c0 = arith.constant 0 : index
    %c0_0 = arith.constant 0 : index
    %0 = vector.load %arg1[%c0, %c0_0] : memref<256x128xbf16, #tpu.memory_space<vmem>>, vector<256x128xbf16>
    %c0_1 = arith.constant 0 : index
    %c0_2 = arith.constant 0 : index
    %c0_3 = arith.constant 0 : index
    %1 = vector.load %arg4[%c0_1, %c0_2, %c0_3] : memref<3x128x128xbf16, #tpu.memory_space<vmem>>, vector<1x128x128xbf16>
    %2 = vector.shape_cast %1 : vector<1x128x128xbf16> to vector<128x128xbf16>
    %cst = arith.constant dense<0.000000e+00> : vector<256x128xf32>
    %3 = tpu.matmul %0, %2, %cst {dimension_numbers = #tpu.dot_dimension_numbers<[1], [0], [0], [1], [0, 0, 1, 1], [], []>} : vector<256x128xbf16>, vector<128x128xbf16>, vector<256x128xf32> -> vector<256x128xf32>
    %c0_4 = arith.constant 0 : index
    %c0_5 = arith.constant 0 : index
    %4 = vector.load %arg2[%c0_4, %c0_5] : memref<256x128xbf16, #tpu.memory_space<vmem>>, vector<256x128xbf16>
    %c1 = arith.constant 1 : index
    %c0_6 = arith.constant 0 : index
    %c0_7 = arith.constant 0 : index
    %5 = vector.load %arg4[%c1, %c0_6, %c0_7] : memref<3x128x128xbf16, #tpu.memory_space<vmem>>, vector<1x128x128xbf16>
    %6 = vector.shape_cast %5 : vector<1x128x128xbf16> to vector<128x128xbf16>
    %cst_8 = arith.constant dense<0.000000e+00> : vector<256x128xf32>
    %7 = tpu.matmul %4, %6, %cst_8 {dimension_numbers = #tpu.dot_dimension_numbers<[1], [0], [0], [1], [0, 0, 1, 1], [], []>} : vector<256x128xbf16>, vector<128x128xbf16>, vector<256x128xf32> -> vector<256x128xf32>
    %8 = arith.addf %3, %7 : vector<256x128xf32>
    %c0_9 = arith.constant 0 : index
    %c0_10 = arith.constant 0 : index
    %9 = vector.load %arg3[%c0_9, %c0_10] : memref<256x128xbf16, #tpu.memory_space<vmem>>, vector<256x128xbf16>
    %c2 = arith.constant 2 : index
    %c0_11 = arith.constant 0 : index
    %c0_12 = arith.constant 0 : index
    %10 = vector.load %arg4[%c2, %c0_11, %c0_12] : memref<3x128x128xbf16, #tpu.memory_space<vmem>>, vector<1x128x128xbf16>
    %11 = vector.shape_cast %10 : vector<1x128x128xbf16> to vector<128x128xbf16>
    %cst_13 = arith.constant dense<0.000000e+00> : vector<256x128xf32>
    %12 = tpu.matmul %9, %11, %cst_13 {dimension_numbers = #tpu.dot_dimension_numbers<[1], [0], [0], [1], [0, 0, 1, 1], [], []>} : vector<256x128xbf16>, vector<128x128xbf16>, vector<256x128xf32> -> vector<256x128xf32>
    %13 = arith.addf %8, %12 : vector<256x128xf32>
    %c0_14 = arith.constant 0 : index
    %c0_15 = arith.constant 0 : index
    %14 = vector.load %arg5[%c0_14, %c0_15] : memref<1x128xf32, #tpu.memory_space<vmem>>, vector<1x128xf32>
    %15 = vector.broadcast %14 : vector<1x128xf32> to vector<256x128xf32>
    %16 = arith.addf %13, %15 : vector<256x128xf32>
    %17 = arith.negf %16 : vector<256x128xf32>
    %18 = math.exp %17 : vector<256x128xf32>
    %cst_16 = arith.constant 1.000000e+00 : f32
    %19 = vector.broadcast %cst_16 : f32 to vector<256x128xf32>
    %20 = arith.addf %19, %18 : vector<256x128xf32>
    %21 = arith.divf %19, %20 : vector<256x128xf32>
    %22 = arith.mulf %16, %21 : vector<256x128xf32>
    %c0_17 = arith.constant 0 : index
    %c0_18 = arith.constant 0 : index
    %23 = vector.load %arg6[%c0_17, %c0_18] : memref<256x128xf32, #tpu.memory_space<vmem>>, vector<256x128xf32>
    tpu.vector_store %arg6[%c0_17, %c0_18], %22 {strides = array<i32>} : memref<256x128xf32, #tpu.memory_space<vmem>>, vector<256x128xf32>,
    return
  }
  func.func @transform_0(%arg0: i32) -> (i32, i32) {
    %c0_i32 = arith.constant 0 : i32
    %c0_i32_0 = arith.constant 0 : i32
    return %arg0, %c0_i32 : i32, i32
  }
  func.func @transform_1(%arg0: i32) -> (i32, i32) {
    %c0_i32 = arith.constant 0 : i32
    %c0_i32_0 = arith.constant 0 : i32
    return %arg0, %c0_i32 : i32, i32
  }
  func.func @transform_2(%arg0: i32) -> (i32, i32) {
    %c0_i32 = arith.constant 0 : i32
    %c0_i32_0 = arith.constant 0 : i32
    return %arg0, %c0_i32 : i32, i32
  }
  func.func @transform_3(%arg0: i32) -> (i32, i32, i32) {
    %c0_i32 = arith.constant 0 : i32
    %c0_i32_0 = arith.constant 0 : i32
    %c0_i32_1 = arith.constant 0 : i32
    %c0_i32_2 = arith.constant 0 : i32
    return %c0_i32, %c0_i32_0, %c0_i32_1 : i32, i32, i32
  }
  func.func @transform_4(%arg0: i32) -> (i32, i32) {
    %c0_i32 = arith.constant 0 : i32
    %c0_i32_0 = arith.constant 0 : i32
    %c0_i32_1 = arith.constant 0 : i32
    return %c0_i32, %c0_i32_0 : i32, i32
  }
  func.func @transform_5(%arg0: i32) -> (i32, i32) {
    %c0_i32 = arith.constant 0 : i32
    %c0_i32_0 = arith.constant 0 : i32
    return %arg0, %c0_i32 : i32, i32
  }
}

</mosaic_0001>

<bundles_post_ra>
// kernel: c2f_forward.4
= control target key start
LH: loop header
LB: loop body
LE: loop exit
PB: predicated region body
PF: predicated region fallthrough
CT: control target
= control target key end

     0   :  { %s1419_s12 = smov 0   ;;  %s1690_s0 = inlined_call_operand.vmem [shape: bf16[512,4], index: 0, kind: input, shape index: {}]   ;;  %s1691_s1 = inlined_call_operand.vmem [shape: bf16[4,128], index: 1, kind: input, shape index: {}]   ;;  %s1692_s2 = inlined_call_operand.vmem [shape: f32[1,128], index: 2, kind: input, shape index: {}]   ;;  %s1693_s3 = inlined_call_operand.vmem [shape: bf16[512,128], index: 3, kind: output, shape index: {}]  }
   0x1 LB: > { %s949_s13 = sadd.s32 4294967295, %s1397_s12   ;;  %p953_p0 = scmp.ge.s32.totalorder %s1397_s12, 1  ;;  %s1397_s12 = sphi %s1419_s12, %s13_s12  }
   0x2   : > { %p138_p1 = scmp.lt.s32.totalorder %s1397_s12, 3 }
   0x4   : > { %p139_p2 = pnand %p953_p0, %p138_p1 }
   0x5   : > { %v207_v0 = vld [vmem:[%s1691_s1] sm:$0x3] (!%p139_p2)  ;;  %vm344_vm0 = vcmask (!%p139_p2), 1041408   ;;  %s954_s16 = sshll.u32 (!%p139_p2), %s949_s13, 5  ;;  %vm295_vm1 = vcmask (!%p139_p2), 31744  }
   0x6   : > { %142 = sbr.rel (%p139_p2) target bundleno = 320 (0x140), region = 32  ;;  %1237 = vmatprep.subr.msk.bf16.mxu0 (!%p139_p2), %vm344_vm0, %v207_v0  ;;  %1238 = vmatprep.subr.msk.bf16.mxu1 (!%p139_p2), %vm344_vm0, %v207_v0  ;;  %v346_v1 = vsel (!%p139_p2), %vm344_vm0, %v207_v0, 0  ;;  %p163_p3 = scmp.lt.s32.totalorder (!%p139_p2), %s954_s16, 63  ;;  %v1475_v18 = vld [vmem:[%s1692_s2] ss:$0 sm:$0xff] (!%p139_p2) }
   0x7   : > { %1202 = vmatpush3.bf16.msra.mxu0 (!%p139_p2), %v346_v1  ;;  %1236 = vmatpush3.bf16.msra.mxu1 (!%p139_p2), %v346_v1 }
   0xd   : > { %s1695_s16 = smov (!%p163_p3, %s954_s16), 63 }
   0xe   : > { %s955_s17 = sshll.u32 %s1695_s16, 2 }
   0xf   : > { %s1438_s20 = scalar_lea.vmem %s1690_s0, %s955_s17  ;;  %s1595_s25 = scalar_lea.vmem %s1693_s3, %s955_s17 }
  0x10   : > { %v1247_v2 = vld [vmem:[%s1438_s20] sm:$0xff]   ;;  %v1249_v4 = vld [vmem:[%s1438_s20 + $0x8] sm:$0xff]   ;;  %v1251_v6 = vld [vmem:[%s1438_s20 + $0x10] sm:$0xff]  }
  0x11   : > { %v1248_v3 = vld [vmem:[%s1438_s20 + $0x40] sm:$0xff]   ;;  %1203 = vmatprep.mubr.msk.bf16.mxu0 %vm295_vm1, %v1247_v2  ;;  %v1250_v5 = vld [vmem:[%s1438_s20 + $0x48] sm:$0xff]   ;;  %v1252_v7 = vld [vmem:[%s1438_s20 + $0x50] sm:$0xff]  }
  0x12   : > { %1219 = vmatprep.mubr.msk.bf16.mxu1 %vm295_vm1, %v1248_v3  ;;  %1204 = vmatmul.mubr.msk.bf16.vlgmr.msra.gmra.mrb[0].mxu0 %vm295_vm1, %v1249_v4  ;;  %v1253_v8 = vld [vmem:[%s1438_s20 + $0x18] sm:$0xff]   ;;  %v1255_v10 = vld [vmem:[%s1438_s20 + $0x20] sm:$0xff]   ;;  %v1257_v12 = vld [vmem:[%s1438_s20 + $0x28] sm:$0xff]  }
  0x13   : > { %1220 = vmatmul.mubr.msk.bf16.vlgmr.msra.gmra.mrb[0].mxu1 %vm295_vm1, %v1250_v5  ;;  %1207 = vmatprep.mubr.msk.bf16.mxu0 %vm295_vm1, %v1251_v6  ;;  %v1254_v9 = vld [vmem:[%s1438_s20 + $0x58] sm:$0xff]   ;;  %v1256_v11 = vld [vmem:[%s1438_s20 + $0x60] sm:$0xff]   ;;  %v1258_v13 = vld [vmem:[%s1438_s20 + $0x68] sm:$0xff]  }
  0x14   : > { %1223 = vmatprep.mubr.msk.bf16.mxu1 %vm295_vm1, %v1252_v7  ;;  %v1259_v14 = vld [vmem:[%s1438_s20 + $0x30] sm:$0xff]   ;;  %v1261_v16 = vld [vmem:[%s1438_s20 + $0x38] sm:$0xff]  }
  0x15   : > { %v1260_v15 = vld [vmem:[%s1438_s20 + $0x70] sm:$0xff]   ;;  %v1262_v17 = vld [vmem:[%s1438_s20 + $0x78] sm:$0xff]  }
  0x1a   : > { %1208 = vmatmul.mubr.msk.bf16.gmra.mrb[4].mxu0 %vm295_vm1, %v1253_v8 }
  0x1b   : > { %1224 = vmatmul.mubr.msk.bf16.gmra.mrb[4].mxu1 %vm295_vm1, %v1254_v9  ;;  %1211 = vmatprep.mubr.msk.bf16.mxu0 %vm295_vm1, %v1255_v10 }
  0x1c   : > { %1227 = vmatprep.mubr.msk.bf16.mxu1 %vm295_vm1, %v1256_v11 }
  0x22   : > { %1212 = vmatmul.mubr.msk.bf16.gmra.mrb[8].mxu0 %vm295_vm1, %v1257_v12 }
  0x23   : > { %1228 = vmatmul.mubr.msk.bf16.gmra.mrb[8].mxu1 %vm295_vm1, %v1258_v13  ;;  %1215 = vmatprep.mubr.msk.bf16.mxu0 %vm295_vm1, %v1259_v14 }
  0x24   : > { %1231 = vmatprep.mubr.msk.bf16.mxu1 %vm295_vm1, %v1260_v15 }
  0x2a   : > { %1216 = vmatmul.mubr.msk.bf16.gmra.mrb[12].mxu0 %vm295_vm1, %v1261_v16 }
  0x2b   : > { %1232 = vmatmul.mubr.msk.bf16.gmra.mrb[12].mxu1 %vm295_vm1, %v1262_v17 }
  0xe5   : > { %v1205_v19 = vpop.f32.mrb[0].mxu0 }
  0xe6   : > { %v1478_v20 = vadd.f32 %v1205_v19, %v1475_v18  ;;  %v1221_v21 = vpop.f32.mrb[0].mxu1  ;;  %v382_v22 = vpop.f32.mrb[1].mxu0 }
  0xe7   : > { %v1481_v23 = vadd.f32 %v1221_v21, %v1475_v18  ;;  %v1484_v24 = vadd.f32 %v1475_v18, %v382_v22  ;;  %v446_v25 = vpop.f32.mrb[1].mxu1  ;;  %v1206_v26 = vpop.f32.mrb[2].mxu0 }
  0xe8   : > { %v993_v27 = vmul.f32 -1.442695, %v1478_v20  ;;  %v1488_v28 = vadd.f32 %v1475_v18, %v446_v25  ;;  %v1491_v29 = vadd.f32 %v1206_v26, %v1475_v18  ;;  %v1222_v30 = vpop.f32.mrb[2].mxu1  ;;  %v385_v31 = vpop.f32.mrb[3].mxu0 }
  0xe9   : > { %v1009_v32 = vmul.f32 -1.442695, %v1481_v23  ;;  %v991_v33 = vmul.f32 -1.442695, %v1484_v24  ;;  %v1496_v34 = vadd.f32 %v1222_v30, %v1475_v18  ;;  %v1499_v35 = vadd.f32 %v1475_v18, %v385_v31  ;;  %v449_v36 = vpop.f32.mrb[3].mxu1 }
  0xea   : > { %1263 = vpow2.f32 %v993_v27  ;;  %v1007_v37 = vmul.f32 -1.442695, %v1488_v28  ;;  %v994_v38 = vmul.f32 -1.442695, %v1491_v29  ;;  %v1504_v39 = vadd.f32 %v1475_v18, %v449_v36 }
  0xeb   : > { %1265 = vpow2.f32 %v1009_v32  ;;  %v1010_v40 = vmul.f32 -1.442695, %v1496_v34  ;;  %v992_v41 = vmul.f32 -1.442695, %v1499_v35 }
  0xec   : > { %1267 = vpow2.f32 %v991_v33  ;;  %v1008_v42 = vmul.f32 -1.442695, %v1504_v39 }
  0xed   : > { %1269 = vpow2.f32 %v1007_v37  ;;  %v1209_v43 = vpop.f32.mrb[4].mxu0 }
  0xee   : > { %1271 = vpow2.f32 %v994_v38  ;;  %v1510_v44 = vadd.f32 %v1209_v43, %v1475_v18  ;;  %v1225_v45 = vpop.f32.mrb[4].mxu1  ;;  %v398_v46 = vpop.f32.mrb[5].mxu0 }
  0xef   : > { %1273 = vpow2.f32 %v1010_v40  ;;  %v1513_v47 = vadd.f32 %v1225_v45, %v1475_v18  ;;  %v1516_v48 = vadd.f32 %v1475_v18, %v398_v46  ;;  %v462_v49 = vpop.f32.mrb[5].mxu1  ;;  %v1210_v50 = vpop.f32.mrb[6].mxu0 }
  0xf0   : > { %1275 = vpow2.f32 %v992_v41  ;;  %v997_v51 = vmul.f32 -1.442695, %v1510_v44  ;;  %v1520_v52 = vadd.f32 %v1475_v18, %v462_v49  ;;  %v1523_v53 = vadd.f32 %v1210_v50, %v1475_v18  ;;  %v1226_v54 = vpop.f32.mrb[6].mxu1  ;;  %v401_v55 = vpop.f32.mrb[7].mxu0 }
  0xf1   : > { %1277 = vpow2.f32 %v1008_v42  ;;  %v1013_v56 = vmul.f32 -1.442695, %v1513_v47  ;;  %v995_v57 = vmul.f32 -1.442695, %v1516_v48  ;;  %v465_v58 = vpop.f32.mrb[7].mxu1  ;;  %v1530_v15 = vadd.f32 %v1226_v54, %v1475_v18 }
  0xf2   : > { %1279 = vpow2.f32 %v997_v51  ;;  %v1011_v59 = vmul.f32 -1.442695, %v1520_v52  ;;  %v998_v60 = vmul.f32 -1.442695, %v1523_v53  ;;  %v1533_v21 = vadd.f32 %v1475_v18, %v401_v55 }
  0xf3   : > { %1281 = vpow2.f32 %v1013_v56  ;;  %v1014_v32 = vmul.f32 -1.442695, %v1530_v15  ;;  %v1537_v33 = vadd.f32 %v1475_v18, %v465_v58 }
  0xf4   : > { %v1264_v61 = vpop.eup %1263  ;;  %1283 = vpow2.f32 %v995_v57  ;;  %v996_v40 = vmul.f32 -1.442695, %v1533_v21 }
  0xf5   : > { %v1266_v62 = vpop.eup %1265  ;;  %v607_v63 = vadd.f32 1.0, %v1264_v61  ;;  %1285 = vpow2.f32 %v1011_v59  ;;  %v1213_v0 = vpop.f32.mrb[8].mxu0 }
  0xf6   : > { %v1268_v1 = vpop.eup %1267  ;;  %v623_v2 = vadd.f32 1.0, %v1266_v62  ;;  %1287 = vpow2.f32 %v998_v60  ;;  %v1229_v3 = vpop.f32.mrb[8].mxu1  ;;  %v1541_v41 = vadd.f32 %v1213_v0, %v1475_v18 }
  0xf7   : > { %v414_v4 = vpop.f32.mrb[9].mxu0  ;;  %v1270_v5 = vpop.eup %1269  ;;  %1289 = vrcp.f32 %v607_v63  ;;  %v605_v6 = vadd.f32 1.0, %v1268_v1  ;;  %v1546_v49 = vadd.f32 %v1229_v3, %v1475_v18  ;;  %v1012_v3 = vmul.f32 -1.442695, %v1537_v33 }
  0xf8   : > { %v478_v7 = vpop.f32.mrb[9].mxu1  ;;  %v1214_v8 = vpop.f32.mrb[10].mxu0  ;;  %1291 = vrcp.f32 %v623_v2  ;;  %v621_v10 = vadd.f32 1.0, %v1270_v5  ;;  %v1549_v50 = vadd.f32 %v1475_v18, %v414_v4  ;;  %v1001_v5 = vmul.f32 -1.442695, %v1541_v41 }
  0xf9   : > { %v1272_v9 = vpop.eup %1271  ;;  %v1230_v11 = vpop.f32.mrb[10].mxu1  ;;  %1293 = vrcp.f32 %v605_v6  ;;  %v1556_v57 = vadd.f32 %v1475_v18, %v478_v7  ;;  %v1559_v58 = vadd.f32 %v1214_v8, %v1475_v18  ;;  %v1017_v6 = vmul.f32 -1.442695, %v1546_v49 }
  0xfa   : > { %v417_v12 = vpop.f32.mrb[11].mxu0  ;;  %v1274_v13 = vpop.eup %1273  ;;  %v608_v14 = vadd.f32 1.0, %v1272_v9  ;;  %1295 = vrcp.f32 %v621_v10  ;;  %v1566_v63 = vadd.f32 %v1230_v11, %v1475_v18  ;;  %v999_v8 = vmul.f32 -1.442695, %v1549_v50 }
  0xfb   : > { %v481_v16 = vpop.f32.mrb[11].mxu1  ;;  %v1276_v17 = vpop.eup %1275  ;;  %v624_v19 = vadd.f32 1.0, %v1274_v13  ;;  %v1569_v0 = vadd.f32 %v1475_v18, %v417_v12  ;;  %v1015_v9 = vmul.f32 -1.442695, %v1556_v57  ;;  %v1002_v10 = vmul.f32 -1.442695, %v1559_v58 }
  0xfc   : > { %v1278_v22 = vpop.eup %1277  ;;  %1297 = vrcp.f32 %v608_v14  ;;  %v606_v25 = vadd.f32 1.0, %v1276_v17  ;;  %v1018_v12 = vmul.f32 -1.442695, %v1566_v63  ;;  %v1582_v14 = vadd.f32 %v1475_v18, %v481_v16 }
  0xfd   : > { %v1280_v26 = vpop.eup %1279  ;;  %1299 = vrcp.f32 %v624_v19  ;;  %v622_v27 = vadd.f32 1.0, %v1278_v22  ;;  %v1217_v36 = vpop.f32.mrb[12].mxu0  ;;  %v1000_v13 = vmul.f32 -1.442695, %v1569_v0 }
  0xfe   : > { %v1282_v30 = vpop.eup %1281  ;;  %1301 = vrcp.f32 %v606_v25  ;;  %v611_v31 = vadd.f32 1.0, %v1280_v26  ;;  %v1233_v42 = vpop.f32.mrb[12].mxu1  ;;  %v1587_v25 = vadd.f32 %v1217_v36, %v1475_v18 }
  0xff   : > { %v1284_v37 = vpop.eup %1283  ;;  %1303 = vrcp.f32 %v622_v27  ;;  %v627_v38 = vadd.f32 1.0, %v1282_v30  ;;  %v1543_v43 = vpop.f32.mrb[13].mxu0 }
 0x100   : > { %v1286_v45 = vpop.eup %1285  ;;  %1305 = vrcp.f32 %v611_v31  ;;  %v609_v46 = vadd.f32 1.0, %v1284_v37  ;;  %v1551_v51 = vpop.f32.mrb[13].mxu1 }
 0x101   : > { %v1553_v54 = vpop.f32.mrb[14].mxu0  ;;  %v1288_v55 = vpop.eup %1287  ;;  %1307 = vrcp.f32 %v627_v38  ;;  %v625_v56 = vadd.f32 1.0, %v1286_v45  ;;  %v1005_v45 = vmul.f32 -1.442695, %v1587_v25 }
 0x102   : > { %v1561_v59 = vpop.f32.mrb[14].mxu1  ;;  %v1563_v60 = vpop.f32.mrb[15].mxu0  ;;  %1309 = vrcp.f32 %v609_v46  ;;  %v612_v62 = vadd.f32 1.0, %v1288_v55 }
 0x103   : > { %v1290_v61 = vpop.eup %1289  ;;  %v1571_v1 = vpop.f32.mrb[15].mxu1  ;;  %1311 = vrcp.f32 %v625_v56 }
 0x104   : > { %v1292_v2 = vpop.eup %1291  ;;  %1313 = vrcp.f32 %v612_v62  ;;  %v703_v19 = vmul.f32 %v1290_v61, %v1478_v20  ;;  %v1599_v20 = vadd.f32 %v1233_v42, %v1475_v18 }
 0x105   : > { %v1294_v4 = vpop.eup %1293  ;;  %1315 = vpow2.f32 %v1014_v32  ;;  %v719_v27 = vmul.f32 %v1292_v2, %v1481_v23 }
 0x106   : > { %v1296_v7 = vpop.eup %1295  ;;  %1317 = vpow2.f32 %v996_v40  ;;  %v701_v30 = vmul.f32 %v1294_v4, %v1484_v24  ;;  %v1016_v24 = vmul.f32 -1.442695, %v1582_v14 }
 0x107   : > { %v1298_v11 = vpop.eup %1297  ;;  %1319 = vpow2.f32 %v1012_v3  ;;  %v717_v36 = vmul.f32 %v1296_v7, %v1488_v28 }
 0x108   : > { %v1300_v17 = vpop.eup %1299  ;;  %v704_v22 = vmul.f32 %v1298_v11, %v1491_v29  ;;  %1321 = vpow2.f32 %v1001_v5 }
 0x109   : > { %v1302_v26 = vpop.eup %1301  ;;  %v720_v16 = vmul.f32 %v1300_v17, %v1496_v34  ;;  %1323 = vpow2.f32 %v1017_v6 }
 0x10a   : > { %v1304_v29 = vpop.eup %1303  ;;  %v1097_v31 = vpack.c.bf16 %v704_v22, %v703_v19  ;;  %v702_v23 = vmul.f32 %v1302_v26, %v1499_v35  ;;  %1325 = vpow2.f32 %v999_v8  ;;  %v1623_v22 = vadd.f32 %v1475_v18, %v1543_v43 }
 0x10b   : > { %v1306_v32 = vpop.eup %1305  ;;  %v1137_v37 = vpack.c.bf16 %v720_v16, %v719_v27  ;;  %v718_v38 = vmul.f32 %v1304_v29, %v1504_v39  ;;  %1327 = vpow2.f32 %v1015_v9  ;;  %v1021_v39 = vmul.f32 -1.442695, %v1599_v20 }
 0x10c   : > { %v1605_v34 = vpop.eup %1307  ;;  %1169 = vst [vmem:[%s1595_s25 + $0x8] sm:$0xff] %v1097_v31   ;;  %v1092_v40 = vpack.c.bf16 %v702_v23, %v701_v30  ;;  %1329 = vpow2.f32 %v1002_v10  ;;  %v707_v56 = vmul.f32 %v1306_v32, %v1510_v44  ;;  %v1627_v16 = vadd.f32 %v1475_v18, %v1551_v51 }
 0x10d   : > { %v1609_v42 = vpop.eup %1309  ;;  %1177 = vst [vmem:[%s1595_s25 + $0x48] sm:$0xff] %v1137_v37   ;;  %v1132_v35 = vpack.c.bf16 %v718_v38, %v717_v36  ;;  %1331 = vpow2.f32 %v1018_v12  ;;  %v1631_v31 = vadd.f32 %v1553_v54, %v1475_v18  ;;  %v1635_v43 = vadd.f32 %v1561_v59, %v1475_v18 }
 0x10e   : > { %v1613_v28 = vpop.eup %1311  ;;  %1093 = vst [vmem:[%s1595_s25] sm:$0xff] %v1092_v40   ;;  %1333 = vpow2.f32 %v1000_v13  ;;  %v1639_v36 = vadd.f32 %v1475_v18, %v1563_v60  ;;  %v1003_v37 = vmul.f32 -1.442695, %v1623_v22  ;;  %v1019_v54 = vmul.f32 -1.442695, %v1627_v16 }
 0x10f   : > { %v1314_v46 = vpop.eup %1313  ;;  %1176 = vst [vmem:[%s1595_s25 + $0x40] sm:$0xff] %v1132_v35   ;;  %1335 = vpow2.f32 %v1016_v24  ;;  %v1645_v40 = vadd.f32 %v1475_v18, %v1571_v1  ;;  %v723_v59 = vmul.f32 %v1605_v34, %v1513_v47  ;;  %v1006_v60 = vmul.f32 -1.442695, %v1631_v31 }
 0x110   : > { %v1316_v55 = vpop.eup %1315  ;;  %v708_v61 = vmul.f32 %v1314_v46, %v1523_v53  ;;  %1337 = vpow2.f32 %v1005_v45  ;;  %v1004_v18 = vmul.f32 -1.442695, %v1639_v36  ;;  %v721_v47 = vmul.f32 %v1613_v28, %v1520_v52 }
 0x111   : > { %v1318_v62 = vpop.eup %1317  ;;  %v628_v2 = vadd.f32 1.0, %v1316_v55  ;;  %1339 = vpow2.f32 %v1021_v39  ;;  %v705_v39 = vmul.f32 %v1609_v42, %v1516_v48  ;;  %v1022_v55 = vmul.f32 -1.442695, %v1635_v43 }
 0x112   : > { %v1320_v3 = vpop.eup %1319  ;;  %v1107_v4 = vpack.c.bf16 %v708_v61, %v707_v56  ;;  %v610_v5 = vadd.f32 1.0, %v1318_v62  ;;  %v1020_v48 = vmul.f32 -1.442695, %v1645_v40 }
 0x113   : > { %v1322_v6 = vpop.eup %1321  ;;  %1341 = vrcp.f32 %v628_v2  ;;  %v626_v7 = vadd.f32 1.0, %v1320_v3 }
 0x114   : > { %v1324_v8 = vpop.eup %1323  ;;  %1171 = vst [vmem:[%s1595_s25 + $0x18] sm:$0xff] %v1107_v4   ;;  %1343 = vrcp.f32 %v610_v5  ;;  %v615_v9 = vadd.f32 1.0, %v1322_v6 }
 0x115   : > { %v1326_v10 = vpop.eup %1325  ;;  %1345 = vrcp.f32 %v626_v7  ;;  %v631_v44 = vadd.f32 1.0, %v1324_v8 }
 0x116   : > { %v1328_v11 = vpop.eup %1327  ;;  %1347 = vrcp.f32 %v615_v9  ;;  %v613_v53 = vadd.f32 1.0, %v1326_v10 }
 0x117   : > { %v1330_v12 = vpop.eup %1329  ;;  %1349 = vrcp.f32 %v631_v44  ;;  %v629_v13 = vadd.f32 1.0, %v1328_v11 }
 0x118   : > { %v1332_v17 = vpop.eup %1331  ;;  %1351 = vrcp.f32 %v613_v53  ;;  %v616_v19 = vadd.f32 1.0, %v1330_v12 }
 0x119   : > { %v1334_v26 = vpop.eup %1333  ;;  %1353 = vrcp.f32 %v629_v13  ;;  %v632_v27 = vadd.f32 1.0, %v1332_v17 }
 0x11a   : > { %v1336_v29 = vpop.eup %1335  ;;  %1355 = vrcp.f32 %v616_v19  ;;  %v614_v30 = vadd.f32 1.0, %v1334_v26 }
 0x11b   : > { %v1338_v23 = vpop.eup %1337  ;;  %1357 = vrcp.f32 %v632_v27  ;;  %v630_v32 = vadd.f32 1.0, %v1336_v29 }
 0x11c   : > { %v1340_v51 = vpop.eup %1339  ;;  %1359 = vrcp.f32 %v614_v30  ;;  %v619_v10 = vadd.f32 1.0, %v1338_v23 }
 0x11d   : > { %v1342_v38 = vpop.eup %1341  ;;  %1361 = vrcp.f32 %v630_v32  ;;  %v635_v11 = vadd.f32 1.0, %v1340_v51 }
 0x11e   : > { %v1344_v24 = vpop.eup %1343  ;;  %v724_v35 = vmul.f32 %v1342_v38, %v1530_v15  ;;  %1363 = vpow2.f32 %v1003_v37 }
 0x11f   : > { %v1346_v45 = vpop.eup %1345  ;;  %v706_v46 = vmul.f32 %v1344_v24, %v1533_v21  ;;  %1365 = vpow2.f32 %v1019_v54 }
 0x120   : > { %v1348_v1 = vpop.eup %1347  ;;  %v1147_v15 = vpack.c.bf16 %v724_v35, %v723_v59  ;;  %v722_v34 = vmul.f32 %v1346_v45, %v1537_v33  ;;  %1367 = vpow2.f32 %v1006_v60 }
 0x121   : > { %v1350_v56 = vpop.eup %1349  ;;  %v1102_v61 = vpack.c.bf16 %v706_v46, %v705_v39  ;;  %1369 = vpow2.f32 %v1022_v55  ;;  %v711_v33 = vmul.f32 %v1348_v1, %v1541_v41 }
 0x122   : > { %v1352_v21 = vpop.eup %1351  ;;  %1179 = vst [vmem:[%s1595_s25 + $0x58] sm:$0xff] %v1147_v15   ;;  %v1142_v42 = vpack.c.bf16 %v722_v34, %v721_v47  ;;  %1371 = vpow2.f32 %v1004_v18  ;;  %v727_v4 = vmul.f32 %v1350_v56, %v1546_v49 }
 0x123   : > { %v1354_v62 = vpop.eup %1353  ;;  %1170 = vst [vmem:[%s1595_s25 + $0x10] sm:$0xff] %v1102_v61   ;;  %1373 = vpow2.f32 %v1020_v48  ;;  %v709_v7 = vmul.f32 %v1352_v21, %v1549_v50 }
 0x124   : > { %v1356_v2 = vpop.eup %1355  ;;  %1178 = vst [vmem:[%s1595_s25 + $0x50] sm:$0xff] %v1142_v42   ;;  %v725_v41 = vmul.f32 %v1354_v62, %v1556_v57  ;;  %1375 = vrcp.f32 %v619_v10 }
 0x125   : > { %v1358_v52 = vpop.eup %1357  ;;  %v712_v28 = vmul.f32 %v1356_v2, %v1559_v58  ;;  %1377 = vrcp.f32 %v635_v11 }
 0x126   : > { %v1360_v3 = vpop.eup %1359  ;;  %v728_v5 = vmul.f32 %v1358_v52, %v1566_v63 }
 0x127   : > { %v1362_v6 = vpop.eup %1361  ;;  %v1117_v8 = vpack.c.bf16 %v712_v28, %v711_v33  ;;  %v710_v9 = vmul.f32 %v1360_v3, %v1569_v0 }
 0x128   : > { %v1157_v44 = vpack.c.bf16 %v728_v5, %v727_v4  ;;  %v726_v58 = vmul.f32 %v1362_v6, %v1582_v14  ;;  %v1364_v49 = vpop.eup %1363 }
 0x129   : > { %1173 = vst [vmem:[%s1595_s25 + $0x28] sm:$0xff] %v1117_v8   ;;  %v1112_v53 = vpack.c.bf16 %v710_v9, %v709_v7  ;;  %v1366_v12 = vpop.eup %1365  ;;  %v617_v50 = vadd.f32 1.0, %v1364_v49 }
 0x12a   : > { %1181 = vst [vmem:[%s1595_s25 + $0x68] sm:$0xff] %v1157_v44   ;;  %v1152_v63 = vpack.c.bf16 %v726_v58, %v725_v41  ;;  %v1368_v13 = vpop.eup %1367  ;;  %v633_v0 = vadd.f32 1.0, %v1366_v12 }
 0x12b   : > { %1172 = vst [vmem:[%s1595_s25 + $0x20] sm:$0xff] %v1112_v53   ;;  %v1370_v17 = vpop.eup %1369  ;;  %1379 = vrcp.f32 %v617_v50  ;;  %v620_v57 = vadd.f32 1.0, %v1368_v13 }
 0x12c   : > { %1180 = vst [vmem:[%s1595_s25 + $0x60] sm:$0xff] %v1152_v63   ;;  %v1372_v19 = vpop.eup %1371  ;;  %1381 = vrcp.f32 %v633_v0  ;;  %v636_v14 = vadd.f32 1.0, %v1370_v17 }
 0x12d   : > { %v1374_v26 = vpop.eup %1373  ;;  %1383 = vrcp.f32 %v620_v57  ;;  %v618_v27 = vadd.f32 1.0, %v1372_v19 }
 0x12e   : > { %1385 = vrcp.f32 %v636_v14  ;;  %v634_v29 = vadd.f32 1.0, %v1374_v26  ;;  %v1376_v30 = vpop.eup %1375 }
 0x12f   : > { %1387 = vrcp.f32 %v618_v27  ;;  %v1378_v23 = vpop.eup %1377  ;;  %v715_v54 = vmul.f32 %v1376_v30, %v1587_v25 }
 0x130   : > { %1389 = vrcp.f32 %v634_v29  ;;  %v731_v35 = vmul.f32 %v1378_v23, %v1599_v20 }
 0x135   : > { %v1380_v32 = vpop.eup %1379 }
 0x136   : > { %v1382_v51 = vpop.eup %1381  ;;  %v713_v39 = vmul.f32 %v1380_v32, %v1623_v22 }
 0x137   : > { %v1384_v37 = vpop.eup %1383  ;;  %v729_v18 = vmul.f32 %v1382_v51, %v1627_v16 }
 0x138   : > { %v1386_v38 = vpop.eup %1385  ;;  %v716_v24 = vmul.f32 %v1384_v37, %v1631_v31 }
 0x139   : > { %v1388_v59 = vpop.eup %1387  ;;  %v732_v60 = vmul.f32 %v1386_v38, %v1635_v43 }
 0x13a   : > { %v1390_v45 = vpop.eup %1389  ;;  %v1127_v46 = vpack.c.bf16 %v716_v24, %v715_v54  ;;  %v714_v55 = vmul.f32 %v1388_v59, %v1639_v36 }
 0x13b   : > { %v1167_v1 = vpack.c.bf16 %v732_v60, %v731_v35  ;;  %v730_v25 = vmul.f32 %v1390_v45, %v1645_v40 }
 0x13c   : > { %1175 = vst [vmem:[%s1595_s25 + $0x38] sm:$0xff] %v1127_v46   ;;  %v1122_v47 = vpack.c.bf16 %v714_v55, %v713_v39 }
 0x13d   : > { %1183 = vst [vmem:[%s1595_s25 + $0x78] sm:$0xff] %v1167_v1   ;;  %v1162_v31 = vpack.c.bf16 %v730_v25, %v729_v18 }
 0x13e   : > { %1174 = vst [vmem:[%s1595_s25 + $0x30] sm:$0xff] %v1122_v47  }
 0x13f   : > { %1182 = vst [vmem:[%s1595_s25 + $0x70] sm:$0xff] %v1162_v31  }
 0x140 PF: > { %s13_s12 = sadd.s32 1, %s1397_s12  }
 0x141   : > { %p10_p4 = scmp.ge.s32.totalorder %s13_s12, 4  }
 0x143   :  { %12 = sbr.rel (!%p10_p4) target bundleno = 1 (0x1), region = 62 }

// kernel: c2f_forward.7
= control target key start
LH: loop header
LB: loop body
LE: loop exit
PB: predicated region body
PF: predicated region fallthrough
CT: control target
= control target key end

     0   :  { %s2435_s18 = smov 0   ;;  %s2855_s0 = inlined_call_operand.vmem [shape: bf16[512,128], index: 0, kind: input, shape index: {}]   ;;  %s2856_s1 = inlined_call_operand.vmem [shape: bf16[512,128], index: 1, kind: input, shape index: {}]   ;;  %s2857_s2 = inlined_call_operand.vmem [shape: bf16[512,128], index: 2, kind: input, shape index: {}]   ;;  %s2858_s3 = inlined_call_operand.vmem [shape: bf16[3,128,128], index: 3, kind: input, shape index: {}]   ;;  %s2859_s4 = inlined_call_operand.vmem [shape: f32[1,128], index: 4, kind: input, shape index: {}]   ;;  %s2860_s5 = inlined_call_operand.vmem [shape: f32[512,128], index: 5, kind: output, shape index: {}]  }
   0x1 LB: > { %s1741_s19 = sadd.s32 4294967295, %s2403_s18   ;;  %p1745_p0 = scmp.ge.s32.totalorder %s2403_s18, 1  ;;  %s2403_s18 = sphi %s2435_s18, %s15_s18  }
   0x2   : > { %p210_p1 = scmp.lt.s32.totalorder %s2403_s18, 3 }
   0x4   : > { %p211_p2 = pnand %p1745_p0, %p210_p1 }
   0x5   : > { %v2197_v0 = vld [vmem:[%s2858_s3 + $0x40] sm:$0xff] (!%p211_p2)   ;;  %s1746_s22 = sshll.u32 (!%p211_p2), %s1741_s19, 5  ;;  %v2199_v2 = vld [vmem:[%s2858_s3 + $0x48] sm:$0xff] (!%p211_p2)   ;;  %v2201_v4 = vld [vmem:[%s2858_s3 + $0x50] sm:$0xff] (!%p211_p2)  }
   0x6   : > { %214 = sbr.rel (%p211_p2) target bundleno = 380 (0x17c), region = 40  ;;  %v2449_v1 = vld [vmem:[%s2858_s3] sm:$0xff] (!%p211_p2)   ;;  %1965 = vmatprep.subr.bf16.mxu1 (!%p211_p2), %v2197_v0  ;;  %p249_p3 = scmp.lt.s32.totalorder (!%p211_p2), %s1746_s22, 63  ;;  %v2458_v3 = vld [vmem:[%s2858_s3 + $0x8] sm:$0xff] (!%p211_p2)   ;;  %v2468_v5 = vld [vmem:[%s2858_s3 + $0x10] sm:$0xff] (!%p211_p2)  }
   0x7   : > { %2013 = vmatprep.subr.bf16.mxu0 (!%p211_p2), %v2449_v1  ;;  %1966 = vmatpush3.bf16.msra.mxu1 (!%p211_p2), %v2197_v0  ;;  %v2203_v6 = vld [vmem:[%s2858_s3 + $0x58] sm:$0xff] (!%p211_p2)   ;;  %v2205_v8 = vld [vmem:[%s2858_s3 + $0x60] sm:$0xff] (!%p211_p2)   ;;  %v2207_v10 = vld [vmem:[%s2858_s3 + $0x68] sm:$0xff] (!%p211_p2)  }
   0x8   : > { %2014 = vmatpush3.bf16.msra.mxu0 (!%p211_p2), %v2449_v1  ;;  %1967 = vmatprep.subr.bf16.mxu1 (!%p211_p2), %v2199_v2  ;;  %v2480_v7 = vld [vmem:[%s2858_s3 + $0x18] sm:$0xff] (!%p211_p2)   ;;  %v2493_v9 = vld [vmem:[%s2858_s3 + $0x20] sm:$0xff] (!%p211_p2)   ;;  %v2513_v11 = vld [vmem:[%s2858_s3 + $0x28] sm:$0xff] (!%p211_p2)  }
   0x9   : > { %2015 = vmatprep.subr.bf16.mxu0 (!%p211_p2), %v2458_v3  ;;  %v2209_v14 = vld [vmem:[%s2858_s3 + $0x70] sm:$0xff] (!%p211_p2)   ;;  %v2211_v16 = vld [vmem:[%s2858_s3 + $0x78] sm:$0xff] (!%p211_p2)   ;;  %v2217_v19 = vld [vmem:[%s2858_s3 + $0x80] sm:$0xff] (!%p211_p2)  }
   0xa   : > { %v2527_v15 = vld [vmem:[%s2858_s3 + $0x30] sm:$0xff] (!%p211_p2)   ;;  %v2537_v17 = vld [vmem:[%s2858_s3 + $0x38] sm:$0xff] (!%p211_p2)   ;;  %v2218_v21 = vld [vmem:[%s2858_s3 + $0x88] sm:$0xff] (!%p211_p2)  }
   0xb   : > { %1968 = vmatpush3.bf16.msra.mxu1 (!%p211_p2), %v2199_v2  ;;  %v2223_v25 = vld [vmem:[%s2858_s3 + $0x90] sm:$0xff] (!%p211_p2)   ;;  %v2224_v29 = vld [vmem:[%s2858_s3 + $0x98] sm:$0xff] (!%p211_p2)   ;;  %v2229_v31 = vld [vmem:[%s2858_s3 + $0xa0] sm:$0xff] (!%p211_p2)  }
   0xc   : > { %2016 = vmatpush3.bf16.msra.mxu0 (!%p211_p2), %v2458_v3  ;;  %1969 = vmatprep.subr.bf16.mxu1 (!%p211_p2), %v2201_v4  ;;  %v2230_v35 = vld [vmem:[%s2858_s3 + $0xa8] sm:$0xff] (!%p211_p2)   ;;  %v2235_v37 = vld [vmem:[%s2858_s3 + $0xb0] sm:$0xff] (!%p211_p2)   ;;  %v2236_v41 = vld [vmem:[%s2858_s3 + $0xb8] sm:$0xff] (!%p211_p2)  }
   0xd   : > { %s2862_s22 = smov (!%p249_p3, %s1746_s22), 63  ;;  %2017 = vmatprep.subr.bf16.mxu0 %v2468_v5 }
   0xe   : > { %s2483_s12 = sshll.u32 %s2862_s22, 2  ;;  %s1753_s10 = sshll.u32 %s2862_s22, 3 }
   0xf   : > { %1970 = vmatpush3.bf16.msra.mxu1 %v2201_v4  ;;  %s2499_s20 = scalar_lea.vmem %s2856_s1, %s2483_s12  ;;  %s2508_s26 = scalar_lea.vmem %s2855_s0, %s2483_s12 }
  0x10   : > { %2018 = vmatpush3.bf16.msra.mxu0 %v2468_v5  ;;  %1971 = vmatprep.subr.bf16.mxu1 %v2203_v6  ;;  %v2213_v12 = vld [vmem:[%s2499_s20] sm:$0xff]   ;;  %v2215_v18 = vld [vmem:[%s2499_s20 + $0x8] sm:$0xff]   ;;  %v2219_v22 = vld [vmem:[%s2499_s20 + $0x10] sm:$0xff]   ;;  %s2568_s24 = scalar_lea.vmem %s2857_s2, %s2483_s12  ;;  %s2716_s13 = scalar_lea.vmem %s2860_s5, %s1753_s10 }
  0x11   : > { %2019 = vmatprep.subr.bf16.mxu0 %v2480_v7  ;;  %v2214_v13 = vld [vmem:[%s2508_s26] sm:$0xff]   ;;  %1981 = vmatprep.mubr.bf16.mxu1 %v2213_v12  ;;  %v2216_v20 = vld [vmem:[%s2508_s26 + $0x8] sm:$0xff]   ;;  %v2220_v23 = vld [vmem:[%s2508_s26 + $0x10] sm:$0xff]  }
  0x12   : > { %2029 = vmatprep.mubr.bf16.mxu0 %v2214_v13  ;;  %v2221_v24 = vld [vmem:[%s2499_s20 + $0x18] sm:$0xff]   ;;  %v2225_v27 = vld [vmem:[%s2499_s20 + $0x20] sm:$0xff]   ;;  %v2227_v30 = vld [vmem:[%s2499_s20 + $0x28] sm:$0xff]  }
  0x13   : > { %1972 = vmatpush3.bf16.msra.mxu1 %v2203_v6  ;;  %v2222_v26 = vld [vmem:[%s2508_s26 + $0x18] sm:$0xff]   ;;  %v2226_v28 = vld [vmem:[%s2508_s26 + $0x20] sm:$0xff]   ;;  %v2228_v32 = vld [vmem:[%s2508_s26 + $0x28] sm:$0xff]  }
  0x14   : > { %2020 = vmatpush3.bf16.msra.mxu0 %v2480_v7  ;;  %1973 = vmatprep.subr.bf16.mxu1 %v2205_v8  ;;  %v2231_v33 = vld [vmem:[%s2499_s20 + $0x30] sm:$0xff]   ;;  %v2233_v36 = vld [vmem:[%s2499_s20 + $0x38] sm:$0xff]   ;;  %v2237_v39 = vld [vmem:[%s2499_s20 + $0x40] sm:$0xff]  }
  0x15   : > { %2021 = vmatprep.subr.bf16.mxu0 %v2493_v9  ;;  %v2232_v34 = vld [vmem:[%s2508_s26 + $0x30] sm:$0xff]   ;;  %v2234_v38 = vld [vmem:[%s2508_s26 + $0x38] sm:$0xff]   ;;  %v2238_v40 = vld [vmem:[%s2568_s24] sm:$0xff]  }
  0x16   : > { %v2239_v42 = vld [vmem:[%s2499_s20 + $0x48] sm:$0xff]   ;;  %v2241_v44 = vld [vmem:[%s2499_s20 + $0x50] sm:$0xff]   ;;  %v2243_v46 = vld [vmem:[%s2499_s20 + $0x58] sm:$0xff]  }
  0x17   : > { %1974 = vmatpush3.bf16.msra.mxu1 %v2205_v8  ;;  %v2240_v43 = vld [vmem:[%s2568_s24 + $0x8] sm:$0xff]   ;;  %v2242_v45 = vld [vmem:[%s2568_s24 + $0x10] sm:$0xff]   ;;  %v2244_v47 = vld [vmem:[%s2568_s24 + $0x18] sm:$0xff]  }
  0x18   : > { %2022 = vmatpush3.bf16.msra.mxu0 %v2493_v9  ;;  %1975 = vmatprep.subr.bf16.mxu1 %v2207_v10  ;;  %v2245_v48 = vld [vmem:[%s2499_s20 + $0x60] sm:$0xff]   ;;  %v2247_v50 = vld [vmem:[%s2499_s20 + $0x68] sm:$0xff]   ;;  %v2249_v52 = vld [vmem:[%s2499_s20 + $0x70] sm:$0xff]  }
  0x19   : > { %2023 = vmatprep.subr.bf16.mxu0 %v2513_v11  ;;  %v2246_v49 = vld [vmem:[%s2568_s24 + $0x20] sm:$0xff]   ;;  %v2248_v51 = vld [vmem:[%s2568_s24 + $0x28] sm:$0xff]   ;;  %v2250_v53 = vld [vmem:[%s2568_s24 + $0x30] sm:$0xff]  }
  0x1a   : > { %v2251_v54 = vld [vmem:[%s2499_s20 + $0x78] sm:$0xff]   ;;  %v2253_v56 = vld [vmem:[%s2508_s26 + $0x40] sm:$0xff]   ;;  %v2255_v58 = vld [vmem:[%s2508_s26 + $0x48] sm:$0xff]  }
  0x1b   : > { %1976 = vmatpush3.bf16.msra.mxu1 %v2207_v10  ;;  %v2252_v55 = vld [vmem:[%s2568_s24 + $0x38] sm:$0xff]   ;;  %v2254_v57 = vld [vmem:[%s2568_s24 + $0x40] sm:$0xff]   ;;  %v2256_v59 = vld [vmem:[%s2568_s24 + $0x48] sm:$0xff]  }
  0x1c   : > { %2024 = vmatpush3.bf16.msra.mxu0 %v2513_v11  ;;  %1977 = vmatprep.subr.bf16.mxu1 %v2209_v14  ;;  %v2257_v60 = vld [vmem:[%s2508_s26 + $0x50] sm:$0xff]   ;;  %v2259_v62 = vld [vmem:[%s2508_s26 + $0x58] sm:$0xff]   ;;  %v2261_v0 = vld [vmem:[%s2508_s26 + $0x60] sm:$0xff]  }
  0x1d   : > { %2025 = vmatprep.subr.bf16.mxu0 %v2527_v15  ;;  %v2258_v61 = vld [vmem:[%s2568_s24 + $0x50] sm:$0xff]   ;;  %v2260_v63 = vld [vmem:[%s2568_s24 + $0x58] sm:$0xff]   ;;  %v2263_v2 = vld [vmem:[%s2508_s26 + $0x68] sm:$0xff]  }
  0x1e   : > { %v2265_v4 = vld [vmem:[%s2508_s26 + $0x70] sm:$0xff]   ;;  %v2267_v6 = vld [vmem:[%s2508_s26 + $0x78] sm:$0xff]  }
  0x1f   : > { %1978 = vmatpush3.bf16.msra.mxu1 %v2209_v14 }
  0x20   : > { %2026 = vmatpush3.bf16.msra.mxu0 %v2527_v15  ;;  %1979 = vmatprep.subr.bf16.mxu1 %v2211_v16 }
  0x21   : > { %2027 = vmatprep.subr.bf16.mxu0 %v2537_v17 }
  0x23   : > { %1980 = vmatpush3.bf16.msra.mxu1 %v2211_v16 }
  0x24   : > { %2028 = vmatpush3.bf16.msra.mxu0 %v2537_v17  ;;  %2109 = vmatprep.subr.bf16.mxu1 %v2449_v1 }
  0x25   : > { %2061 = vmatprep.subr.bf16.mxu0 %v2217_v19 }
  0x26   : > { %1982 = vmatmul.mubr.bf16.vlgmr.msra.gmra.mrb[0].mxu1 %v2215_v18 }
  0x27   : > { %2030 = vmatmul.mubr.bf16.vlgmr.msra.gmra.mrb[0].mxu0 %v2216_v20  ;;  %2117 = vmatpush3.bf16.msra.mxu1 %v2449_v1  ;;  %v2262_v1 = vld [vmem:[%s2568_s24 + $0x60] sm:$0xff]  }
  0x28   : > { %2062 = vmatpush3.bf16.msra.mxu0 %v2217_v19  ;;  %1985 = vmatprep.mubr.bf16.mxu1 %v2219_v22 }
  0x29   : > { %2063 = vmatprep.subr.bf16.mxu0 %v2218_v21  ;;  %2033 = vmatprep.mubr.bf16.mxu0 %v2220_v23 }
  0x2a   : > { %2110 = vmatprep.subr.bf16.mxu1 %v2458_v3 }
  0x2b   : > { %2118 = vmatpush3.bf16.msra.mxu1 %v2458_v3  ;;  %v2264_v3 = vld [vmem:[%s2568_s24 + $0x68] sm:$0xff]  }
  0x2c   : > { %2064 = vmatpush3.bf16.msra.mxu0 %v2218_v21  ;;  %2111 = vmatprep.subr.bf16.mxu1 %v2468_v5 }
  0x2d   : > { %2065 = vmatprep.subr.bf16.mxu0 %v2223_v25 }
  0x2e   : > { %1986 = vmatmul.mubr.bf16.gmra.mrb[4].mxu1 %v2221_v24 }
  0x2f   : > { %2034 = vmatmul.mubr.bf16.gmra.mrb[4].mxu0 %v2222_v26  ;;  %1989 = vmatprep.mubr.bf16.mxu1 %v2225_v27 }
  0x30   : > { %2066 = vmatpush3.bf16.msra.mxu0 %v2223_v25  ;;  %2037 = vmatprep.mubr.bf16.mxu0 %v2226_v28  ;;  %v2647_v25 = vld [vmem:[%s2859_s4] ss:$0 sm:$0xff] }
  0x31   : > { %2067 = vmatprep.subr.bf16.mxu0 %v2224_v29  ;;  %2119 = vmatpush3.bf16.msra.mxu1 %v2468_v5  ;;  %v2266_v5 = vld [vmem:[%s2568_s24 + $0x70] sm:$0xff]  }
  0x32   : > { %2112 = vmatprep.subr.bf16.mxu1 %v2480_v7 }
  0x34   : > { %2068 = vmatpush3.bf16.msra.mxu0 %v2224_v29 }
  0x35   : > { %2069 = vmatprep.subr.bf16.mxu0 %v2229_v31  ;;  %2120 = vmatpush3.bf16.msra.mxu1 %v2480_v7  ;;  %v2268_v7 = vld [vmem:[%s2568_s24 + $0x78] sm:$0xff]  }
  0x36   : > { %1990 = vmatmul.mubr.bf16.gmra.mrb[8].mxu1 %v2227_v30  ;;  %2113 = vmatprep.subr.bf16.mxu1 %v2493_v9 }
  0x37   : > { %2038 = vmatmul.mubr.bf16.gmra.mrb[8].mxu0 %v2228_v32  ;;  %1993 = vmatprep.mubr.bf16.mxu1 %v2231_v33 }
  0x38   : > { %2070 = vmatpush3.bf16.msra.mxu0 %v2229_v31  ;;  %2041 = vmatprep.mubr.bf16.mxu0 %v2232_v34 }
  0x39   : > { %2071 = vmatprep.subr.bf16.mxu0 %v2230_v35  ;;  %2121 = vmatpush3.bf16.msra.mxu1 %v2493_v9 }
  0x3a   : > { %2114 = vmatprep.subr.bf16.mxu1 %v2513_v11 }
  0x3c   : > { %2072 = vmatpush3.bf16.msra.mxu0 %v2230_v35 }
  0x3d   : > { %2073 = vmatprep.subr.bf16.mxu0 %v2235_v37  ;;  %2122 = vmatpush3.bf16.msra.mxu1 %v2513_v11 }
  0x3e   : > { %1994 = vmatmul.mubr.bf16.gmra.mrb[12].mxu1 %v2233_v36  ;;  %2115 = vmatprep.subr.bf16.mxu1 %v2527_v15 }
  0x3f   : > { %2042 = vmatmul.mubr.bf16.gmra.mrb[12].mxu0 %v2234_v38  ;;  %1997 = vmatprep.mubr.bf16.mxu1 %v2237_v39 }
  0x40   : > { %2074 = vmatpush3.bf16.msra.mxu0 %v2235_v37  ;;  %2077 = vmatprep.mubr.bf16.mxu0 %v2238_v40 }
  0x41   : > { %2075 = vmatprep.subr.bf16.mxu0 %v2236_v41  ;;  %2123 = vmatpush3.bf16.msra.mxu1 %v2527_v15 }
  0x42   : > { %2116 = vmatprep.subr.bf16.mxu1 %v2537_v17 }
  0x44   : > { %2076 = vmatpush3.bf16.msra.mxu0 %v2236_v41 }
  0x45   : > { %2124 = vmatpush3.bf16.msra.mxu1 %v2537_v17 }
  0x46   : > { %1998 = vmatmul.mubr.bf16.gmra.mrb[16].mxu1 %v2239_v42 }
  0x47   : > { %2078 = vmatmul.mubr.bf16.vlgmr.msra.gmra.mrb[0].mxu0 %v2240_v43  ;;  %2001 = vmatprep.mubr.bf16.mxu1 %v2241_v44 }
  0x48   : > { %2081 = vmatprep.mubr.bf16.mxu0 %v2242_v45 }
  0x4e   : > { %2002 = vmatmul.mubr.bf16.gmra.mrb[20].mxu1 %v2243_v46 }
  0x4f   : > { %2082 = vmatmul.mubr.bf16.gmra.mrb[4].mxu0 %v2244_v47  ;;  %2005 = vmatprep.mubr.bf16.mxu1 %v2245_v48 }
  0x50   : > { %2085 = vmatprep.mubr.bf16.mxu0 %v2246_v49 }
  0x56   : > { %2006 = vmatmul.mubr.bf16.gmra.mrb[24].mxu1 %v2247_v50 }
  0x57   : > { %2086 = vmatmul.mubr.bf16.gmra.mrb[8].mxu0 %v2248_v51  ;;  %2009 = vmatprep.mubr.bf16.mxu1 %v2249_v52 }
  0x58   : > { %2089 = vmatprep.mubr.bf16.mxu0 %v2250_v53 }
  0x5e   : > { %2010 = vmatmul.mubr.bf16.gmra.mrb[28].mxu1 %v2251_v54 }
  0x5f   : > { %2090 = vmatmul.mubr.bf16.gmra.mrb[12].mxu0 %v2252_v55  ;;  %2045 = vmatprep.mubr.bf16.mxu1 %v2253_v56 }
  0x60   : > { %2093 = vmatprep.mubr.bf16.mxu0 %v2254_v57 }
  0x66   : > { %2046 = vmatmul.mubr.bf16.vlgmr.msra.gmra.mrb[16].mxu1 %v2255_v58 }
  0x67   : > { %2094 = vmatmul.mubr.bf16.gmra.mrb[16].mxu0 %v2256_v59  ;;  %2049 = vmatprep.mubr.bf16.mxu1 %v2257_v60 }
  0x68   : > { %2097 = vmatprep.mubr.bf16.mxu0 %v2258_v61 }
  0x6e   : > { %2050 = vmatmul.mubr.bf16.gmra.mrb[20].mxu1 %v2259_v62 }
  0x6f   : > { %2098 = vmatmul.mubr.bf16.gmra.mrb[20].mxu0 %v2260_v63  ;;  %2053 = vmatprep.mubr.bf16.mxu1 %v2261_v0 }
  0x70   : > { %2101 = vmatprep.mubr.bf16.mxu0 %v2262_v1 }
  0x76   : > { %2054 = vmatmul.mubr.bf16.gmra.mrb[24].mxu1 %v2263_v2 }
  0x77   : > { %2102 = vmatmul.mubr.bf16.gmra.mrb[24].mxu0 %v2264_v3  ;;  %2057 = vmatprep.mubr.bf16.mxu1 %v2265_v4 }
  0x78   : > { %2105 = vmatprep.mubr.bf16.mxu0 %v2266_v5 }
  0x7e   : > { %2058 = vmatmul.mubr.bf16.gmra.mrb[28].mxu1 %v2267_v6 }
  0x7f   : > { %2106 = vmatmul.mubr.bf16.gmra.mrb[28].mxu0 %v2268_v7 }
  0xf9   : > { %v1983_v8 = vpop.f32.mrb[0].mxu1 }
  0xfa   : > { %v548_v9 = vpop.f32.mrb[1].mxu1 }
  0xfb   : > { %v1984_v10 = vpop.f32.mrb[2].mxu1 }
  0xfc   : > { %v551_v11 = vpop.f32.mrb[3].mxu1 }
 0x101   : > { %v1987_v12 = vpop.f32.mrb[4].mxu1 }
 0x102   : > { %v564_v13 = vpop.f32.mrb[5].mxu1 }
 0x103   : > { %v1988_v14 = vpop.f32.mrb[6].mxu1 }
 0x104   : > { %v567_v15 = vpop.f32.mrb[7].mxu1 }
 0x109   : > { %v1991_v16 = vpop.f32.mrb[8].mxu1 }
 0x10a   : > { %v580_v17 = vpop.f32.mrb[9].mxu1 }
 0x10b   : > { %v1992_v18 = vpop.f32.mrb[10].mxu1 }
 0x10c   : > { %v2634_v19 = vpop.f32.mrb[11].mxu1 }
 0x111   : > { %v2636_v20 = vpop.f32.mrb[12].mxu1 }
 0x112   : > { %v2638_v21 = vpop.f32.mrb[13].mxu1 }
 0x113   : > { %v2640_v22 = vpop.f32.mrb[14].mxu1 }
 0x114   : > { %v2642_v23 = vpop.f32.mrb[15].mxu1 }
 0x11a   : > { %v2079_v24 = vpop.f32.mrb[0].mxu0 }
 0x11b   : > { %v2125_v26 = vadd.f32 %v2079_v24, %v1983_v8  ;;  %v1207_v27 = vpop.f32.mrb[1].mxu0 }
 0x11c   : > { %v2126_v28 = vadd.f32 %v1207_v27, %v548_v9  ;;  %v2080_v29 = vpop.f32.mrb[2].mxu0 }
 0x11d   : > { %v2650_v30 = vadd.f32 %v2125_v26, %v2647_v25  ;;  %v2127_v31 = vadd.f32 %v2080_v29, %v1984_v10  ;;  %v1210_v32 = vpop.f32.mrb[3].mxu0 }
 0x11e   : > { %v2653_v33 = vadd.f32 %v2126_v28, %v2647_v25  ;;  %v2128_v34 = vadd.f32 %v1210_v32, %v551_v11 }
 0x11f   : > { %v1861_v35 = vmul.f32 -1.442695, %v2650_v30  ;;  %v2657_v36 = vadd.f32 %v2127_v31, %v2647_v25 }
 0x120   : > { %v1859_v37 = vmul.f32 -1.442695, %v2653_v33  ;;  %v2661_v38 = vadd.f32 %v2128_v34, %v2647_v25 }
 0x121   : > { %2269 = vpow2.f32 %v1861_v35  ;;  %v1862_v39 = vmul.f32 -1.442695, %v2657_v36 }
 0x122   : > { %2271 = vpow2.f32 %v1859_v37  ;;  %v1860_v40 = vmul.f32 -1.442695, %v2661_v38  ;;  %v2083_v41 = vpop.f32.mrb[4].mxu0 }
 0x123   : > { %2273 = vpow2.f32 %v1862_v39  ;;  %v2129_v42 = vadd.f32 %v2083_v41, %v1987_v12  ;;  %v1223_v43 = vpop.f32.mrb[5].mxu0 }
 0x124   : > { %2275 = vpow2.f32 %v1860_v40  ;;  %v2130_v44 = vadd.f32 %v1223_v43, %v564_v13  ;;  %v2084_v45 = vpop.f32.mrb[6].mxu0 }
 0x125   : > { %v2666_v46 = vadd.f32 %v2129_v42, %v2647_v25  ;;  %v2131_v47 = vadd.f32 %v2084_v45, %v1988_v14  ;;  %v1226_v48 = vpop.f32.mrb[7].mxu0 }
 0x126   : > { %v2669_v49 = vadd.f32 %v2130_v44, %v2647_v25  ;;  %v2132_v50 = vadd.f32 %v1226_v48, %v567_v15 }
 0x127   : > { %v1865_v51 = vmul.f32 -1.442695, %v2666_v46  ;;  %v2673_v52 = vadd.f32 %v2131_v47, %v2647_v25 }
 0x128   : > { %v1863_v53 = vmul.f32 -1.442695, %v2669_v49  ;;  %v2677_v54 = vadd.f32 %v2132_v50, %v2647_v25 }
 0x129   : > { %2277 = vpow2.f32 %v1865_v51  ;;  %v1866_v55 = vmul.f32 -1.442695, %v2673_v52 }
 0x12a   : > { %2279 = vpow2.f32 %v1863_v53  ;;  %v1864_v56 = vmul.f32 -1.442695, %v2677_v54  ;;  %v2087_v57 = vpop.f32.mrb[8].mxu0 }
 0x12b   : > { %v2270_v58 = vpop.eup %2269  ;;  %2281 = vpow2.f32 %v1866_v55  ;;  %v2133_v59 = vadd.f32 %v2087_v57, %v1991_v16  ;;  %v1239_v60 = vpop.f32.mrb[9].mxu0 }
 0x12c   : > { %v2272_v61 = vpop.eup %2271  ;;  %v1503_v62 = vadd.f32 1.0, %v2270_v58  ;;  %2283 = vpow2.f32 %v1864_v56  ;;  %v2134_v63 = vadd.f32 %v1239_v60, %v580_v17  ;;  %v2088_v0 = vpop.f32.mrb[10].mxu0 }
 0x12d   : > { %v2274_v1 = vpop.eup %2273  ;;  %v1501_v2 = vadd.f32 1.0, %v2272_v61  ;;  %v2682_v3 = vadd.f32 %v2133_v59, %v2647_v25  ;;  %v2135_v4 = vadd.f32 %v2088_v0, %v1992_v18  ;;  %v1242_v5 = vpop.f32.mrb[11].mxu0 }
 0x12e   : > { %v2276_v6 = vpop.eup %2275  ;;  %2285 = vrcp.f32 %v1503_v62  ;;  %v1504_v7 = vadd.f32 1.0, %v2274_v1  ;;  %v2685_v8 = vadd.f32 %v2134_v63, %v2647_v25  ;;  %v2136_v9 = vadd.f32 %v1242_v5, %v2634_v19 }
 0x12f   : > { %2287 = vrcp.f32 %v1501_v2  ;;  %v1502_v10 = vadd.f32 1.0, %v2276_v6  ;;  %v1869_v11 = vmul.f32 -1.442695, %v2682_v3  ;;  %v2690_v12 = vadd.f32 %v2135_v4, %v2647_v25 }
 0x130   : > { %2289 = vrcp.f32 %v1504_v7  ;;  %v1867_v13 = vmul.f32 -1.442695, %v2685_v8  ;;  %v2694_v14 = vadd.f32 %v2136_v9, %v2647_v25 }
 0x131   : > { %2291 = vrcp.f32 %v1502_v10  ;;  %v1870_v15 = vmul.f32 -1.442695, %v2690_v12 }
 0x132   : > { %2293 = vpow2.f32 %v1869_v11  ;;  %v1868_v16 = vmul.f32 -1.442695, %v2694_v14  ;;  %v2091_v17 = vpop.f32.mrb[12].mxu0 }
 0x133   : > { %v2278_v18 = vpop.eup %2277  ;;  %2295 = vpow2.f32 %v1867_v13  ;;  %v2137_v19 = vadd.f32 %v2091_v17, %v2636_v20  ;;  %v1255_v24 = vpop.f32.mrb[13].mxu0 }
 0x134   : > { %v2280_v26 = vpop.eup %2279  ;;  %v1507_v27 = vadd.f32 1.0, %v2278_v18  ;;  %2297 = vpow2.f32 %v1870_v15  ;;  %v2138_v28 = vadd.f32 %v1255_v24, %v2638_v21  ;;  %v2092_v29 = vpop.f32.mrb[14].mxu0 }
 0x135   : > { %v2282_v31 = vpop.eup %2281  ;;  %v1505_v32 = vadd.f32 1.0, %v2280_v26  ;;  %2299 = vpow2.f32 %v1868_v16  ;;  %v2702_v34 = vadd.f32 %v2137_v19, %v2647_v25  ;;  %v2139_v35 = vadd.f32 %v2092_v29, %v2640_v22  ;;  %v1258_v37 = vpop.f32.mrb[15].mxu0 }
 0x136   : > { %v2284_v39 = vpop.eup %2283  ;;  %2301 = vrcp.f32 %v1507_v27  ;;  %v1508_v20 = vadd.f32 1.0, %v2282_v31  ;;  %v2706_v40 = vadd.f32 %v2138_v28, %v2647_v25  ;;  %v2140_v41 = vadd.f32 %v1258_v37, %v2642_v23 }
 0x137   : > { %2303 = vrcp.f32 %v1505_v32  ;;  %v1506_v21 = vadd.f32 1.0, %v2284_v39  ;;  %v1873_v42 = vmul.f32 -1.442695, %v2702_v34  ;;  %v2711_v43 = vadd.f32 %v2139_v35, %v2647_v25 }
 0x138   : > { %v2286_v44 = vpop.eup %2285  ;;  %2305 = vrcp.f32 %v1508_v20  ;;  %v1871_v22 = vmul.f32 -1.442695, %v2706_v40  ;;  %v2720_v45 = vadd.f32 %v2140_v41, %v2647_v25 }
 0x139   : > { %v2288_v23 = vpop.eup %2287  ;;  %v1599_v47 = vmul.f32 %v2286_v44, %v2650_v30  ;;  %2307 = vrcp.f32 %v1506_v21  ;;  %v1874_v48 = vmul.f32 -1.442695, %v2711_v43  ;;  %v2047_v50 = vpop.f32.mrb[16].mxu1 }
 0x13a   : > { %v2290_v51 = vpop.eup %2289  ;;  %v1597_v53 = vmul.f32 %v2288_v23, %v2653_v33  ;;  %2309 = vpow2.f32 %v1873_v42  ;;  %v1872_v55 = vmul.f32 -1.442695, %v2720_v45  ;;  %v2095_v56 = vpop.f32.mrb[16].mxu0 }
 0x13b   : > { %v917_v57 = vpop.f32.mrb[17].mxu1  ;;  %v2292_v58 = vpop.eup %2291  ;;  %1631 = vst [vmem:[%s2716_s13 + $0x10] sm:$0xff] %v1599_v47  ;;  %v1600_v59 = vmul.f32 %v2290_v51, %v2657_v36  ;;  %2311 = vpow2.f32 %v1871_v22  ;;  %v2141_v30 = vadd.f32 %v2095_v56, %v2047_v50 }
 0x13c   : > { %v1271_v60 = vpop.f32.mrb[17].mxu0  ;;  %v2048_v61 = vpop.f32.mrb[18].mxu1  ;;  %1629 = vst [vmem:[%s2716_s13] sm:$0xff] %v1597_v53  ;;  %v1598_v63 = vmul.f32 %v2292_v58, %v2661_v38  ;;  %2313 = vpow2.f32 %v1874_v48 }
 0x13d   : > { %v2294_v62 = vpop.eup %2293  ;;  %v2142_v33 = vadd.f32 %v1271_v60, %v917_v57  ;;  %v2096_v0 = vpop.f32.mrb[18].mxu0  ;;  %1632 = vst [vmem:[%s2716_s13 + $0x18] sm:$0xff] %v1600_v59  ;;  %2315 = vpow2.f32 %v1872_v55  ;;  %v2732_v5 = vadd.f32 %v2141_v30, %v2647_v25 }
 0x13e   : > { %v920_v1 = vpop.f32.mrb[19].mxu1  ;;  %v2296_v2 = vpop.eup %2295  ;;  %v1511_v4 = vadd.f32 1.0, %v2294_v62  ;;  %v2143_v36 = vadd.f32 %v2096_v0, %v2048_v61  ;;  %1630 = vst [vmem:[%s2716_s13 + $0x8] sm:$0xff] %v1598_v63 }
 0x13f   : > { %v1274_v6 = vpop.f32.mrb[19].mxu0  ;;  %v2298_v7 = vpop.eup %2297  ;;  %v1509_v9 = vadd.f32 1.0, %v2296_v2  ;;  %v2736_v10 = vadd.f32 %v2142_v33, %v2647_v25  ;;  %v1877_v15 = vmul.f32 -1.442695, %v2732_v5 }
 0x140   : > { %v2144_v38 = vadd.f32 %v1274_v6, %v920_v1  ;;  %v2300_v11 = vpop.eup %2299  ;;  %2317 = vrcp.f32 %v1511_v4  ;;  %v1512_v13 = vadd.f32 1.0, %v2298_v7  ;;  %v2740_v16 = vadd.f32 %v2143_v36, %v2647_v25 }
 0x141   : > { %v2302_v17 = vpop.eup %2301  ;;  %2319 = vrcp.f32 %v1509_v9  ;;  %v1510_v18 = vadd.f32 1.0, %v2300_v11  ;;  %v1875_v19 = vmul.f32 -1.442695, %v2736_v10  ;;  %v2051_v29 = vpop.f32.mrb[20].mxu1 }
 0x142   : > { %v2744_v24 = vadd.f32 %v2144_v38, %v2647_v25  ;;  %v2304_v26 = vpop.eup %2303  ;;  %v1603_v27 = vmul.f32 %v2302_v17, %v2666_v46  ;;  %2321 = vrcp.f32 %v1512_v13  ;;  %v1878_v28 = vmul.f32 -1.442695, %v2740_v16  ;;  %v2099_v37 = vpop.f32.mrb[20].mxu0 }
 0x143   : > { %v2306_v31 = vpop.eup %2305  ;;  %v1601_v32 = vmul.f32 %v2304_v26, %v2669_v49  ;;  %2323 = vrcp.f32 %v1510_v18  ;;  %v933_v39 = vpop.f32.mrb[21].mxu1  ;;  %v2145_v46 = vadd.f32 %v2099_v37, %v2051_v29 }
 0x144   : > { %v1876_v35 = vmul.f32 -1.442695, %v2744_v24  ;;  %v2308_v20 = vpop.eup %2307  ;;  %1635 = vst [vmem:[%s2716_s13 + $0x30] sm:$0xff] %v1603_v27  ;;  %v1604_v41 = vmul.f32 %v2306_v31, %v2673_v52  ;;  %2325 = vpow2.f32 %v1877_v15  ;;  %v1287_v21 = vpop.f32.mrb[21].mxu0 }
 0x145   : > { %v2052_v42 = vpop.f32.mrb[22].mxu1  ;;  %v2310_v44 = vpop.eup %2309  ;;  %1633 = vst [vmem:[%s2716_s13 + $0x20] sm:$0xff] %v1601_v32  ;;  %v1602_v22 = vmul.f32 %v2308_v20, %v2677_v54  ;;  %2327 = vpow2.f32 %v1875_v19  ;;  %v2146_v49 = vadd.f32 %v1287_v21, %v933_v39  ;;  %v2756_v51 = vadd.f32 %v2145_v46, %v2647_v25 }
 0x146   : > { %v2100_v23 = vpop.f32.mrb[22].mxu0  ;;  %v936_v47 = vpop.f32.mrb[23].mxu1  ;;  %1636 = vst [vmem:[%s2716_s13 + $0x38] sm:$0xff] %v1604_v41  ;;  %v1515_v50 = vadd.f32 1.0, %v2310_v44  ;;  %2329 = vpow2.f32 %v1878_v28 }
 0x147   : > { %v2312_v48 = vpop.eup %2311  ;;  %v2147_v52 = vadd.f32 %v2100_v23, %v2052_v42  ;;  %v1290_v53 = vpop.f32.mrb[23].mxu0  ;;  %1634 = vst [vmem:[%s2716_s13 + $0x28] sm:$0xff] %v1602_v22  ;;  %2331 = vpow2.f32 %v1876_v35  ;;  %v2760_v57 = vadd.f32 %v2146_v49, %v2647_v25  ;;  %v1881_v30 = vmul.f32 -1.442695, %v2756_v51 }
 0x148   : > { %v2314_v55 = vpop.eup %2313  ;;  %v1513_v56 = vadd.f32 1.0, %v2312_v48  ;;  %v2148_v54 = vadd.f32 %v1290_v53, %v936_v47  ;;  %2333 = vrcp.f32 %v1515_v50 }
 0x149   : > { %v2316_v58 = vpop.eup %2315  ;;  %v1516_v59 = vadd.f32 1.0, %v2314_v55  ;;  %v2764_v60 = vadd.f32 %v2147_v52, %v2647_v25  ;;  %v1879_v62 = vmul.f32 -1.442695, %v2760_v57  ;;  %v2055_v1 = vpop.f32.mrb[24].mxu1 }
 0x14a   : > { %2335 = vrcp.f32 %v1513_v56  ;;  %v1514_v61 = vadd.f32 1.0, %v2316_v58  ;;  %v2768_v63 = vadd.f32 %v2148_v54, %v2647_v25  ;;  %v2318_v33 = vpop.eup %2317  ;;  %v2103_v6 = vpop.f32.mrb[24].mxu0 }
 0x14b   : > { %2337 = vrcp.f32 %v1516_v59  ;;  %v1882_v0 = vmul.f32 -1.442695, %v2764_v60  ;;  %v2320_v2 = vpop.eup %2319  ;;  %v1607_v4 = vmul.f32 %v2318_v33, %v2682_v3  ;;  %v949_v7 = vpop.f32.mrb[25].mxu1  ;;  %v2149_v11 = vadd.f32 %v2103_v6, %v2055_v1 }
 0x14c   : > { %2339 = vrcp.f32 %v1514_v61  ;;  %v1880_v36 = vmul.f32 -1.442695, %v2768_v63  ;;  %v2322_v9 = vpop.eup %2321  ;;  %v1605_v38 = vmul.f32 %v2320_v2, %v2685_v8  ;;  %v1303_v13 = vpop.f32.mrb[25].mxu0 }
 0x14d   : > { %2341 = vpow2.f32 %v1881_v30  ;;  %v2056_v15 = vpop.f32.mrb[26].mxu1  ;;  %v2324_v17 = vpop.eup %2323  ;;  %1639 = vst [vmem:[%s2716_s13 + $0x50] sm:$0xff] %v1607_v4  ;;  %v1608_v18 = vmul.f32 %v2322_v9, %v2690_v12  ;;  %v2150_v3 = vadd.f32 %v1303_v13, %v949_v7  ;;  %v2779_v8 = vadd.f32 %v2149_v11, %v2647_v25 }
 0x14e   : > { %2343 = vpow2.f32 %v1879_v62  ;;  %v2104_v19 = vpop.f32.mrb[26].mxu0  ;;  %v952_v26 = vpop.f32.mrb[27].mxu1  ;;  %1637 = vst [vmem:[%s2716_s13 + $0x40] sm:$0xff] %v1605_v38  ;;  %v1606_v28 = vmul.f32 %v2324_v17, %v2694_v14 }
 0x14f   : > { %v2326_v27 = vpop.eup %2325  ;;  %2345 = vpow2.f32 %v1882_v0  ;;  %v2151_v29 = vadd.f32 %v2104_v19, %v2056_v15  ;;  %v1306_v31 = vpop.f32.mrb[27].mxu0  ;;  %1640 = vst [vmem:[%s2716_s13 + $0x58] sm:$0xff] %v1608_v18  ;;  %v2783_v12 = vadd.f32 %v2150_v3, %v2647_v25  ;;  %v1885_v21 = vmul.f32 -1.442695, %v2779_v8 }
 0x150   : > { %v2328_v32 = vpop.eup %2327  ;;  %v1519_v35 = vadd.f32 1.0, %v2326_v27  ;;  %2347 = vpow2.f32 %v1880_v36  ;;  %v2152_v37 = vadd.f32 %v1306_v31, %v952_v26  ;;  %1638 = vst [vmem:[%s2716_s13 + $0x48] sm:$0xff] %v1606_v28 }
 0x151   : > { %v2330_v39 = vpop.eup %2329  ;;  %v1517_v20 = vadd.f32 1.0, %v2328_v32  ;;  %v2787_v41 = vadd.f32 %v2151_v29, %v2647_v25  ;;  %v1883_v49 = vmul.f32 -1.442695, %v2783_v12  ;;  %v2059_v23 = vpop.f32.mrb[28].mxu1 }
 0x152   : > { %v2332_v14 = vpop.eup %2331  ;;  %2349 = vrcp.f32 %v1519_v35  ;;  %v1520_v46 = vadd.f32 1.0, %v2330_v39  ;;  %v2791_v42 = vadd.f32 %v2152_v37, %v2647_v25  ;;  %v2107_v52 = vpop.f32.mrb[28].mxu0 }
 0x153   : > { %v2334_v44 = vpop.eup %2333  ;;  %2351 = vrcp.f32 %v1517_v20  ;;  %v1518_v22 = vadd.f32 1.0, %v2332_v14  ;;  %v1886_v50 = vmul.f32 -1.442695, %v2787_v41  ;;  %v965_v53 = vpop.f32.mrb[29].mxu1  ;;  %v2153_v58 = vadd.f32 %v2107_v52, %v2059_v23 }
 0x154   : > { %v2336_v47 = vpop.eup %2335  ;;  %v1611_v48 = vmul.f32 %v2334_v44, %v2702_v34  ;;  %2353 = vrcp.f32 %v1520_v46  ;;  %v1884_v54 = vmul.f32 -1.442695, %v2791_v42  ;;  %v1319_v59 = vpop.f32.mrb[29].mxu0 }
 0x155   : > { %v2338_v55 = vpop.eup %2337  ;;  %v1609_v56 = vmul.f32 %v2336_v47, %v2706_v40  ;;  %2355 = vrcp.f32 %v1518_v22  ;;  %v2060_v30 = vpop.f32.mrb[30].mxu1  ;;  %v2154_v62 = vadd.f32 %v1319_v59, %v965_v53  ;;  %v2803_v2 = vadd.f32 %v2153_v58, %v2647_v25 }
 0x156   : > { %v2340_v61 = vpop.eup %2339  ;;  %1643 = vst [vmem:[%s2716_s13 + $0x70] sm:$0xff] %v1611_v48  ;;  %v1612_v34 = vmul.f32 %v2338_v55, %v2711_v43  ;;  %2357 = vpow2.f32 %v1885_v21  ;;  %v2108_v33 = vpop.f32.mrb[30].mxu0 }
 0x157   : > { %v968_v0 = vpop.f32.mrb[31].mxu1  ;;  %v2342_v1 = vpop.eup %2341  ;;  %1641 = vst [vmem:[%s2716_s13 + $0x60] sm:$0xff] %v1609_v56  ;;  %v1610_v40 = vmul.f32 %v2340_v61, %v2720_v45  ;;  %2359 = vpow2.f32 %v1883_v49  ;;  %v2155_v4 = vadd.f32 %v2108_v33, %v2060_v30  ;;  %v2807_v43 = vadd.f32 %v2154_v62, %v2647_v25 }
 0x158   : > { %v1322_v36 = vpop.f32.mrb[31].mxu0  ;;  %v2344_v6 = vpop.eup %2343  ;;  %1644 = vst [vmem:[%s2716_s13 + $0x78] sm:$0xff] %v1612_v34  ;;  %v1523_v7 = vadd.f32 1.0, %v2342_v1  ;;  %2361 = vpow2.f32 %v1886_v50  ;;  %v1889_v17 = vmul.f32 -1.442695, %v2803_v2 }
 0x159   : > { %v2156_v9 = vadd.f32 %v1322_v36, %v968_v0  ;;  %v2346_v38 = vpop.eup %2345  ;;  %1642 = vst [vmem:[%s2716_s13 + $0x68] sm:$0xff] %v1610_v40  ;;  %v1521_v11 = vadd.f32 1.0, %v2344_v6  ;;  %2363 = vpow2.f32 %v1884_v54  ;;  %v2811_v45 = vadd.f32 %v2155_v4, %v2647_v25 }
 0x15a   : > { %v2348_v13 = vpop.eup %2347  ;;  %2365 = vrcp.f32 %v1523_v7  ;;  %v1524_v15 = vadd.f32 1.0, %v2346_v38  ;;  %v1887_v19 = vmul.f32 -1.442695, %v2807_v43 }
 0x15b   : > { %v2815_v18 = vadd.f32 %v2156_v9, %v2647_v25  ;;  %2367 = vrcp.f32 %v1521_v11  ;;  %v1522_v3 = vadd.f32 1.0, %v2348_v13  ;;  %v1890_v27 = vmul.f32 -1.442695, %v2811_v45 }
 0x15c   : > { %v2350_v26 = vpop.eup %2349  ;;  %2369 = vrcp.f32 %v1524_v15 }
 0x15d   : > { %v2352_v28 = vpop.eup %2351  ;;  %v1615_v29 = vmul.f32 %v2350_v26, %v2732_v5  ;;  %2371 = vrcp.f32 %v1522_v3  ;;  %v1888_v31 = vmul.f32 -1.442695, %v2815_v18 }
 0x15e   : > { %v2354_v32 = vpop.eup %2353  ;;  %v1613_v25 = vmul.f32 %v2352_v28, %v2736_v10  ;;  %2373 = vpow2.f32 %v1889_v17 }
 0x15f   : > { %v2356_v35 = vpop.eup %2355  ;;  %1647 = vst [vmem:[%s2716_s13 + $0x90] sm:$0xff] %v1615_v29  ;;  %v1616_v37 = vmul.f32 %v2354_v32, %v2740_v16  ;;  %2375 = vpow2.f32 %v1887_v19 }
 0x160   : > { %v2358_v39 = vpop.eup %2357  ;;  %1645 = vst [vmem:[%s2716_s13 + $0x80] sm:$0xff] %v1613_v25  ;;  %v1614_v20 = vmul.f32 %v2356_v35, %v2744_v24  ;;  %2377 = vpow2.f32 %v1890_v27 }
 0x161   : > { %v2360_v14 = vpop.eup %2359  ;;  %1648 = vst [vmem:[%s2716_s13 + $0x98] sm:$0xff] %v1616_v37  ;;  %v1527_v5 = vadd.f32 1.0, %v2358_v39  ;;  %2379 = vpow2.f32 %v1888_v31 }
 0x162   : > { %v2362_v46 = vpop.eup %2361  ;;  %1646 = vst [vmem:[%s2716_s13 + $0x88] sm:$0xff] %v1614_v20  ;;  %v1525_v21 = vadd.f32 1.0, %v2360_v14 }
 0x163   : > { %v2364_v10 = vpop.eup %2363  ;;  %2381 = vrcp.f32 %v1527_v5  ;;  %v1528_v44 = vadd.f32 1.0, %v2362_v46 }
 0x164   : > { %v2366_v22 = vpop.eup %2365  ;;  %2383 = vrcp.f32 %v1525_v21  ;;  %v1526_v16 = vadd.f32 1.0, %v2364_v10 }
 0x165   : > { %v2368_v49 = vpop.eup %2367  ;;  %v1619_v24 = vmul.f32 %v2366_v22, %v2756_v51  ;;  %2385 = vrcp.f32 %v1528_v44 }
 0x166   : > { %v2370_v23 = vpop.eup %2369  ;;  %v1617_v47 = vmul.f32 %v2368_v49, %v2760_v57  ;;  %2387 = vrcp.f32 %v1526_v16 }
 0x167   : > { %v2372_v48 = vpop.eup %2371  ;;  %1651 = vst [vmem:[%s2716_s13 + $0xb0] sm:$0xff] %v1619_v24  ;;  %v1620_v50 = vmul.f32 %v2370_v23, %v2764_v60 }
 0x168   : > { %v2374_v52 = vpop.eup %2373  ;;  %1649 = vst [vmem:[%s2716_s13 + $0xa0] sm:$0xff] %v1617_v47  ;;  %v1618_v53 = vmul.f32 %v2372_v48, %v2768_v63 }
 0x169   : > { %v2376_v55 = vpop.eup %2375  ;;  %1652 = vst [vmem:[%s2716_s13 + $0xb8] sm:$0xff] %v1620_v50  ;;  %v1531_v56 = vadd.f32 1.0, %v2374_v52 }
 0x16a   : > { %v2378_v54 = vpop.eup %2377  ;;  %1650 = vst [vmem:[%s2716_s13 + $0xa8] sm:$0xff] %v1618_v53  ;;  %v1529_v51 = vadd.f32 1.0, %v2376_v55 }
 0x16b   : > { %v2380_v58 = vpop.eup %2379  ;;  %2389 = vrcp.f32 %v1531_v56  ;;  %v1532_v57 = vadd.f32 1.0, %v2378_v54 }
 0x16c   : > { %2391 = vrcp.f32 %v1529_v51  ;;  %v1530_v59 = vadd.f32 1.0, %v2380_v58 }
 0x16d   : > { %v2382_v60 = vpop.eup %2381  ;;  %2393 = vrcp.f32 %v1532_v57 }
 0x16e   : > { %v2384_v30 = vpop.eup %2383  ;;  %v1623_v63 = vmul.f32 %v2382_v60, %v2779_v8  ;;  %2395 = vrcp.f32 %v1530_v59 }
 0x16f   : > { %v2386_v61 = vpop.eup %2385  ;;  %v1621_v34 = vmul.f32 %v2384_v30, %v2783_v12 }
 0x170   : > { %v2388_v62 = vpop.eup %2387  ;;  %1655 = vst [vmem:[%s2716_s13 + $0xd0] sm:$0xff] %v1623_v63  ;;  %v1624_v33 = vmul.f32 %v2386_v61, %v2787_v41 }
 0x171   : > { %1653 = vst [vmem:[%s2716_s13 + $0xc0] sm:$0xff] %v1621_v34  ;;  %v1622_v0 = vmul.f32 %v2388_v62, %v2791_v42 }
 0x172   : > { %1656 = vst [vmem:[%s2716_s13 + $0xd8] sm:$0xff] %v1624_v33 }
 0x173   : > { %1654 = vst [vmem:[%s2716_s13 + $0xc8] sm:$0xff] %v1622_v0 }
 0x175   : > { %v2390_v1 = vpop.eup %2389 }
 0x176   : > { %v2392_v40 = vpop.eup %2391  ;;  %v1627_v8 = vmul.f32 %v2390_v1, %v2803_v2 }
 0x177   : > { %v2394_v4 = vpop.eup %2393  ;;  %v1625_v36 = vmul.f32 %v2392_v40, %v2807_v43 }
 0x178   : > { %v2396_v12 = vpop.eup %2395  ;;  %1659 = vst [vmem:[%s2716_s13 + $0xf0] sm:$0xff] %v1627_v8  ;;  %v1628_v6 = vmul.f32 %v2394_v4, %v2811_v45 }
 0x179   : > { %1657 = vst [vmem:[%s2716_s13 + $0xe0] sm:$0xff] %v1625_v36  ;;  %v1626_v41 = vmul.f32 %v2396_v12, %v2815_v18 }
 0x17a   : > { %1660 = vst [vmem:[%s2716_s13 + $0xf8] sm:$0xff] %v1628_v6 }
 0x17b   : > { %1658 = vst [vmem:[%s2716_s13 + $0xe8] sm:$0xff] %v1626_v41 }
 0x17c PF: > { %s15_s18 = sadd.s32 1, %s2403_s18  }
 0x17d   : > { %p12_p4 = scmp.ge.s32.totalorder %s15_s18, 4  }
 0x17f   :  { %14 = sbr.rel (!%p12_p4) target bundleno = 1 (0x1), region = 78 }

// kernel: c2f_forward.5
= control target key start
LH: loop header
LB: loop body
LE: loop exit
PB: predicated region body
PF: predicated region fallthrough
CT: control target
= control target key end

     0   :  { %s6450_s18 = smov 0   ;;  %s7618_s0 = inlined_call_operand.vmem [shape: bf16[2,16,16,128], index: 0, kind: input, shape index: {}]   ;;  %s7619_s1 = inlined_call_operand.vmem [shape: bf16[128,128], index: 1, kind: input, shape index: {}]   ;;  %s7620_s2 = inlined_call_operand.vmem [shape: f32[1,128], index: 2, kind: input, shape index: {}]   ;;  %s7621_s3 = inlined_call_operand.vmem [shape: bf16[9,128,128], index: 3, kind: input, shape index: {}]   ;;  %s7622_s4 = inlined_call_operand.vmem [shape: f32[1,128], index: 4, kind: input, shape index: {}]   ;;  %s7623_s5 = inlined_call_operand.vmem [shape: bf16[2,16,16,128], index: 5, kind: output, shape index: {}]  }
   0x1 LB: > { %s4288_s19 = sadd.s32 4294967295, %s6415_s18   ;;  %p4292_p0 = scmp.ge.s32.totalorder %s6415_s18, 1  ;;  %s6415_s18 = sphi %s6450_s18, %s15_s18  }
   0x2   : > { %p187_p1 = scmp.lt.s32.totalorder %s6415_s18, 3 }
   0x4   : > { %p188_p2 = pnand %p4292_p0, %p187_p1 }
   0x5   : > { %v6024_v0 = vld [vmem:[%s7619_s1] sm:$0xff] (!%p188_p2)   ;;  %p215_p3 = scmp.lt.s32.totalorder (!%p188_p2), %s4288_s19, 1  ;;  %v6025_v1 = vld [vmem:[%s7619_s1 + $0x8] sm:$0xff] (!%p188_p2)   ;;  %v6026_v2 = vld [vmem:[%s7619_s1 + $0x10] sm:$0xff] (!%p188_p2)   ;;  %v6417_v40 = vmov (!%p188_p2), 0.0   ;;  %v6418_v41 = vmov (!%p188_p2), 0.0|0.0  }
   0x6   : > { %191 = sbr.rel (%p188_p2) target bundleno = 862 (0x35e), region = 40  ;;  %5278 = vmatprep.subr.bf16.mxu0 (!%p188_p2), %v6024_v0  ;;  %v6027_v3 = vld [vmem:[%s7619_s1 + $0x18] sm:$0xff] (!%p188_p2)   ;;  %v6028_v5 = vld [vmem:[%s7619_s1 + $0x20] sm:$0xff] (!%p188_p2)   ;;  %v6029_v6 = vld [vmem:[%s7619_s1 + $0x28] sm:$0xff] (!%p188_p2)   ;;  %810 = vst [vmem:[#allocation2] sm:$0xff] (!%p188_p2), %v6417_v40  ;;  %vm6419_vm2 = vmmov (!%p188_p2), 1  }
   0x7   : > { %5279 = vmatpush3.bf16.msra.mxu0 (!%p188_p2), %v6024_v0  ;;  %v6030_v7 = vld [vmem:[%s7619_s1 + $0x30] sm:$0xff] (!%p188_p2)   ;;  %v6031_v8 = vld [vmem:[%s7619_s1 + $0x38] sm:$0xff] (!%p188_p2)   ;;  %v6048_v24 = vld [vmem:[%s7621_s3 + $0x40] sm:$0xff] (!%p188_p2)   ;;  %812 = vst [vmem:[#allocation2 + $0x10] sm:$0xff] (!%p188_p2), %v6417_v40 }
   0x8   : > { %5280 = vmatprep.subr.bf16.mxu0 (!%p188_p2), %v6025_v1  ;;  %v6049_v25 = vld [vmem:[%s7621_s3 + $0x100] sm:$0xff] (!%p188_p2)   ;;  %v6050_v26 = vld [vmem:[%s7621_s3 + $0x48] sm:$0xff] (!%p188_p2)   ;;  %v6052_v28 = vld [vmem:[%s7621_s3 + $0x50] sm:$0xff] (!%p188_p2)   ;;  %813 = vst [vmem:[#allocation2 + $0x18] sm:$0xff] (!%p188_p2), %v6417_v40 }
   0x9   : > { %5518 = vmatprep.subr.bf16.mxu1 (!%p188_p2), %v6049_v25  ;;  %v6051_v27 = vld [vmem:[%s7621_s3 + $0x108] sm:$0xff] (!%p188_p2)   ;;  %v6053_v29 = vld [vmem:[%s7621_s3 + $0x110] sm:$0xff] (!%p188_p2)   ;;  %v6054_v30 = vld [vmem:[%s7621_s3 + $0x58] sm:$0xff] (!%p188_p2)   ;;  %811 = vst [vmem:[#allocation2 + $0x8] sm:$0xff] (!%p188_p2), %v6417_v40 }
   0xa   : > { %5519 = vmatpush3.bf16.msra.mxu1 (!%p188_p2), %v6049_v25  ;;  %v6055_v31 = vld [vmem:[%s7621_s3 + $0x118] sm:$0xff] (!%p188_p2)   ;;  %v6056_v32 = vld [vmem:[%s7621_s3 + $0x60] sm:$0xff] (!%p188_p2)   ;;  %v6058_v34 = vld [vmem:[%s7621_s3 + $0x68] sm:$0xff] (!%p188_p2)   ;;  %814 = vst [vmem:[#allocation2 + $0x120] sm:$0xff] (!%p188_p2), %v6417_v40 }
   0xb   : > { %5281 = vmatpush3.bf16.msra.mxu0 (!%p188_p2), %v6025_v1  ;;  %5520 = vmatprep.subr.bf16.mxu1 (!%p188_p2), %v6051_v27  ;;  %v6057_v33 = vld [vmem:[%s7621_s3 + $0x120] sm:$0xff] (!%p188_p2)   ;;  %v6059_v35 = vld [vmem:[%s7621_s3 + $0x128] sm:$0xff] (!%p188_p2)   ;;  %v6060_v36 = vld [vmem:[%s7621_s3 + $0x70] sm:$0xff] (!%p188_p2)   ;;  %815 = vst [vmem:[#allocation2 + $0x128] sm:$0xff] (!%p188_p2), %v6417_v40 }
   0xc   : > { %5282 = vmatprep.subr.bf16.mxu0 (!%p188_p2), %v6026_v2  ;;  %v6061_v37 = vld [vmem:[%s7621_s3 + $0x130] sm:$0xff] (!%p188_p2)   ;;  %v6062_v38 = vld [vmem:[%s7621_s3 + $0x78] sm:$0xff] (!%p188_p2)   ;;  %816 = vst [vmem:[#allocation2 + $0x130] sm:$0xff] (!%p188_p2), %v6417_v40  ;;  %v6559_v42 = vld [vmem:[%s7621_s3 + $0x140] sm:$0xff] (!%p188_p2)  }
   0xd   : > { %s7637_s19 = smov (!%p215_p3, %s4288_s19), 1  ;;  %v6063_v39 = vld [vmem:[%s7621_s3 + $0x138] sm:$0xff]   ;;  %v6564_v43 = vld [vmem:[%s7621_s3] sm:$0xff]  }
   0xe   : > { %s4909_s26 = sshll.u32 %s7637_s19, 7  ;;  %5521 = vmatpush3.bf16.msra.mxu1 %v6051_v27  ;;  %v6571_v44 = vld [vmem:[%s7620_s2] ss:$0 sm:$0xff] }
   0xf   : > { %s6475_s29 = scalar_lea.vmem %s7618_s0, %s4909_s26  ;;  %5283 = vmatpush3.bf16.msra.mxu0 %v6026_v2  ;;  %5522 = vmatprep.subr.bf16.mxu1 %v6053_v29  ;;  %s7445_s20 = scalar_lea.vmem %s7623_s5, %s4909_s26 }
  0x10   : > { %v226_v4 = vld [vmem:[%s6475_s29] sm:$0xff]   ;;  %5284 = vmatprep.subr.bf16.mxu0 %v6027_v3  ;;  %v228_v9 = vld [vmem:[%s6475_s29 + $0x8] sm:$0xff]   ;;  %v230_v10 = vld [vmem:[%s6475_s29 + $0x10] sm:$0xff]  }
  0x11   : > { %5294 = vmatprep.mubr.bf16.mxu0 %v226_v4  ;;  %v232_v11 = vld [vmem:[%s6475_s29 + $0x18] sm:$0xff]   ;;  %v234_v12 = vld [vmem:[%s6475_s29 + $0x20] sm:$0xff]   ;;  %v236_v13 = vld [vmem:[%s6475_s29 + $0x28] sm:$0xff]  }
  0x12   : > { %v238_v14 = vld [vmem:[%s6475_s29 + $0x30] sm:$0xff]   ;;  %v240_v15 = vld [vmem:[%s6475_s29 + $0x38] sm:$0xff]   ;;  %v242_v16 = vld [vmem:[%s6475_s29 + $0x40] sm:$0xff]   ;;  %5523 = vmatpush3.bf16.msra.mxu1 %v6053_v29 }
  0x13   : > { %5285 = vmatpush3.bf16.msra.mxu0 %v6027_v3  ;;  %v244_v17 = vld [vmem:[%s6475_s29 + $0x48] sm:$0xff]   ;;  %v246_v18 = vld [vmem:[%s6475_s29 + $0x50] sm:$0xff]   ;;  %v248_v19 = vld [vmem:[%s6475_s29 + $0x58] sm:$0xff]   ;;  %5524 = vmatprep.subr.bf16.mxu1 %v6055_v31 }
  0x14   : > { %5286 = vmatprep.subr.bf16.mxu0 %v6028_v5  ;;  %v250_v20 = vld [vmem:[%s6475_s29 + $0x60] sm:$0xff]   ;;  %v252_v21 = vld [vmem:[%s6475_s29 + $0x68] sm:$0xff]   ;;  %v254_v22 = vld [vmem:[%s6475_s29 + $0x70] sm:$0xff]  }
  0x15   : > { %v256_v23 = vld [vmem:[%s6475_s29 + $0x78] sm:$0xff]  }
  0x16   : > { %5525 = vmatpush3.bf16.msra.mxu1 %v6055_v31 }
  0x17   : > { %5287 = vmatpush3.bf16.msra.mxu0 %v6028_v5  ;;  %5526 = vmatprep.subr.bf16.mxu1 %v6057_v33 }
  0x18   : > { %5288 = vmatprep.subr.bf16.mxu0 %v6029_v6 }
  0x1a   : > { %5527 = vmatpush3.bf16.msra.mxu1 %v6057_v33 }
  0x1b   : > { %5289 = vmatpush3.bf16.msra.mxu0 %v6029_v6  ;;  %5528 = vmatprep.subr.bf16.mxu1 %v6059_v35 }
  0x1c   : > { %5290 = vmatprep.subr.bf16.mxu0 %v6030_v7 }
  0x1e   : > { %5529 = vmatpush3.bf16.msra.mxu1 %v6059_v35 }
  0x1f   : > { %5291 = vmatpush3.bf16.msra.mxu0 %v6030_v7  ;;  %5530 = vmatprep.subr.bf16.mxu1 %v6061_v37 }
  0x20   : > { %5292 = vmatprep.subr.bf16.mxu0 %v6031_v8 }
  0x22   : > { %5531 = vmatpush3.bf16.msra.mxu1 %v6061_v37 }
  0x23   : > { %5293 = vmatpush3.bf16.msra.mxu0 %v6031_v8  ;;  %5532 = vmatprep.subr.bf16.mxu1 %v6063_v39 }
  0x24   : > { %5326 = vmatprep.subr.bf16.mxu0 %v6048_v24 }
  0x26   : > { %5295 = vmatmul.mubr.bf16.vlgmr.msra.gmra.mrb[0].mxu0 %v228_v9  ;;  %5533 = vmatpush3.bf16.msra.mxu1 %v6063_v39 }
  0x27   : > { %5298 = vmatprep.mubr.bf16.mxu0 %v230_v10  ;;  %5327 = vmatpush3.bf16.msra.mxu0 %v6048_v24 }
  0x28   : > { %5328 = vmatprep.subr.bf16.mxu0 %v6050_v26  ;;  %5566 = vmatprep.subr.bf16.mxu1 %v6559_v42 }
  0x2b   : > { %5329 = vmatpush3.bf16.msra.mxu0 %v6050_v26 }
  0x2c   : > { %5330 = vmatprep.subr.bf16.mxu0 %v6052_v28 }
  0x2e   : > { %5299 = vmatmul.mubr.bf16.gmra.mrb[4].mxu0 %v232_v11 }
  0x2f   : > { %5302 = vmatprep.mubr.bf16.mxu0 %v234_v12  ;;  %5331 = vmatpush3.bf16.msra.mxu0 %v6052_v28 }
  0x30   : > { %5332 = vmatprep.subr.bf16.mxu0 %v6054_v30 }
  0x33   : > { %5333 = vmatpush3.bf16.msra.mxu0 %v6054_v30 }
  0x34   : > { %5334 = vmatprep.subr.bf16.mxu0 %v6056_v32 }
  0x36   : > { %5303 = vmatmul.mubr.bf16.gmra.mrb[8].mxu0 %v236_v13 }
  0x37   : > { %5306 = vmatprep.mubr.bf16.mxu0 %v238_v14  ;;  %5335 = vmatpush3.bf16.msra.mxu0 %v6056_v32 }
  0x38   : > { %5336 = vmatprep.subr.bf16.mxu0 %v6058_v34 }
  0x3b   : > { %5337 = vmatpush3.bf16.msra.mxu0 %v6058_v34 }
  0x3c   : > { %5338 = vmatprep.subr.bf16.mxu0 %v6060_v36 }
  0x3e   : > { %5307 = vmatmul.mubr.bf16.gmra.mrb[12].mxu0 %v240_v15 }
  0x3f   : > { %5310 = vmatprep.mubr.bf16.mxu0 %v242_v16  ;;  %5339 = vmatpush3.bf16.msra.mxu0 %v6060_v36 }
  0x40   : > { %5340 = vmatprep.subr.bf16.mxu0 %v6062_v38 }
  0x43   : > { %5341 = vmatpush3.bf16.msra.mxu0 %v6062_v38 }
  0x44   : > { %5374 = vmatprep.subr.bf16.mxu0 %v6564_v43 }
  0x46   : > { %5311 = vmatmul.mubr.bf16.gmra.mrb[16].mxu0 %v244_v17 }
  0x47   : > { %5314 = vmatprep.mubr.bf16.mxu0 %v246_v18 }
  0x4e   : > { %5315 = vmatmul.mubr.bf16.gmra.mrb[20].mxu0 %v248_v19 }
  0x4f   : > { %5318 = vmatprep.mubr.bf16.mxu0 %v250_v20 }
  0x56   : > { %5319 = vmatmul.mubr.bf16.gmra.mrb[24].mxu0 %v252_v21 }
  0x57   : > { %5322 = vmatprep.mubr.bf16.mxu0 %v254_v22 }
  0x5e   : > { %5323 = vmatmul.mubr.bf16.gmra.mrb[28].mxu0 %v256_v23 }
  0x5f   : > { %5342 = vmatprep.mubr.bf16.mxu0 %v6418_v41 }
  0xf9   : > { %v5296_v45 = vpop.f32.mrb[0].mxu0 }
  0xfa   : > { %v6574_v46 = vadd.f32 %v5296_v45, %v6571_v44  ;;  %v459_v47 = vpop.f32.mrb[1].mxu0 }
  0xfb   : > { %v6577_v48 = vadd.f32 %v6571_v44, %v459_v47  ;;  %v5297_v49 = vpop.f32.mrb[2].mxu0 }
  0xfc   : > { %v4324_v50 = vmul.f32 -1.442695, %v6574_v46  ;;  %v6581_v51 = vadd.f32 %v5297_v49, %v6571_v44  ;;  %v462_v52 = vpop.f32.mrb[3].mxu0 }
  0xfd   : > { %v4322_v53 = vmul.f32 -1.442695, %v6577_v48  ;;  %v6585_v54 = vadd.f32 %v6571_v44, %v462_v52 }
  0xfe   : > { %6136 = vpow2.f32 %v4324_v50  ;;  %v4325_v55 = vmul.f32 -1.442695, %v6581_v51 }
  0xff   : > { %6138 = vpow2.f32 %v4322_v53  ;;  %v4323_v56 = vmul.f32 -1.442695, %v6585_v54 }
 0x100   : > { %6140 = vpow2.f32 %v4325_v55 }
 0x101   : > { %6142 = vpow2.f32 %v4323_v56  ;;  %v5300_v57 = vpop.f32.mrb[4].mxu0 }
 0x102   : > { %v6590_v58 = vadd.f32 %v5300_v57, %v6571_v44  ;;  %v475_v59 = vpop.f32.mrb[5].mxu0 }
 0x103   : > { %v6593_v60 = vadd.f32 %v6571_v44, %v475_v59  ;;  %v5301_v61 = vpop.f32.mrb[6].mxu0 }
 0x104   : > { %v4328_v62 = vmul.f32 -1.442695, %v6590_v58  ;;  %v6597_v63 = vadd.f32 %v5301_v61, %v6571_v44  ;;  %v478_v0 = vpop.f32.mrb[7].mxu0 }
 0x105   : > { %v4326_v1 = vmul.f32 -1.442695, %v6593_v60  ;;  %v6601_v2 = vadd.f32 %v6571_v44, %v478_v0 }
 0x106   : > { %6144 = vpow2.f32 %v4328_v62  ;;  %v4329_v3 = vmul.f32 -1.442695, %v6597_v63 }
 0x107   : > { %6146 = vpow2.f32 %v4326_v1  ;;  %v4327_v4 = vmul.f32 -1.442695, %v6601_v2 }
 0x108   : > { %v6137_v5 = vpop.eup %6136  ;;  %6148 = vpow2.f32 %v4329_v3 }
 0x109   : > { %v6139_v6 = vpop.eup %6138  ;;  %v684_v7 = vadd.f32 1.0, %v6137_v5  ;;  %6150 = vpow2.f32 %v4327_v4  ;;  %v5304_v8 = vpop.f32.mrb[8].mxu0 }
 0x10a   : > { %v6141_v9 = vpop.eup %6140  ;;  %v682_v10 = vadd.f32 1.0, %v6139_v6  ;;  %v6606_v11 = vadd.f32 %v5304_v8, %v6571_v44  ;;  %v491_v12 = vpop.f32.mrb[9].mxu0 }
 0x10b   : > { %v6143_v13 = vpop.eup %6142  ;;  %6152 = vrcp.f32 %v684_v7  ;;  %v685_v14 = vadd.f32 1.0, %v6141_v9  ;;  %v6609_v15 = vadd.f32 %v6571_v44, %v491_v12  ;;  %v5305_v16 = vpop.f32.mrb[10].mxu0 }
 0x10c   : > { %6154 = vrcp.f32 %v682_v10  ;;  %v683_v17 = vadd.f32 1.0, %v6143_v13  ;;  %v4332_v18 = vmul.f32 -1.442695, %v6606_v11  ;;  %v6613_v19 = vadd.f32 %v5305_v16, %v6571_v44  ;;  %v494_v20 = vpop.f32.mrb[11].mxu0  ;;  %v6070_v16 = vld [vmem:[%s7621_s3 + $0x8] sm:$0xff]  }
 0x10d   : > { %6156 = vrcp.f32 %v685_v14  ;;  %v4330_v21 = vmul.f32 -1.442695, %v6609_v15  ;;  %v6617_v22 = vadd.f32 %v6571_v44, %v494_v20  ;;  %v6065_v14 = vld [vmem:[%s7621_s3 + $0x148] sm:$0xff]  }
 0x10e   : > { %6158 = vrcp.f32 %v683_v17  ;;  %v4333_v23 = vmul.f32 -1.442695, %v6613_v19 }
 0x10f   : > { %6160 = vpow2.f32 %v4332_v18  ;;  %v4331_v24 = vmul.f32 -1.442695, %v6617_v22 }
 0x110   : > { %v6145_v25 = vpop.eup %6144  ;;  %6162 = vpow2.f32 %v4330_v21 }
 0x111   : > { %v6147_v26 = vpop.eup %6146  ;;  %v688_v27 = vadd.f32 1.0, %v6145_v25  ;;  %6164 = vpow2.f32 %v4333_v23  ;;  %v5308_v28 = vpop.f32.mrb[12].mxu0 }
 0x112   : > { %v6149_v29 = vpop.eup %6148  ;;  %v686_v30 = vadd.f32 1.0, %v6147_v26  ;;  %6166 = vpow2.f32 %v4331_v24  ;;  %v6622_v31 = vadd.f32 %v5308_v28, %v6571_v44  ;;  %v507_v32 = vpop.f32.mrb[13].mxu0 }
 0x113   : > { %v6151_v33 = vpop.eup %6150  ;;  %6168 = vrcp.f32 %v688_v27  ;;  %v689_v34 = vadd.f32 1.0, %v6149_v29  ;;  %v6625_v35 = vadd.f32 %v6571_v44, %v507_v32  ;;  %v5309_v36 = vpop.f32.mrb[14].mxu0 }
 0x114   : > { %6170 = vrcp.f32 %v686_v30  ;;  %v687_v37 = vadd.f32 1.0, %v6151_v33  ;;  %v4336_v38 = vmul.f32 -1.442695, %v6622_v31  ;;  %v6629_v39 = vadd.f32 %v5309_v36, %v6571_v44  ;;  %v510_v40 = vpop.f32.mrb[15].mxu0 }
 0x115   : > { %v6153_v41 = vpop.eup %6152  ;;  %6172 = vrcp.f32 %v689_v34  ;;  %v4334_v45 = vmul.f32 -1.442695, %v6625_v35  ;;  %v6633_v47 = vadd.f32 %v6571_v44, %v510_v40 }
 0x116   : > { %v6155_v49 = vpop.eup %6154  ;;  %v780_v50 = vmul.f32 %v6153_v41, %v6574_v46  ;;  %6174 = vrcp.f32 %v687_v37  ;;  %v4337_v52 = vmul.f32 -1.442695, %v6629_v39 }
 0x117   : > { %v6157_v53 = vpop.eup %6156  ;;  %v778_v55 = vmul.f32 %v6155_v49, %v6577_v48  ;;  %6176 = vpow2.f32 %v4336_v38  ;;  %v4335_v56 = vmul.f32 -1.442695, %v6633_v47 }
 0x118   : > { %v6159_v57 = vpop.eup %6158  ;;  %820 = vst [vmem:[#allocation2 + $0x30] sm:$0xff] %v780_v50  ;;  %v781_v59 = vmul.f32 %v6157_v53, %v6581_v51  ;;  %6178 = vpow2.f32 %v4334_v45 }
 0x119   : > { %v6161_v61 = vpop.eup %6160  ;;  %818 = vst [vmem:[#allocation2 + $0x20] sm:$0xff] %v778_v55  ;;  %v779_v62 = vmul.f32 %v6159_v57, %v6585_v54  ;;  %6180 = vpow2.f32 %v4337_v52  ;;  %v5312_v46 = vpop.f32.mrb[16].mxu0  ;;  %v6073_v57 = vld [vmem:[%s7621_s3 + $0x18] sm:$0xff]  }
 0x11a   : > { %v6163_v0 = vpop.eup %6162  ;;  %821 = vst [vmem:[#allocation2 + $0x38] sm:$0xff] %v781_v59  ;;  %v692_v1 = vadd.f32 1.0, %v6161_v61  ;;  %6182 = vpow2.f32 %v4335_v56  ;;  %v6642_v48 = vadd.f32 %v5312_v46, %v6571_v44  ;;  %v523_v3 = vpop.f32.mrb[17].mxu0  ;;  %v991_v4 = vpack.c.bf16 %v781_v59, %v780_v50  ;;  %v6067_v56 = vld [vmem:[%s7621_s3 + $0x158] sm:$0xff]  }
 0x11b   : > { %v6165_v5 = vpop.eup %6164  ;;  %819 = vst [vmem:[#allocation2 + $0x28] sm:$0xff] %v779_v62  ;;  %v690_v6 = vadd.f32 1.0, %v6163_v0  ;;  %v6645_v51 = vadd.f32 %v6571_v44, %v523_v3  ;;  %v5313_v7 = vpop.f32.mrb[18].mxu0  ;;  %v990_v8 = vpack.c.bf16 %v779_v62, %v778_v55 }
 0x11c   : > { %v6167_v54 = vpop.eup %6166  ;;  %6184 = vrcp.f32 %v692_v1  ;;  %v693_v9 = vadd.f32 1.0, %v6165_v5  ;;  %v4340_v10 = vmul.f32 -1.442695, %v6642_v48  ;;  %v6649_v12 = vadd.f32 %v5313_v7, %v6571_v44  ;;  %v526_v13 = vpop.f32.mrb[19].mxu0  ;;  %v6069_v7 = vld [vmem:[%s7621_s3 + $0x160] sm:$0xff]  }
 0x11d   : > { %v6169_v17 = vpop.eup %6168  ;;  %6186 = vrcp.f32 %v690_v6  ;;  %v691_v18 = vadd.f32 1.0, %v6167_v54  ;;  %v4338_v20 = vmul.f32 -1.442695, %v6645_v51  ;;  %v6659_v21 = vadd.f32 %v6571_v44, %v526_v13  ;;  %5343 = vmatmul.mubr.bf16.vlgmr.msra.gmra.mrb[32].mxu0 %v990_v8  ;;  %5534 = vmatprep.mubr.bf16.mxu1 %v990_v8  ;;  %v6074_v8 = vld [vmem:[%s7621_s3 + $0x20] sm:$0xff]  }
 0x11e   : > { %v6171_v23 = vpop.eup %6170  ;;  %v784_v24 = vmul.f32 %v6169_v17, %v6590_v58  ;;  %6188 = vrcp.f32 %v693_v9  ;;  %v4341_v25 = vmul.f32 -1.442695, %v6649_v12  ;;  %5346 = vmatprep.mubr.bf16.mxu0 %v991_v4  ;;  %5535 = vmatmul.mubr.bf16.vlgmr.msra.gmra.mrb[0].mxu1 %v991_v4  ;;  %v6066_v58 = vld [vmem:[%s7621_s3 + $0x150] sm:$0xff]  }
 0x11f   : > { %v6173_v26 = vpop.eup %6172  ;;  %v782_v27 = vmul.f32 %v6171_v23, %v6593_v60  ;;  %6190 = vrcp.f32 %v691_v18  ;;  %v4339_v28 = vmul.f32 -1.442695, %v6659_v21  ;;  %5567 = vmatpush3.bf16.msra.mxu1 %v6559_v42  ;;  %5375 = vmatpush3.bf16.msra.mxu0 %v6564_v43  ;;  %v6071_v60 = vld [vmem:[%s7621_s3 + $0x10] sm:$0xff]  }
 0x120   : > { %v6175_v29 = vpop.eup %6174  ;;  %824 = vst [vmem:[#allocation2 + $0x50] sm:$0xff] %v784_v24  ;;  %v785_v30 = vmul.f32 %v6173_v26, %v6597_v63  ;;  %6192 = vpow2.f32 %v4340_v10  ;;  %5568 = vmatprep.subr.bf16.mxu1 %v6065_v14  ;;  %5376 = vmatprep.subr.bf16.mxu0 %v6070_v16 }
 0x121   : > { %v6177_v32 = vpop.eup %6176  ;;  %822 = vst [vmem:[#allocation2 + $0x40] sm:$0xff] %v782_v27  ;;  %v783_v42 = vmul.f32 %v6175_v29, %v6601_v2  ;;  %6194 = vpow2.f32 %v4338_v20  ;;  %v5316_v43 = vpop.f32.mrb[20].mxu0 }
 0x122   : > { %v6179_v33 = vpop.eup %6178  ;;  %825 = vst [vmem:[#allocation2 + $0x58] sm:$0xff] %v785_v30  ;;  %v696_v63 = vadd.f32 1.0, %v6177_v32  ;;  %6196 = vpow2.f32 %v4341_v25  ;;  %v6676_v34 = vadd.f32 %v5316_v43, %v6571_v44  ;;  %v539_v36 = vpop.f32.mrb[21].mxu0  ;;  %v993_v37 = vpack.c.bf16 %v785_v30, %v784_v24 }
 0x123   : > { %v6181_v38 = vpop.eup %6180  ;;  %823 = vst [vmem:[#allocation2 + $0x48] sm:$0xff] %v783_v42  ;;  %v694_v40 = vadd.f32 1.0, %v6179_v33  ;;  %6198 = vpow2.f32 %v4339_v28  ;;  %v6679_v41 = vadd.f32 %v6571_v44, %v539_v36  ;;  %v5317_v45 = vpop.f32.mrb[22].mxu0  ;;  %v992_v2 = vpack.c.bf16 %v783_v42, %v782_v27  ;;  %5569 = vmatpush3.bf16.msra.mxu1 %v6065_v14  ;;  %5377 = vmatpush3.bf16.msra.mxu0 %v6070_v16 }
 0x124   : > { %v6183_v49 = vpop.eup %6182  ;;  %6200 = vrcp.f32 %v696_v63  ;;  %v697_v50 = vadd.f32 1.0, %v6181_v38  ;;  %v4344_v52 = vmul.f32 -1.442695, %v6676_v34  ;;  %v6683_v53 = vadd.f32 %v5317_v45, %v6571_v44  ;;  %v542_v55 = vpop.f32.mrb[23].mxu0  ;;  %5570 = vmatprep.subr.bf16.mxu1 %v6066_v58  ;;  %5378 = vmatprep.subr.bf16.mxu0 %v6071_v60 }
 0x125   : > { %6202 = vrcp.f32 %v694_v40  ;;  %v695_v59 = vadd.f32 1.0, %v6183_v49  ;;  %v4342_v61 = vmul.f32 -1.442695, %v6679_v41  ;;  %v6693_v62 = vadd.f32 %v6571_v44, %v542_v55  ;;  %5347 = vmatmul.mubr.bf16.gmra.mrb[36].mxu0 %v992_v2  ;;  %5538 = vmatprep.mubr.bf16.mxu1 %v992_v2 }
 0x126   : > { %v6185_v46 = vpop.eup %6184  ;;  %6204 = vrcp.f32 %v697_v50  ;;  %v4345_v0 = vmul.f32 -1.442695, %v6683_v53  ;;  %5350 = vmatprep.mubr.bf16.mxu0 %v993_v37  ;;  %5539 = vmatmul.mubr.bf16.gmra.mrb[4].mxu1 %v993_v37 }
 0x127   : > { %v6187_v1 = vpop.eup %6186  ;;  %v788_v3 = vmul.f32 %v6185_v46, %v6606_v11  ;;  %6206 = vrcp.f32 %v695_v59  ;;  %v4343_v4 = vmul.f32 -1.442695, %v6693_v62  ;;  %5571 = vmatpush3.bf16.msra.mxu1 %v6066_v58  ;;  %5379 = vmatpush3.bf16.msra.mxu0 %v6071_v60  ;;  %v6072_v58 = vld [vmem:[%s7621_s3 + $0x168] sm:$0xff]  }
 0x128   : > { %v6189_v5 = vpop.eup %6188  ;;  %v786_v6 = vmul.f32 %v6187_v1, %v6609_v15  ;;  %6208 = vpow2.f32 %v4344_v52  ;;  %5572 = vmatprep.subr.bf16.mxu1 %v6067_v56  ;;  %5380 = vmatprep.subr.bf16.mxu0 %v6073_v57  ;;  %v6076_v60 = vld [vmem:[%s7621_s3 + $0x28] sm:$0xff]  }
 0x129   : > { %v6191_v11 = vpop.eup %6190  ;;  %828 = vst [vmem:[#allocation2 + $0x70] sm:$0xff] %v788_v3  ;;  %v789_v54 = vmul.f32 %v6189_v5, %v6613_v19  ;;  %6210 = vpow2.f32 %v4342_v61  ;;  %v5320_v9 = vpop.f32.mrb[24].mxu0 }
 0x12a   : > { %v6193_v10 = vpop.eup %6192  ;;  %826 = vst [vmem:[#allocation2 + $0x60] sm:$0xff] %v786_v6  ;;  %v787_v15 = vmul.f32 %v6191_v11, %v6617_v22  ;;  %6212 = vpow2.f32 %v4345_v0  ;;  %v6708_v13 = vadd.f32 %v5320_v9, %v6571_v44  ;;  %v555_v14 = vpop.f32.mrb[25].mxu0 }
 0x12b   : > { %v6195_v16 = vpop.eup %6194  ;;  %829 = vst [vmem:[#allocation2 + $0x78] sm:$0xff] %v789_v54  ;;  %v700_v17 = vadd.f32 1.0, %v6193_v10  ;;  %6214 = vpow2.f32 %v4343_v4  ;;  %v6711_v18 = vadd.f32 %v6571_v44, %v555_v14  ;;  %v5321_v20 = vpop.f32.mrb[26].mxu0  ;;  %v995_v19 = vpack.c.bf16 %v789_v54, %v788_v3  ;;  %5573 = vmatpush3.bf16.msra.mxu1 %v6067_v56  ;;  %5381 = vmatpush3.bf16.msra.mxu0 %v6073_v57 }
 0x12c   : > { %v6197_v23 = vpop.eup %6196  ;;  %827 = vst [vmem:[#allocation2 + $0x68] sm:$0xff] %v787_v15  ;;  %v698_v24 = vadd.f32 1.0, %v6195_v16  ;;  %v6714_v22 = vadd.f32 %v5321_v20, %v6571_v44  ;;  %v558_v25 = vpop.f32.mrb[27].mxu0  ;;  %v994_v26 = vpack.c.bf16 %v787_v15, %v786_v6  ;;  %5574 = vmatprep.subr.bf16.mxu1 %v6069_v7  ;;  %5382 = vmatprep.subr.bf16.mxu0 %v6074_v8  ;;  %v4348_v29 = vmul.f32 -1.442695, %v6708_v13  ;;  %v6078_v15 = vld [vmem:[%s7621_s3 + $0x178] sm:$0xff]  }
 0x12d   : > { %v6199_v27 = vpop.eup %6198  ;;  %6216 = vrcp.f32 %v700_v17  ;;  %v701_v28 = vadd.f32 1.0, %v6197_v23  ;;  %v6718_v30 = vadd.f32 %v6571_v44, %v558_v25  ;;  %v4346_v43 = vmul.f32 -1.442695, %v6711_v18 }
 0x12e   : > { %v6201_v32 = vpop.eup %6200  ;;  %6218 = vrcp.f32 %v698_v24  ;;  %v699_v42 = vadd.f32 1.0, %v6199_v27  ;;  %5351 = vmatmul.mubr.bf16.gmra.mrb[40].mxu0 %v994_v26  ;;  %5542 = vmatprep.mubr.bf16.mxu1 %v994_v26  ;;  %v4349_v36 = vmul.f32 -1.442695, %v6714_v22 }
 0x12f   : > { %v6203_v33 = vpop.eup %6202  ;;  %v792_v63 = vmul.f32 %v6201_v32, %v6622_v31  ;;  %6220 = vrcp.f32 %v701_v28  ;;  %5354 = vmatprep.mubr.bf16.mxu0 %v995_v19  ;;  %5543 = vmatmul.mubr.bf16.gmra.mrb[8].mxu1 %v995_v19  ;;  %v4347_v40 = vmul.f32 -1.442695, %v6718_v30  ;;  %v6075_v31 = vld [vmem:[%s7621_s3 + $0x170] sm:$0xff]   ;;  %v6773_v28 = vld [vmem:[%s7621_s3 + $0x80] sm:$0xff]  }
 0x130   : > { %v6205_v37 = vpop.eup %6204  ;;  %v790_v38 = vmul.f32 %v6203_v33, %v6625_v35  ;;  %6222 = vrcp.f32 %v699_v42  ;;  %5575 = vmatpush3.bf16.msra.mxu1 %v6069_v7  ;;  %5383 = vmatpush3.bf16.msra.mxu0 %v6074_v8  ;;  %v6077_v35 = vld [vmem:[%s7621_s3 + $0x30] sm:$0xff]  }
 0x131   : > { %v6207_v45 = vpop.eup %6206  ;;  %832 = vst [vmem:[#allocation2 + $0x90] sm:$0xff] %v792_v63  ;;  %v793_v2 = vmul.f32 %v6205_v37, %v6629_v39  ;;  %6224 = vpow2.f32 %v4348_v29  ;;  %v5324_v49 = vpop.f32.mrb[28].mxu0  ;;  %5576 = vmatprep.subr.bf16.mxu1 %v6072_v58  ;;  %5384 = vmatprep.subr.bf16.mxu0 %v6076_v60 }
 0x132   : > { %v6209_v50 = vpop.eup %6208  ;;  %830 = vst [vmem:[#allocation2 + $0x80] sm:$0xff] %v790_v38  ;;  %v791_v52 = vmul.f32 %v6207_v45, %v6633_v47  ;;  %6226 = vpow2.f32 %v4346_v43  ;;  %v6740_v55 = vadd.f32 %v5324_v49, %v6571_v44  ;;  %v571_v39 = vpop.f32.mrb[29].mxu0 }
 0x133   : > { %v6211_v56 = vpop.eup %6210  ;;  %833 = vst [vmem:[#allocation2 + $0x98] sm:$0xff] %v793_v2  ;;  %v704_v57 = vadd.f32 1.0, %v6209_v50  ;;  %6228 = vpow2.f32 %v4349_v36  ;;  %v6743_v59 = vadd.f32 %v6571_v44, %v571_v39  ;;  %v5325_v61 = vpop.f32.mrb[30].mxu0  ;;  %v997_v46 = vpack.c.bf16 %v793_v2, %v792_v63 }
 0x134   : > { %v6213_v0 = vpop.eup %6212  ;;  %831 = vst [vmem:[#allocation2 + $0x88] sm:$0xff] %v791_v52  ;;  %v702_v1 = vadd.f32 1.0, %v6211_v56  ;;  %6230 = vpow2.f32 %v4347_v40  ;;  %v6746_v47 = vadd.f32 %v5325_v61, %v6571_v44  ;;  %v574_v3 = vpop.f32.mrb[31].mxu0  ;;  %5577 = vmatpush3.bf16.msra.mxu1 %v6072_v58  ;;  %5385 = vmatpush3.bf16.msra.mxu0 %v6076_v60  ;;  %v4352_v6 = vmul.f32 -1.442695, %v6740_v55 }
 0x135   : > { %v6215_v4 = vpop.eup %6214  ;;  %6232 = vrcp.f32 %v704_v57  ;;  %v705_v5 = vadd.f32 1.0, %v6213_v0  ;;  %v6750_v7 = vadd.f32 %v6571_v44, %v574_v3  ;;  %5578 = vmatprep.subr.bf16.mxu1 %v6075_v31  ;;  %5386 = vmatprep.subr.bf16.mxu0 %v6077_v35  ;;  %v4350_v11 = vmul.f32 -1.442695, %v6743_v59  ;;  %v6079_v44 = vld [vmem:[%s7621_s3 + $0x38] sm:$0xff]  }
 0x136   : > { %6234 = vrcp.f32 %v702_v1  ;;  %v703_v8 = vadd.f32 1.0, %v6215_v4  ;;  %v996_v54 = vpack.c.bf16 %v791_v52, %v790_v38  ;;  %v4353_v10 = vmul.f32 -1.442695, %v6746_v47 }
 0x137   : > { %v6217_v9 = vpop.eup %6216  ;;  %6236 = vrcp.f32 %v705_v5  ;;  %v4351_v17 = vmul.f32 -1.442695, %v6750_v7 }
 0x138   : > { %v6219_v14 = vpop.eup %6218  ;;  %v796_v16 = vmul.f32 %v6217_v9, %v6642_v48  ;;  %6238 = vrcp.f32 %v703_v8  ;;  %5355 = vmatmul.mubr.bf16.gmra.mrb[44].mxu0 %v996_v54  ;;  %5546 = vmatprep.mubr.bf16.mxu1 %v996_v54 }
 0x139   : > { %v6221_v20 = vpop.eup %6220  ;;  %v794_v19 = vmul.f32 %v6219_v14, %v6645_v51  ;;  %6240 = vpow2.f32 %v4352_v6  ;;  %5358 = vmatprep.mubr.bf16.mxu0 %v997_v46  ;;  %5547 = vmatmul.mubr.bf16.gmra.mrb[12].mxu1 %v997_v46  ;;  %v6768_v51 = vld [vmem:[%s7621_s3 + $0x180] sm:$0xff]  }
 0x13a   : > { %v6223_v23 = vpop.eup %6222  ;;  %836 = vst [vmem:[#allocation2 + $0xb0] sm:$0xff] %v796_v16  ;;  %v797_v24 = vmul.f32 %v6221_v20, %v6649_v12  ;;  %6242 = vpow2.f32 %v4350_v11  ;;  %5579 = vmatpush3.bf16.msra.mxu1 %v6075_v31  ;;  %5387 = vmatpush3.bf16.msra.mxu0 %v6077_v35 }
 0x13b   : > { %v6225_v25 = vpop.eup %6224  ;;  %834 = vst [vmem:[#allocation2 + $0xa0] sm:$0xff] %v794_v19  ;;  %v795_v48 = vmul.f32 %v6223_v23, %v6659_v21  ;;  %6244 = vpow2.f32 %v4353_v10  ;;  %5580 = vmatprep.subr.bf16.mxu1 %v6078_v15  ;;  %5388 = vmatprep.subr.bf16.mxu0 %v6079_v44  ;;  %v857_v10 = vld [vmem:[#allocation2 + $0xf] sm:$0xff] }
 0x13c   : > { %v6227_v26 = vpop.eup %6226  ;;  %837 = vst [vmem:[#allocation2 + $0xb8] sm:$0xff] %v797_v24  ;;  %v708_v27 = vadd.f32 1.0, %v6225_v25  ;;  %6246 = vpow2.f32 %v4351_v17  ;;  %v999_v12 = vpack.c.bf16 %v797_v24, %v796_v16  ;;  %v2426_v17 = vld [vmem:[#allocation2 + $0x21] sm:$0xff]  ;;  %v861_v24 = vld [vmem:[#allocation2 + $0x2f] sm:$0xff]  ;;  %v862_v25 = vld [vmem:[#allocation2 + $0x37] sm:$0xff] }
 0x13d   : > { %v6229_v29 = vpop.eup %6228  ;;  %835 = vst [vmem:[#allocation2 + $0xa8] sm:$0xff] %v795_v48  ;;  %v706_v21 = vadd.f32 1.0, %v6227_v26  ;;  %v998_v58 = vpack.c.bf16 %v795_v48, %v794_v19  ;;  %v2429_v48 = vld [vmem:[#allocation2 + $0x39] sm:$0xff] }
 0x13e   : > { %v6231_v60 = vpop.eup %6230  ;;  %6248 = vrcp.f32 %v708_v27  ;;  %v709_v32 = vadd.f32 1.0, %v6229_v29  ;;  %5581 = vmatpush3.bf16.msra.mxu1 %v6078_v15  ;;  %5389 = vmatpush3.bf16.msra.mxu0 %v6079_v44  ;;  %v858_v15 = vld [vmem:[#allocation2 + $0x17] sm:$0xff]  ;;  %v859_v26 = vld [vmem:[#allocation2 + $0x1f] sm:$0xff] }
 0x13f   : > { %v6233_v42 = vpop.eup %6232  ;;  %6250 = vrcp.f32 %v706_v21  ;;  %v707_v43 = vadd.f32 1.0, %v6231_v60  ;;  %5550 = vmatprep.mubr.bf16.mxu1 %v998_v58  ;;  %5614 = vmatprep.subr.bf16.mxu1 %v6768_v51  ;;  %v4387_v20 = vpack.c.bf16 %v858_v15, %v857_v10  ;;  %v2430_v27 = vld [vmem:[#allocation2 + $0x41] sm:$0xff]  ;;  %v2428_v21 = vld [vmem:[#allocation2 + $0x31] sm:$0xff] }
 0x140   : > { %v6235_v33 = vpop.eup %6234  ;;  %v800_v63 = vmul.f32 %v6233_v42, %v6676_v34  ;;  %6252 = vrcp.f32 %v709_v32  ;;  %5359 = vmatmul.mubr.bf16.gmra.mrb[48].mxu0 %v998_v58  ;;  %5422 = vmatprep.subr.bf16.mxu0 %v6773_v28  ;;  %v6806_v58 = vpack.c.bf16 %v862_v25, %v861_v24  ;;  %v6808_v60 = vpack.c.bf16 %v2429_v48, %v2428_v21  ;;  %v6081_v32 = vld [vmem:[%s7621_s3 + $0x188] sm:$0xff]   ;;  %v871_v15 = vld [vmem:[#allocation2 + $0x7f] sm:$0xff] }
 0x141   : > { %v6237_v36 = vpop.eup %6236  ;;  %v798_v37 = vmul.f32 %v6235_v33, %v6679_v41  ;;  %6254 = vrcp.f32 %v707_v43  ;;  %5362 = vmatprep.mubr.bf16.mxu0 %v999_v12  ;;  %5551 = vmatmul.mubr.bf16.gmra.mrb[16].mxu1 %v999_v12  ;;  %v2431_v12 = vld [vmem:[#allocation2 + $0x49] sm:$0xff]  ;;  %v6931_v25 = vld [vmem:[%s7621_s3 + $0x1c0] sm:$0xff]  }
 0x142   : > { %v6239_v38 = vpop.eup %6238  ;;  %840 = vst [vmem:[#allocation2 + $0xd0] sm:$0xff] %v800_v63  ;;  %v801_v40 = vmul.f32 %v6237_v36, %v6683_v53  ;;  %v850_v53 = vlaneseq  ;;  %v6816_v42 = vpack.c.bf16 %v2431_v12, %v2430_v27  ;;  %v6086_v43 = vld [vmem:[%s7621_s3 + $0x88] sm:$0xff]   ;;  %v6087_v36 = vld [vmem:[%s7621_s3 + $0x90] sm:$0xff]   ;;  %v2441_v10 = vld [vmem:[#allocation2 + $0x99] sm:$0xff] }
 0x143   : > { %v6241_v45 = vpop.eup %6240  ;;  %838 = vst [vmem:[#allocation2 + $0xc0] sm:$0xff] %v798_v37  ;;  %v799_v2 = vmul.f32 %v6239_v38, %v6693_v62  ;;  %v864_v33 = vld [vmem:[#allocation2 + $0x47] sm:$0xff]  ;;  %v866_v38 = vld [vmem:[#allocation2 + $0x57] sm:$0xff]  ;;  %v875_v21 = vld [vmem:[#allocation2 + $0x9f] sm:$0xff] }
 0x144   : > { %v6243_v49 = vpop.eup %6242  ;;  %841 = vst [vmem:[#allocation2 + $0xd8] sm:$0xff] %v801_v40  ;;  %v712_v34 = vadd.f32 1.0, %v6241_v45  ;;  %v1001_v31 = vpack.c.bf16 %v801_v40, %v800_v63  ;;  %v851_v5 = vshrl.u32 %v850_v53, 7  ;;  %v6082_v63 = vld [vmem:[%s7621_s3 + $0x190] sm:$0xff]   ;;  %v2433_v40 = vld [vmem:[#allocation2 + $0x59] sm:$0xff]  ;;  %v2434_v45 = vld [vmem:[#allocation2 + $0x61] sm:$0xff] }
 0x145   : > { %v6245_v35 = vpop.eup %6244  ;;  %839 = vst [vmem:[#allocation2 + $0xc8] sm:$0xff] %v799_v2  ;;  %v710_v50 = vadd.f32 1.0, %v6243_v49  ;;  %v1000_v52 = vpack.c.bf16 %v799_v2, %v798_v37  ;;  %v865_v37 = vld [vmem:[#allocation2 + $0x4f] sm:$0xff]  ;;  %v870_v53 = vld [vmem:[#allocation2 + $0x77] sm:$0xff]  ;;  %v876_v24 = vld [vmem:[#allocation2 + $0xa7] sm:$0xff] }
 0x146   : > { %v6247_v41 = vpop.eup %6246  ;;  %6256 = vrcp.f32 %v712_v34  ;;  %v713_v39 = vadd.f32 1.0, %v6245_v35  ;;  %vm853_vm0 = vcmp.ge.s32.totalorder %v851_v5, 1  ;;  %v2435_v2 = vld [vmem:[#allocation2 + $0x69] sm:$0xff]  ;;  %v2432_v34 = vld [vmem:[#allocation2 + $0x51] sm:$0xff]  ;;  %v6936_v48 = vld [vmem:[%s7621_s3 + $0xc0] sm:$0xff]  }
 0x147   : > { %6258 = vrcp.f32 %v710_v50  ;;  %v711_v56 = vadd.f32 1.0, %v6247_v41  ;;  %5554 = vmatprep.mubr.bf16.mxu1 %v1000_v52  ;;  %vm6789_vm3 = vmpackc.low %vm6419_vm2, %vm853_vm0  ;;  %v6842_v35 = vpack.c.bf16 %v2433_v40, %v2432_v34  ;;  %v6850_v50 = vpack.c.bf16 %v2435_v2, %v2434_v45  ;;  %v868_v41 = vld [vmem:[#allocation2 + $0x67] sm:$0xff]  ;;  %v878_v27 = vld [vmem:[#allocation2 + $0xb7] sm:$0xff] }
 0x148   : > { %v6249_v57 = vpop.eup %6248  ;;  %6260 = vrcp.f32 %v713_v39  ;;  %5363 = vmatmul.mubr.bf16.gmra.mrb[52].mxu0 %v1000_v52  ;;  %v6089_v52 = vld [vmem:[%s7621_s3 + $0x98] sm:$0xff]   ;;  %v6085_v39 = vld [vmem:[%s7621_s3 + $0x1a0] sm:$0xff]  }
 0x149   : > { %v6251_v61 = vpop.eup %6250  ;;  %v804_v62 = vmul.f32 %v6249_v57, %v6708_v13  ;;  %6262 = vrcp.f32 %v711_v56  ;;  %5366 = vmatprep.mubr.bf16.mxu0 %v1001_v31  ;;  %5555 = vmatmul.mubr.bf16.gmra.mrb[20].mxu1 %v1001_v31  ;;  %v852_v13 = vadd.s32 8, %v851_v5  ;;  %v6840_v31 = vpack.c.bf16 %v866_v38, %v865_v37  ;;  %v6090_v56 = vld [vmem:[%s7621_s3 + $0xa0] sm:$0xff]   ;;  %v869_v57 = vld [vmem:[#allocation2 + $0x6f] sm:$0xff] }
 0x14a   : > { %v6253_v46 = vpop.eup %6252  ;;  %v802_v0 = vmul.f32 %v6251_v61, %v6711_v18  ;;  %v2437_v61 = vld [vmem:[#allocation2 + $0x79] sm:$0xff] }
 0x14b   : > { %v6255_v1 = vpop.eup %6254  ;;  %844 = vst [vmem:[#allocation2 + $0xf0] sm:$0xff] %v804_v62  ;;  %v805_v3 = vmul.f32 %v6253_v46, %v6714_v22  ;;  %vm856_vm1 = vcmp.le.s32.totalorder %v852_v13, 14  ;;  %v2438_v46 = vld [vmem:[#allocation2 + $0x81] sm:$0xff]  ;;  %v2445_v12 = vld [vmem:[#allocation2 + $0xb9] sm:$0xff] }
 0x14c   : > { %842 = vst [vmem:[#allocation2 + $0xe0] sm:$0xff] %v802_v0  ;;  %v803_v4 = vmul.f32 %v6255_v1, %v6718_v30  ;;  %vm6793_vm4 = vmpackc.low %vm856_vm1, %vm6419_vm2  ;;  %v872_v13 = vld [vmem:[#allocation2 + $0x87] sm:$0xff]  ;;  %v882_v45 = vld [vmem:[#allocation2 + $0xd7] sm:$0xff] }
 0x14d   : > { %845 = vst [vmem:[#allocation2 + $0xf8] sm:$0xff] %v805_v3  ;;  %v1003_v6 = vpack.c.bf16 %v805_v3, %v804_v62  ;;  %v867_v62 = vld [vmem:[#allocation2 + $0x5f] sm:$0xff]  ;;  %v2436_v3 = vld [vmem:[#allocation2 + $0x71] sm:$0xff]  ;;  %v880_v40 = vld [vmem:[#allocation2 + $0xc7] sm:$0xff] }
 0x14e   : > { %843 = vst [vmem:[#allocation2 + $0xe8] sm:$0xff] %v803_v4  ;;  %v1002_v8 = vpack.c.bf16 %v803_v4, %v802_v0  ;;  %v2439_v0 = vld [vmem:[#allocation2 + $0x89] sm:$0xff]  ;;  %v6870_v1 = vpack.c.bf16 %v868_v41, %v867_v62  ;;  %v6872_v4 = vpack.c.bf16 %v870_v53, %v869_v57  ;;  %v6874_v5 = vpack.c.bf16 %v2437_v61, %v2436_v3  ;;  %v879_v34 = vld [vmem:[#allocation2 + $0xbf] sm:$0xff] }
 0x14f   : > { %v6960_v41 = vpack.c.bf16 %v880_v40, %v879_v34 }
 0x150   : > { %v6257_v11 = vpop.eup %6256  ;;  %5367 = vmatmul.mubr.bf16.gmra.mrb[56].mxu0 %v1002_v8  ;;  %5558 = vmatprep.mubr.bf16.mxu1 %v1002_v8  ;;  %v6882_v8 = vpack.c.bf16 %v2439_v0, %v2438_v46 }
 0x151   : > { %v6259_v54 = vpop.eup %6258  ;;  %v808_v9 = vmul.f32 %v6257_v11, %v6740_v55  ;;  %5370 = vmatprep.mubr.bf16.mxu0 %v1003_v6  ;;  %5559 = vmatmul.mubr.bf16.gmra.mrb[24].mxu1 %v1003_v6  ;;  %v2427_v55 = vld [vmem:[#allocation2 + $0x29] sm:$0xff] }
 0x152   : > { %v6261_v18 = vpop.eup %6260  ;;  %v806_v22 = vmul.f32 %v6259_v54, %v6743_v59  ;;  %v6088_v6 = vld [vmem:[%s7621_s3 + $0x1a8] sm:$0xff]   ;;  %v6091_v54 = vld [vmem:[%s7621_s3 + $0x1b0] sm:$0xff]  }
 0x153   : > { %v6263_v30 = vpop.eup %6262  ;;  %848 = vst [vmem:[#allocation2 + $0x110] sm:$0xff] %v808_v9  ;;  %v809_v44 = vmul.f32 %v6261_v18, %v6746_v47  ;;  %v6797_v47 = vpack.c.bf16 %v2427_v55, %v2426_v17  ;;  %v6092_v11 = vld [vmem:[%s7621_s3 + $0xa8] sm:$0xff]   ;;  %v2449_v2 = vld [vmem:[#allocation2 + $0xd9] sm:$0xff] }
 0x154   : > { %846 = vst [vmem:[#allocation2 + $0x100] sm:$0xff] %v806_v22  ;;  %v807_v14 = vmul.f32 %v6263_v30, %v6750_v7  ;;  %v860_v7 = vld [vmem:[#allocation2 + $0x27] sm:$0xff]  ;;  %v873_v18 = vld [vmem:[#allocation2 + $0x8f] sm:$0xff]  ;;  %v886_v46 = vld [vmem:[#allocation2 + $0xf7] sm:$0xff] }
 0x155   : > { %849 = vst [vmem:[#allocation2 + $0x118] sm:$0xff] %v809_v44  ;;  %v2167_v16 = vpack.c.bf16 %v809_v44, %v808_v9  ;;  %v6804_v29 = vpack.c.bf16 %v860_v7, %v859_v26  ;;  %v6093_v9 = vld [vmem:[%s7621_s3 + $0xb0] sm:$0xff]   ;;  %v2442_v30 = vld [vmem:[#allocation2 + $0xa1] sm:$0xff]  ;;  %v6095_v7 = vld [vmem:[%s7621_s3 + $0xb8] sm:$0xff]  }
 0x156   : > { %847 = vst [vmem:[#allocation2 + $0x108] sm:$0xff] %v807_v14  ;;  %v1004_v19 = vpack.c.bf16 %v807_v14, %v806_v22  ;;  %v874_v22 = vld [vmem:[#allocation2 + $0x97] sm:$0xff]  ;;  %v2443_v44 = vld [vmem:[#allocation2 + $0xa9] sm:$0xff]  ;;  %v6902_v14 = vpack.c.bf16 %v872_v13, %v871_v15  ;;  %v883_v3 = vld [vmem:[#allocation2 + $0xdf] sm:$0xff] }
 0x157   : > { %v6904_v17 = vpack.c.bf16 %v874_v22, %v873_v18  ;;  %v877_v26 = vld [vmem:[#allocation2 + $0xaf] sm:$0xff]  ;;  %v884_v61 = vld [vmem:[#allocation2 + $0xe7] sm:$0xff] }
 0x158   : > { %5371 = vmatmul.mubr.bf16.gmra.mrb[60].mxu0 %v1004_v19  ;;  %5562 = vmatprep.mubr.bf16.mxu1 %v1004_v19  ;;  %v6914_v19 = vpack.c.bf16 %v2443_v44, %v2442_v30  ;;  %v885_v62 = vld [vmem:[#allocation2 + $0xef] sm:$0xff]  ;;  %v6980_v13 = vpack.c.bf16 %v884_v61, %v883_v3  ;;  %v1441_v30 = vld [vmem:[#allocation2 + $0x19] sm:$0xff] }
 0x159   : > { %5563 = vmatmul.mubr.bf16.gmra.mrb[28].mxu1 %v2167_v16  ;;  %5390 = vmatprep.mubr.msk.bf16.mxu0 %vm6789_vm3, %v4387_v20  ;;  %v2440_v16 = vld [vmem:[#allocation2 + $0x91] sm:$0xff]  ;;  %v6113_v3 = vld [vmem:[%s7621_s3 + $0x208] sm:$0xff]  }
 0x15a   : > { %5582 = vmatprep.mubr.msk.bf16.mxu1 %vm6793_vm4, %v6797_v47  ;;  %v6906_v55 = vpack.c.bf16 %v2441_v10, %v2440_v16  ;;  %v6094_v20 = vld [vmem:[%s7621_s3 + $0x1b8] sm:$0xff]   ;;  %v3415_v59 = vld [vmem:[#allocation2 + $0x69] sm:$0xff] }
 0x15b   : > { %v2453_v0 = vld [vmem:[#allocation2 + $0xf9] sm:$0xff]  ;;  %v1440_v15 = vld [vmem:[#allocation2 + $0x11] sm:$0xff] }
 0x15c   : > { %v2456_v44 = vld [vmem:[#allocation2 + $0x111] sm:$0xff]  ;;  %v2457_v16 = vld [vmem:[#allocation2 + $0x119] sm:$0xff] }
 0x15d   : > { %v888_v10 = vld [vmem:[#allocation2 + $0x107] sm:$0xff]  ;;  %v3107_v61 = vld [vmem:[#allocation2 + $0x58] sm:$0xff] }
 0x160   : > { %5391 = vmatmul.mubr.msk.bf16.vlgmr.msra.gmra.mrb[32].mxu0 %vm6789_vm3, %v6804_v29 }
 0x161   : > { %5394 = vmatprep.mubr.msk.bf16.mxu0 %vm6789_vm3, %v6806_v58  ;;  %5583 = vmatmul.mubr.msk.bf16.vlgmr.msra.gmra.mrb[0].mxu1 %vm6793_vm4, %v6808_v60 }
 0x162   : > { %5615 = vmatpush3.bf16.msra.mxu1 %v6768_v51  ;;  %5586 = vmatprep.mubr.msk.bf16.mxu1 %vm6793_vm4, %v6816_v42  ;;  %v863_v51 = vld [vmem:[#allocation2 + $0x3f] sm:$0xff] }
 0x163   : > { %5616 = vmatprep.subr.bf16.mxu1 %v6081_v32  ;;  %5423 = vmatpush3.bf16.msra.mxu0 %v6773_v28  ;;  %v6838_v49 = vpack.c.bf16 %v864_v33, %v863_v51  ;;  %v6083_v28 = vld [vmem:[%s7621_s3 + $0x198] sm:$0xff]   ;;  %v6938_v33 = vpack.c.bf16 %v876_v24, %v875_v21  ;;  %v881_v51 = vld [vmem:[#allocation2 + $0xcf] sm:$0xff]  ;;  %v4459_v24 = vpack.c.bf16 %v1441_v30, %v1440_v15 }
 0x164   : > { %5424 = vmatprep.subr.bf16.mxu0 %v6086_v43  ;;  %v6104_v21 = vld [vmem:[%s7621_s3 + $0x1e8] sm:$0xff]   ;;  %v3110_v30 = vld [vmem:[#allocation2 + $0x70] sm:$0xff] }
 0x166   : > { %5617 = vmatpush3.bf16.msra.mxu1 %v6081_v32  ;;  %v2446_v32 = vld [vmem:[#allocation2 + $0xc1] sm:$0xff] }
 0x167   : > { %5618 = vmatprep.subr.bf16.mxu1 %v6082_v63  ;;  %5425 = vmatpush3.bf16.msra.mxu0 %v6086_v43  ;;  %v2447_v43 = vld [vmem:[#allocation2 + $0xc9] sm:$0xff] }
 0x168   : > { %5395 = vmatmul.mubr.msk.bf16.gmra.mrb[36].mxu0 %vm6789_vm3, %v6838_v49  ;;  %5426 = vmatprep.subr.bf16.mxu0 %v6087_v36  ;;  %v6948_v38 = vpack.c.bf16 %v2447_v43, %v2446_v32  ;;  %v6108_v32 = vld [vmem:[%s7621_s3 + $0xe8] sm:$0xff]   ;;  %v6110_v43 = vld [vmem:[%s7621_s3 + $0x1f8] sm:$0xff]  }
 0x169   : > { %5398 = vmatprep.mubr.msk.bf16.mxu0 %vm6789_vm3, %v6840_v31  ;;  %5587 = vmatmul.mubr.msk.bf16.gmra.mrb[4].mxu1 %vm6793_vm4, %v6842_v35 }
 0x16a   : > { %5590 = vmatprep.mubr.msk.bf16.mxu1 %vm6793_vm4, %v6850_v50  ;;  %5619 = vmatpush3.bf16.msra.mxu1 %v6082_v63  ;;  %v2444_v63 = vld [vmem:[#allocation2 + $0xb1] sm:$0xff] }
 0x16b   : > { %5620 = vmatprep.subr.bf16.mxu1 %v6083_v28  ;;  %5427 = vmatpush3.bf16.msra.mxu0 %v6087_v36  ;;  %v6940_v36 = vpack.c.bf16 %v878_v27, %v877_v26  ;;  %v6942_v37 = vpack.c.bf16 %v2445_v12, %v2444_v63  ;;  %v7002_v26 = vpack.c.bf16 %v2457_v16, %v2456_v44  ;;  %v6097_v27 = vld [vmem:[%s7621_s3 + $0x1c8] sm:$0xff]   ;;  %v6111_v63 = vld [vmem:[%s7621_s3 + $0xf8] sm:$0xff]   ;;  %v6116_v44 = vld [vmem:[%s7621_s3 + $0x220] sm:$0xff]  }
 0x16c   : > { %5428 = vmatprep.subr.bf16.mxu0 %v6089_v52  ;;  %v6102_v12 = vld [vmem:[%s7621_s3 + $0xc8] sm:$0xff]  }
 0x16d   : > { %v3113_v16 = vld [vmem:[#allocation2 + $0x88] sm:$0xff] }
 0x16e   : > { %5621 = vmatpush3.bf16.msra.mxu1 %v6083_v28  ;;  %v2450_v28 = vld [vmem:[#allocation2 + $0xe1] sm:$0xff] }
 0x16f   : > { %5622 = vmatprep.subr.bf16.mxu1 %v6085_v39  ;;  %5429 = vmatpush3.bf16.msra.mxu0 %v6089_v52  ;;  %v2451_v52 = vld [vmem:[#allocation2 + $0xe9] sm:$0xff] }
 0x170   : > { %5399 = vmatmul.mubr.msk.bf16.gmra.mrb[40].mxu0 %vm6789_vm3, %v6870_v1  ;;  %5430 = vmatprep.subr.bf16.mxu0 %v6090_v56  ;;  %v6969_v53 = vpack.c.bf16 %v2451_v52, %v2450_v28  ;;  %v3102_v28 = vld [vmem:[#allocation2 + $0x30] sm:$0xff] }
 0x171   : > { %5402 = vmatprep.mubr.msk.bf16.mxu0 %vm6789_vm3, %v6872_v4  ;;  %5591 = vmatmul.mubr.msk.bf16.gmra.mrb[8].mxu1 %vm6793_vm4, %v6874_v5 }
 0x172   : > { %5594 = vmatprep.mubr.msk.bf16.mxu1 %vm6793_vm4, %v6882_v8  ;;  %5623 = vmatpush3.bf16.msra.mxu1 %v6085_v39  ;;  %v2448_v39 = vld [vmem:[#allocation2 + $0xd1] sm:$0xff] }
 0x173   : > { %5624 = vmatprep.subr.bf16.mxu1 %v6088_v6  ;;  %5431 = vmatpush3.bf16.msra.mxu0 %v6090_v56  ;;  %v6962_v56 = vpack.c.bf16 %v882_v45, %v881_v51  ;;  %v6964_v57 = vpack.c.bf16 %v2449_v2, %v2448_v39  ;;  %v2794_v51 = vld [vmem:[#allocation2 + $0x11f] sm:$0xff]  ;;  %v2795_v45 = vld [vmem:[#allocation2 + $0x127] sm:$0xff] }
 0x174   : > { %5432 = vmatprep.subr.bf16.mxu0 %v6092_v11  ;;  %v3103_v2 = vld [vmem:[#allocation2 + $0x38] sm:$0xff]  ;;  %v4744_v34 = vpack.c.bf16 %v2795_v45, %v2794_v51  ;;  %v3105_v39 = vld [vmem:[#allocation2 + $0x48] sm:$0xff]  ;;  %v3128_v45 = vld [vmem:[#allocation2 + $0x100] sm:$0xff] }
 0x175   : > { %v3134_v52 = vpack.c.bf16 %v3103_v2, %v3102_v28 }
 0x176   : > { %5625 = vmatpush3.bf16.msra.mxu1 %v6088_v6  ;;  %v2454_v6 = vld [vmem:[#allocation2 + $0x101] sm:$0xff] }
 0x177   : > { %5626 = vmatprep.subr.bf16.mxu1 %v6091_v54  ;;  %5433 = vmatpush3.bf16.msra.mxu0 %v6092_v11  ;;  %v2455_v11 = vld [vmem:[#allocation2 + $0x109] sm:$0xff] }
 0x178   : > { %5403 = vmatmul.mubr.msk.bf16.gmra.mrb[44].mxu0 %vm6789_vm3, %v6902_v14  ;;  %5434 = vmatprep.subr.bf16.mxu0 %v6093_v9  ;;  %v6989_v22 = vpack.c.bf16 %v2455_v11, %v2454_v6  ;;  %v3109_v11 = vld [vmem:[#allocation2 + $0x68] sm:$0xff] }
 0x179   : > { %5406 = vmatprep.mubr.msk.bf16.mxu0 %vm6789_vm3, %v6904_v17  ;;  %5595 = vmatmul.mubr.msk.bf16.gmra.mrb[12].mxu1 %vm6793_vm4, %v6906_v55 }
 0x17a   : > { %5598 = vmatprep.mubr.msk.bf16.mxu1 %vm6793_vm4, %v6914_v19  ;;  %5627 = vmatpush3.bf16.msra.mxu1 %v6091_v54  ;;  %v2452_v54 = vld [vmem:[#allocation2 + $0xf1] sm:$0xff] }
 0x17b   : > { %5628 = vmatprep.subr.bf16.mxu1 %v6094_v20  ;;  %5435 = vmatpush3.bf16.msra.mxu0 %v6093_v9  ;;  %v6982_v9 = vpack.c.bf16 %v886_v46, %v885_v62  ;;  %v6984_v18 = vpack.c.bf16 %v2453_v0, %v2452_v54  ;;  %v3104_v62 = vld [vmem:[#allocation2 + $0x40] sm:$0xff]  ;;  %v3106_v0 = vld [vmem:[#allocation2 + $0x50] sm:$0xff]  ;;  %v3111_v54 = vld [vmem:[#allocation2 + $0x78] sm:$0xff] }
 0x17c   : > { %5436 = vmatprep.subr.bf16.mxu0 %v6095_v7  ;;  %v3135_v46 = vpack.c.bf16 %v3105_v39, %v3104_v62  ;;  %v3136_v6 = vpack.c.bf16 %v3107_v61, %v3106_v0  ;;  %v3408_v39 = vld [vmem:[#allocation2 + $0x31] sm:$0xff]  ;;  %v3411_v62 = vld [vmem:[#allocation2 + $0x49] sm:$0xff] }
 0x17e   : > { %5629 = vmatpush3.bf16.msra.mxu1 %v6094_v20  ;;  %v887_v20 = vld [vmem:[#allocation2 + $0xff] sm:$0xff] }
 0x17f   : > { %5437 = vmatpush3.bf16.msra.mxu0 %v6095_v7  ;;  %5662 = vmatprep.subr.bf16.mxu1 %v6931_v25  ;;  %v7000_v7 = vpack.c.bf16 %v888_v10, %v887_v20  ;;  %v3108_v10 = vld [vmem:[#allocation2 + $0x60] sm:$0xff]  ;;  %v3115_v20 = vld [vmem:[#allocation2 + $0x98] sm:$0xff] }
 0x180   : > { %5407 = vmatmul.mubr.msk.bf16.gmra.mrb[48].mxu0 %vm6789_vm3, %v6938_v33  ;;  %5470 = vmatprep.subr.bf16.mxu0 %v6936_v48  ;;  %v3137_v15 = vpack.c.bf16 %v3109_v11, %v3108_v10  ;;  %v3416_v11 = vld [vmem:[#allocation2 + $0x71] sm:$0xff]  ;;  %v3418_v10 = vld [vmem:[#allocation2 + $0x81] sm:$0xff] }
 0x181   : > { %5410 = vmatprep.mubr.msk.bf16.mxu0 %vm6789_vm3, %v6940_v36  ;;  %5599 = vmatmul.mubr.msk.bf16.gmra.mrb[16].mxu1 %vm6793_vm4, %v6942_v37 }
 0x182   : > { %5602 = vmatprep.mubr.msk.bf16.mxu1 %vm6793_vm4, %v6948_v38 }
 0x188   : > { %5411 = vmatmul.mubr.msk.bf16.gmra.mrb[52].mxu0 %vm6789_vm3, %v6960_v41 }
 0x189   : > { %5414 = vmatprep.mubr.msk.bf16.mxu0 %vm6789_vm3, %v6962_v56  ;;  %5603 = vmatmul.mubr.msk.bf16.gmra.mrb[20].mxu1 %vm6793_vm4, %v6964_v57 }
 0x18a   : > { %5606 = vmatprep.mubr.msk.bf16.mxu1 %vm6793_vm4, %v6969_v53 }
 0x190   : > { %5415 = vmatmul.mubr.msk.bf16.gmra.mrb[56].mxu0 %vm6789_vm3, %v6980_v13 }
 0x191   : > { %5418 = vmatprep.mubr.msk.bf16.mxu0 %vm6789_vm3, %v6982_v9  ;;  %5607 = vmatmul.mubr.msk.bf16.gmra.mrb[24].mxu1 %vm6793_vm4, %v6984_v18 }
 0x192   : > { %5610 = vmatprep.mubr.msk.bf16.mxu1 %vm6793_vm4, %v6989_v22 }
 0x198   : > { %5419 = vmatmul.mubr.msk.bf16.gmra.mrb[60].mxu0 %vm6789_vm3, %v7000_v7 }
 0x199   : > { %5438 = vmatprep.mubr.msk.bf16.mxu0 %vm6793_vm4, %v4459_v24  ;;  %5611 = vmatmul.mubr.msk.bf16.gmra.mrb[28].mxu1 %vm6793_vm4, %v7002_v26  ;;  %v3112_v24 = vld [vmem:[#allocation2 + $0x80] sm:$0xff] }
 0x19a   : > { %5630 = vmatprep.mubr.msk.bf16.mxu1 %vm6789_vm3, %v6806_v58 }
 0x1a0   : > { %5439 = vmatmul.mubr.msk.bf16.vlgmr.msra.gmra.mrb[32].mxu0 %vm6793_vm4, %v6797_v47  ;;  %v6098_v47 = vld [vmem:[%s7621_s3 + $0x1d0] sm:$0xff]  }
 0x1a1   : > { %5442 = vmatprep.mubr.msk.bf16.mxu0 %vm6793_vm4, %v6808_v60  ;;  %5631 = vmatmul.mubr.msk.bf16.vlgmr.msra.gmra.mrb[0].mxu1 %vm6789_vm3, %v6838_v49  ;;  %v6103_v60 = vld [vmem:[%s7621_s3 + $0xd0] sm:$0xff]  }
 0x1a2   : > { %5663 = vmatpush3.bf16.msra.mxu1 %v6931_v25  ;;  %5634 = vmatprep.mubr.msk.bf16.mxu1 %vm6789_vm3, %v6840_v31  ;;  %v6099_v25 = vld [vmem:[%s7621_s3 + $0x1d8] sm:$0xff]  }
 0x1a3   : > { %5664 = vmatprep.subr.bf16.mxu1 %v6097_v27  ;;  %5471 = vmatpush3.bf16.msra.mxu0 %v6936_v48  ;;  %v6105_v48 = vld [vmem:[%s7621_s3 + $0xd8] sm:$0xff]  }
 0x1a4   : > { %5472 = vmatprep.subr.bf16.mxu0 %v6102_v12 }
 0x1a6   : > { %5665 = vmatpush3.bf16.msra.mxu1 %v6097_v27  ;;  %v3139_v27 = vpack.c.bf16 %v3113_v16, %v3112_v24  ;;  %v3422_v16 = vld [vmem:[#allocation2 + $0xa1] sm:$0xff] }
 0x1a7   : > { %5666 = vmatprep.subr.bf16.mxu1 %v6098_v47  ;;  %5473 = vmatpush3.bf16.msra.mxu0 %v6102_v12  ;;  %v3114_v12 = vld [vmem:[#allocation2 + $0x90] sm:$0xff] }
 0x1a8   : > { %5443 = vmatmul.mubr.msk.bf16.gmra.mrb[36].mxu0 %vm6793_vm4, %v6816_v42  ;;  %5474 = vmatprep.subr.bf16.mxu0 %v6103_v60  ;;  %v6101_v42 = vld [vmem:[%s7621_s3 + $0x1e0] sm:$0xff]  }
 0x1a9   : > { %5446 = vmatprep.mubr.msk.bf16.mxu0 %vm6793_vm4, %v6842_v35  ;;  %5635 = vmatmul.mubr.msk.bf16.gmra.mrb[4].mxu1 %vm6789_vm3, %v6870_v1  ;;  %v6106_v35 = vld [vmem:[%s7621_s3 + $0xe0] sm:$0xff]  }
 0x1aa   : > { %5638 = vmatprep.mubr.msk.bf16.mxu1 %vm6789_vm3, %v6872_v4  ;;  %5667 = vmatpush3.bf16.msra.mxu1 %v6098_v47  ;;  %v6118_v47 = vld [vmem:[%s7621_s3 + $0x230] sm:$0xff]  }
 0x1ab   : > { %5668 = vmatprep.subr.bf16.mxu1 %v6099_v25  ;;  %5475 = vmatpush3.bf16.msra.mxu0 %v6103_v60  ;;  %v3117_v60 = vld [vmem:[#allocation2 + $0xa8] sm:$0xff] }
 0x1ac   : > { %5476 = vmatprep.subr.bf16.mxu0 %v6105_v48 }
 0x1ae   : > { %5669 = vmatpush3.bf16.msra.mxu1 %v6099_v25  ;;  %v3119_v25 = vld [vmem:[#allocation2 + $0xb8] sm:$0xff] }
 0x1af   : > { %5670 = vmatprep.subr.bf16.mxu1 %v6101_v42  ;;  %5477 = vmatpush3.bf16.msra.mxu0 %v6105_v48  ;;  %v3116_v48 = vld [vmem:[#allocation2 + $0xa0] sm:$0xff] }
 0x1b0   : > { %5447 = vmatmul.mubr.msk.bf16.gmra.mrb[40].mxu0 %vm6793_vm4, %v6850_v50  ;;  %5478 = vmatprep.subr.bf16.mxu0 %v6106_v35  ;;  %v6107_v50 = vld [vmem:[%s7621_s3 + $0x1f0] sm:$0xff]  }
 0x1b1   : > { %5450 = vmatprep.mubr.msk.bf16.mxu0 %vm6793_vm4, %v6874_v5  ;;  %5639 = vmatmul.mubr.msk.bf16.gmra.mrb[8].mxu1 %vm6789_vm3, %v6902_v14  ;;  %v6109_v5 = vld [vmem:[%s7621_s3 + $0xf0] sm:$0xff]  }
 0x1b2   : > { %5642 = vmatprep.mubr.msk.bf16.mxu1 %vm6789_vm3, %v6904_v17  ;;  %5671 = vmatpush3.bf16.msra.mxu1 %v6101_v42  ;;  %v3141_v42 = vpack.c.bf16 %v3117_v60, %v3116_v48 }
 0x1b3   : > { %5672 = vmatprep.subr.bf16.mxu1 %v6104_v21  ;;  %5479 = vmatpush3.bf16.msra.mxu0 %v6106_v35  ;;  %v3118_v35 = vld [vmem:[#allocation2 + $0xb0] sm:$0xff] }
 0x1b4   : > { %5480 = vmatprep.subr.bf16.mxu0 %v6108_v32 }
 0x1b6   : > { %5673 = vmatpush3.bf16.msra.mxu1 %v6104_v21  ;;  %v3121_v21 = vld [vmem:[#allocation2 + $0xc8] sm:$0xff] }
 0x1b7   : > { %5674 = vmatprep.subr.bf16.mxu1 %v6107_v50  ;;  %5481 = vmatpush3.bf16.msra.mxu0 %v6108_v32  ;;  %v3123_v32 = vld [vmem:[#allocation2 + $0xd8] sm:$0xff] }
 0x1b8   : > { %5451 = vmatmul.mubr.msk.bf16.gmra.mrb[44].mxu0 %vm6793_vm4, %v6882_v8  ;;  %5482 = vmatprep.subr.bf16.mxu0 %v6109_v5  ;;  %v6112_v8 = vld [vmem:[%s7621_s3 + $0x200] sm:$0xff]  }
 0x1b9   : > { %5454 = vmatprep.mubr.msk.bf16.mxu0 %vm6793_vm4, %v6906_v55  ;;  %5643 = vmatmul.mubr.msk.bf16.gmra.mrb[12].mxu1 %vm6789_vm3, %v6938_v33  ;;  %v2792_v55 = vld [vmem:[#allocation2 + $0x10f] sm:$0xff] }
 0x1ba   : > { %5646 = vmatprep.mubr.msk.bf16.mxu1 %vm6789_vm3, %v6940_v36  ;;  %5675 = vmatpush3.bf16.msra.mxu1 %v6107_v50  ;;  %v3120_v50 = vld [vmem:[#allocation2 + $0xc0] sm:$0xff] }
 0x1bb   : > { %5676 = vmatprep.subr.bf16.mxu1 %v6110_v43  ;;  %5483 = vmatpush3.bf16.msra.mxu0 %v6109_v5  ;;  %v3143_v5 = vpack.c.bf16 %v3121_v21, %v3120_v50 }
 0x1bc   : > { %5484 = vmatprep.subr.bf16.mxu0 %v6111_v63 }
 0x1be   : > { %5677 = vmatpush3.bf16.msra.mxu1 %v6110_v43  ;;  %v3122_v43 = vld [vmem:[#allocation2 + $0xd0] sm:$0xff] }
 0x1bf   : > { %5485 = vmatpush3.bf16.msra.mxu0 %v6111_v63  ;;  %5710 = vmatprep.subr.bf16.mxu1 %v6112_v8  ;;  %v3127_v63 = vld [vmem:[#allocation2 + $0xf8] sm:$0xff] }
 0x1c0   : > { %5455 = vmatmul.mubr.msk.bf16.gmra.mrb[48].mxu0 %vm6793_vm4, %v6914_v19  ;;  %v2793_v19 = vld [vmem:[#allocation2 + $0x117] sm:$0xff] }
 0x1c1   : > { %5458 = vmatprep.mubr.msk.bf16.mxu0 %vm6793_vm4, %v6942_v37  ;;  %5647 = vmatmul.mubr.msk.bf16.gmra.mrb[16].mxu1 %vm6789_vm3, %v6960_v41  ;;  %v7137_v40 = vpack.c.bf16 %v2793_v19, %v2792_v55  ;;  %v3126_v19 = vld [vmem:[#allocation2 + $0xf0] sm:$0xff] }
 0x1c2   : > { %5650 = vmatprep.mubr.msk.bf16.mxu1 %vm6789_vm3, %v6962_v56  ;;  %v3146_v51 = vpack.c.bf16 %v3127_v63, %v3126_v19 }
 0x1c8   : > { %5459 = vmatmul.mubr.msk.bf16.gmra.mrb[52].mxu0 %vm6793_vm4, %v6948_v38 }
 0x1c9   : > { %5462 = vmatprep.mubr.msk.bf16.mxu0 %vm6793_vm4, %v6964_v57  ;;  %5651 = vmatmul.mubr.msk.bf16.gmra.mrb[20].mxu1 %vm6789_vm3, %v6980_v13 }
 0x1ca   : > { %5654 = vmatprep.mubr.msk.bf16.mxu1 %vm6789_vm3, %v6982_v9 }
 0x1d0   : > { %5463 = vmatmul.mubr.msk.bf16.gmra.mrb[56].mxu0 %vm6793_vm4, %v6969_v53 }
 0x1d1   : > { %5466 = vmatprep.mubr.msk.bf16.mxu0 %vm6793_vm4, %v6984_v18  ;;  %5655 = vmatmul.mubr.msk.bf16.gmra.mrb[24].mxu1 %vm6789_vm3, %v7000_v7 }
 0x1d2   : > { %5658 = vmatprep.mubr.msk.bf16.mxu1 %vm6789_vm3, %v7137_v40 }
 0x1d8   : > { %5467 = vmatmul.mubr.msk.bf16.gmra.mrb[60].mxu0 %vm6793_vm4, %v6989_v22 }
 0x1d9   : > { %5486 = vmatprep.mubr.msk.bf16.mxu0 %vm6789_vm3, %v6804_v29  ;;  %5659 = vmatmul.mubr.msk.bf16.gmra.mrb[28].mxu1 %vm6789_vm3, %v4744_v34  ;;  %v6114_v29 = vld [vmem:[%s7621_s3 + $0x210] sm:$0xff]  }
 0x1da   : > { %5678 = vmatprep.mubr.bf16.mxu1 %v3134_v52  ;;  %v3130_v34 = vld [vmem:[#allocation2 + $0x110] sm:$0xff]  ;;  %v3409_v52 = vld [vmem:[#allocation2 + $0x39] sm:$0xff] }
 0x1db   : > { %v4795_v61 = vpack.c.bf16 %v3409_v52, %v3408_v39 }
 0x1e0   : > { %5487 = vmatmul.mubr.msk.bf16.vlgmr.msra.gmra.mrb[32].mxu0 %vm6789_vm3, %v6806_v58  ;;  %v6115_v58 = vld [vmem:[%s7621_s3 + $0x218] sm:$0xff]  }
 0x1e1   : > { %5490 = vmatprep.mubr.msk.bf16.mxu0 %vm6789_vm3, %v6838_v49  ;;  %5679 = vmatmul.mubr.bf16.vlgmr.msra.gmra.mrb[0].mxu1 %v3135_v46  ;;  %v3138_v49 = vpack.c.bf16 %v3111_v54, %v3110_v30  ;;  %v3413_v46 = vld [vmem:[#allocation2 + $0x59] sm:$0xff] }
 0x1e2   : > { %5711 = vmatpush3.bf16.msra.mxu1 %v6112_v8  ;;  %5682 = vmatprep.mubr.bf16.mxu1 %v3136_v6  ;;  %v3124_v8 = vld [vmem:[#allocation2 + $0xe0] sm:$0xff] }
 0x1e3   : > { %5712 = vmatprep.subr.bf16.mxu1 %v6113_v3  ;;  %v3414_v6 = vld [vmem:[#allocation2 + $0x61] sm:$0xff]  ;;  %v3421_v30 = vld [vmem:[#allocation2 + $0x99] sm:$0xff] }
 0x1e6   : > { %5713 = vmatpush3.bf16.msra.mxu1 %v6113_v3 }
 0x1e7   : > { %5714 = vmatprep.subr.bf16.mxu1 %v6114_v29 }
 0x1e8   : > { %5491 = vmatmul.mubr.msk.bf16.gmra.mrb[36].mxu0 %vm6789_vm3, %v6840_v31  ;;  %v6117_v31 = vld [vmem:[%s7621_s3 + $0x228] sm:$0xff]  }
 0x1e9   : > { %5494 = vmatprep.mubr.msk.bf16.mxu0 %vm6789_vm3, %v6870_v1  ;;  %5683 = vmatmul.mubr.bf16.gmra.mrb[4].mxu1 %v3137_v15  ;;  %v3140_v1 = vpack.c.bf16 %v3115_v20, %v3114_v12  ;;  %v3419_v15 = vld [vmem:[#allocation2 + $0x89] sm:$0xff] }
 0x1ea   : > { %5686 = vmatprep.mubr.bf16.mxu1 %v3138_v49  ;;  %5715 = vmatpush3.bf16.msra.mxu1 %v6114_v29  ;;  %v4804_v29 = vpack.c.bf16 %v3415_v59, %v3414_v6  ;;  %v3420_v49 = vld [vmem:[#allocation2 + $0x91] sm:$0xff]  ;;  %v3423_v20 = vld [vmem:[#allocation2 + $0xa9] sm:$0xff] }
 0x1eb   : > { %5716 = vmatprep.subr.bf16.mxu1 %v6115_v58  ;;  %v4816_v24 = vpack.c.bf16 %v3423_v20, %v3422_v16 }
 0x1ee   : > { %5717 = vmatpush3.bf16.msra.mxu1 %v6115_v58  ;;  %v4810_v58 = vpack.c.bf16 %v3419_v15, %v3418_v10 }
 0x1ef   : > { %5718 = vmatprep.subr.bf16.mxu1 %v6116_v44 }
 0x1f0   : > { %5495 = vmatmul.mubr.msk.bf16.gmra.mrb[40].mxu0 %vm6789_vm3, %v6872_v4  ;;  %v6119_v4 = vld [vmem:[%s7621_s3 + $0x238] sm:$0xff]  }
 0x1f1   : > { %5498 = vmatprep.mubr.msk.bf16.mxu0 %vm6789_vm3, %v6902_v14  ;;  %5687 = vmatmul.mubr.bf16.gmra.mrb[8].mxu1 %v3139_v27  ;;  %v3142_v14 = vpack.c.bf16 %v3119_v25, %v3118_v35 }
 0x1f2   : > { %5690 = vmatprep.mubr.bf16.mxu1 %v3140_v1  ;;  %5719 = vmatpush3.bf16.msra.mxu1 %v6116_v44  ;;  %v4813_v44 = vpack.c.bf16 %v3421_v30, %v3420_v49 }
 0x1f3   : > { %5720 = vmatprep.subr.bf16.mxu1 %v6117_v31 }
 0x1f6   : > { %5721 = vmatpush3.bf16.msra.mxu1 %v6117_v31 }
 0x1f7   : > { %5722 = vmatprep.subr.bf16.mxu1 %v6118_v47 }
 0x1f8   : > { %5499 = vmatmul.mubr.msk.bf16.gmra.mrb[44].mxu0 %vm6789_vm3, %v6904_v17  ;;  %v3144_v17 = vpack.c.bf16 %v3123_v32, %v3122_v43 }
 0x1f9   : > { %5502 = vmatprep.mubr.msk.bf16.mxu0 %vm6789_vm3, %v6938_v33  ;;  %5691 = vmatmul.mubr.bf16.gmra.mrb[12].mxu1 %v3141_v42  ;;  %v3125_v33 = vld [vmem:[#allocation2 + $0xe8] sm:$0xff] }
 0x1fa   : > { %5694 = vmatprep.mubr.bf16.mxu1 %v3142_v14  ;;  %5723 = vmatpush3.bf16.msra.mxu1 %v6118_v47  ;;  %v3145_v55 = vpack.c.bf16 %v3125_v33, %v3124_v8 }
 0x1fb   : > { %5724 = vmatprep.subr.bf16.mxu1 %v6119_v4 }
 0x1fe   : > { %5725 = vmatpush3.bf16.msra.mxu1 %v6119_v4 }
 0x200   : > { %5503 = vmatmul.mubr.msk.bf16.gmra.mrb[48].mxu0 %vm6789_vm3, %v6940_v36  ;;  %v3129_v36 = vld [vmem:[#allocation2 + $0x108] sm:$0xff] }
 0x201   : > { %5506 = vmatprep.mubr.msk.bf16.mxu0 %vm6789_vm3, %v6960_v41  ;;  %5695 = vmatmul.mubr.bf16.gmra.mrb[16].mxu1 %v3143_v5  ;;  %v3131_v41 = vld [vmem:[#allocation2 + $0x118] sm:$0xff]  ;;  %v3147_v2 = vpack.c.bf16 %v3129_v36, %v3128_v45 }
 0x202   : > { %5698 = vmatprep.mubr.bf16.mxu1 %v3144_v17  ;;  %v3148_v28 = vpack.c.bf16 %v3131_v41, %v3130_v34  ;;  %v7312_v34 = vld [vmem:[%s7622_s4] ss:$0 sm:$0xff] }
 0x208   : > { %5507 = vmatmul.mubr.msk.bf16.gmra.mrb[52].mxu0 %vm6789_vm3, %v6962_v56  ;;  %v6392_v56 = vld [vmem:[#allocation2] sm:$0xff] }
 0x209   : > { %5510 = vmatprep.mubr.msk.bf16.mxu0 %vm6789_vm3, %v6980_v13  ;;  %5699 = vmatmul.mubr.bf16.gmra.mrb[20].mxu1 %v3145_v55  ;;  %v3149_v13 = vpack.c.bf16 %v6392_v56, %v6392_v56 }
 0x20a   : > { %5702 = vmatprep.mubr.bf16.mxu1 %v3146_v51 }
 0x210   : > { %5511 = vmatmul.mubr.msk.bf16.gmra.mrb[56].mxu0 %vm6789_vm3, %v6982_v9  ;;  %v3410_v9 = vld [vmem:[#allocation2 + $0x41] sm:$0xff] }
 0x211   : > { %5514 = vmatprep.mubr.msk.bf16.mxu0 %vm6789_vm3, %v7000_v7  ;;  %5703 = vmatmul.mubr.bf16.gmra.mrb[24].mxu1 %v3147_v2  ;;  %v4798_v0 = vpack.c.bf16 %v3411_v62, %v3410_v9  ;;  %v3412_v7 = vld [vmem:[#allocation2 + $0x51] sm:$0xff] }
 0x212   : > { %5706 = vmatprep.mubr.bf16.mxu1 %v3148_v28  ;;  %v4801_v3 = vpack.c.bf16 %v3413_v46, %v3412_v7 }
 0x218   : > { %5515 = vmatmul.mubr.msk.bf16.gmra.mrb[60].mxu0 %vm6789_vm3, %v7137_v40  ;;  %v3417_v40 = vld [vmem:[#allocation2 + $0x79] sm:$0xff] }
 0x219   : > { %5707 = vmatmul.mubr.bf16.gmra.mrb[28].mxu1 %v3149_v13  ;;  %v4807_v54 = vpack.c.bf16 %v3417_v40, %v3416_v11 }
 0x21a   : > { %5726 = vmatprep.mubr.msk.bf16.mxu1 %vm6793_vm4, %v4795_v61 }
 0x221   : > { %5727 = vmatmul.mubr.msk.bf16.vlgmr.msra.gmra.mrb[0].mxu1 %vm6793_vm4, %v4798_v0 }
 0x222   : > { %5730 = vmatprep.mubr.msk.bf16.mxu1 %vm6793_vm4, %v4801_v3 }
 0x229   : > { %5731 = vmatmul.mubr.msk.bf16.gmra.mrb[4].mxu1 %vm6793_vm4, %v4804_v29 }
 0x22a   : > { %5734 = vmatprep.mubr.msk.bf16.mxu1 %vm6793_vm4, %v4807_v54 }
 0x231   : > { %5735 = vmatmul.mubr.msk.bf16.gmra.mrb[8].mxu1 %vm6793_vm4, %v4810_v58 }
 0x232   : > { %5738 = vmatprep.mubr.msk.bf16.mxu1 %vm6793_vm4, %v4813_v44 }
 0x239   : > { %5739 = vmatmul.mubr.msk.bf16.gmra.mrb[12].mxu1 %vm6793_vm4, %v4816_v24 }
 0x23a   : > { %5742 = vmatprep.mubr.msk.bf16.mxu1 %vm6793_vm4, %v6942_v37  ;;  %v3438_v37 = vld [vmem:[#allocation2 + $0x121] sm:$0xff] }
 0x241   : > { %5743 = vmatmul.mubr.msk.bf16.gmra.mrb[16].mxu1 %vm6793_vm4, %v6948_v38  ;;  %v3439_v38 = vld [vmem:[#allocation2 + $0x129] sm:$0xff] }
 0x242   : > { %5746 = vmatprep.mubr.msk.bf16.mxu1 %vm6793_vm4, %v6964_v57  ;;  %v4840_v27 = vpack.c.bf16 %v3439_v38, %v3438_v37 }
 0x249   : > { %5747 = vmatmul.mubr.msk.bf16.gmra.mrb[20].mxu1 %vm6793_vm4, %v6969_v53 }
 0x24a   : > { %5750 = vmatprep.mubr.msk.bf16.mxu1 %vm6793_vm4, %v6984_v18 }
 0x251   : > { %5751 = vmatmul.mubr.msk.bf16.gmra.mrb[24].mxu1 %vm6793_vm4, %v6989_v22 }
 0x252   : > { %5754 = vmatprep.mubr.msk.bf16.mxu1 %vm6793_vm4, %v7002_v26 }
 0x259   : > { %5755 = vmatmul.mubr.msk.bf16.gmra.mrb[28].mxu1 %vm6793_vm4, %v4840_v27 }
 0x2b3   : > { %v5488_v57 = vpop.f32.mrb[32].mxu0 }
 0x2b4   : > { %v1961_v53 = vpop.f32.mrb[33].mxu0 }
 0x2b5   : > { %v5489_v12 = vpop.f32.mrb[34].mxu0 }
 0x2b6   : > { %v1964_v31 = vpop.f32.mrb[35].mxu0 }
 0x2bb   : > { %v5492_v1 = vpop.f32.mrb[36].mxu0 }
 0x2bc   : > { %v1977_v18 = vpop.f32.mrb[37].mxu0 }
 0x2bd   : > { %v5493_v47 = vpop.f32.mrb[38].mxu0 }
 0x2be   : > { %v1980_v60 = vpop.f32.mrb[39].mxu0 }
 0x2c3   : > { %v7261_v25 = vpop.f32.mrb[40].mxu0 }
 0x2c4   : > { %v7263_v22 = vpop.f32.mrb[41].mxu0 }
 0x2c5   : > { %v7265_v48 = vpop.f32.mrb[42].mxu0 }
 0x2c6   : > { %v7267_v26 = vpop.f32.mrb[43].mxu0 }
 0x2cb   : > { %v7269_v42 = vpop.f32.mrb[44].mxu0 }
 0x2cc   : > { %v7271_v23 = vpop.f32.mrb[45].mxu0 }
 0x2cd   : > { %v7273_v35 = vpop.f32.mrb[46].mxu0 }
 0x2ce   : > { %v7275_v4 = vpop.f32.mrb[47].mxu0 }
 0x2d3   : > { %v7277_v14 = vpop.f32.mrb[48].mxu0 }
 0x2d4   : > { %v7279_v21 = vpop.f32.mrb[49].mxu0 }
 0x2d5   : > { %v7281_v32 = vpop.f32.mrb[50].mxu0 }
 0x2d6   : > { %v7283_v50 = vpop.f32.mrb[51].mxu0 }
 0x2db   : > { %v7285_v5 = vpop.f32.mrb[52].mxu0 }
 0x2dc   : > { %v7287_v43 = vpop.f32.mrb[53].mxu0 }
 0x2dd   : > { %v7289_v17 = vpop.f32.mrb[54].mxu0 }
 0x2de   : > { %v7291_v33 = vpop.f32.mrb[55].mxu0 }
 0x2e3   : > { %v7293_v63 = vpop.f32.mrb[56].mxu0 }
 0x2e4   : > { %v7295_v8 = vpop.f32.mrb[57].mxu0 }
 0x2e5   : > { %v7297_v55 = vpop.f32.mrb[58].mxu0 }
 0x2e6   : > { %v7299_v19 = vpop.f32.mrb[59].mxu0 }
 0x2eb   : > { %v7301_v51 = vpop.f32.mrb[60].mxu0 }
 0x2ec   : > { %v7303_v36 = vpop.f32.mrb[61].mxu0 }
 0x2ed   : > { %v7305_v41 = vpop.f32.mrb[62].mxu0 }
 0x2ee   : > { %v7307_v45 = vpop.f32.mrb[63].mxu0 }
 0x2f4   : > { %v5728_v2 = vpop.f32.mrb[0].mxu1 }
 0x2f5   : > { %v5758_v28 = vadd.f32 %v5728_v2, %v5488_v57  ;;  %v3587_v56 = vpop.f32.mrb[1].mxu1 }
 0x2f6   : > { %v5759_v13 = vadd.f32 %v3587_v56, %v1961_v53  ;;  %v5729_v52 = vpop.f32.mrb[2].mxu1 }
 0x2f7   : > { %v7315_v39 = vadd.f32 %v5758_v28, %v7312_v34  ;;  %v5760_v61 = vadd.f32 %v5729_v52, %v5489_v12  ;;  %v3590_v9 = vpop.f32.mrb[3].mxu1  ;;  %v7353_v28 = vld [vmem:[%s6475_s29 + $0x8] sm:$0xff]  }
 0x2f8   : > { %v7318_v62 = vadd.f32 %v5759_v13, %v7312_v34  ;;  %v5761_v46 = vadd.f32 %v3590_v9, %v1964_v31  ;;  %v7347_v31 = vld [vmem:[%s6475_s29] sm:$0xff]   ;;  %v4011_v56 = vunpack.c.l.bf16 %v7353_v28 }
 0x2f9   : > { %v4845_v0 = vmul.f32 -1.442695, %v7315_v39  ;;  %v7322_v7 = vadd.f32 %v5760_v61, %v7312_v34 }
 0x2fa   : > { %v4843_v3 = vmul.f32 -1.442695, %v7318_v62  ;;  %v7326_v6 = vadd.f32 %v5761_v46, %v7312_v34  ;;  %v4012_v46 = vunpack.c.h.bf16 %v7353_v28 }
 0x2fb   : > { %6264 = vpow2.f32 %v4845_v0  ;;  %v4846_v59 = vmul.f32 -1.442695, %v7322_v7 }
 0x2fc   : > { %6266 = vpow2.f32 %v4843_v3  ;;  %v4844_v40 = vmul.f32 -1.442695, %v7326_v6  ;;  %v5732_v29 = vpop.f32.mrb[4].mxu1 }
 0x2fd   : > { %6268 = vpow2.f32 %v4846_v59  ;;  %v5762_v11 = vadd.f32 %v5732_v29, %v5492_v1  ;;  %v3603_v54 = vpop.f32.mrb[5].mxu1  ;;  %v4009_v1 = vunpack.c.l.bf16 %v7347_v31 }
 0x2fe   : > { %6270 = vpow2.f32 %v4844_v40  ;;  %v5763_v10 = vadd.f32 %v3603_v54, %v1977_v18  ;;  %v5733_v15 = vpop.f32.mrb[6].mxu1  ;;  %v4010_v18 = vunpack.c.h.bf16 %v7347_v31 }
 0x2ff   : > { %v7331_v30 = vadd.f32 %v5762_v11, %v7312_v34  ;;  %v5764_v58 = vadd.f32 %v5733_v15, %v5493_v47  ;;  %v3606_v49 = vpop.f32.mrb[7].mxu1 }
 0x300   : > { %v7334_v44 = vadd.f32 %v5763_v10, %v7312_v34  ;;  %v5765_v16 = vadd.f32 %v3606_v49, %v1980_v60 }
 0x301   : > { %v4849_v20 = vmul.f32 -1.442695, %v7331_v30  ;;  %v7338_v24 = vadd.f32 %v5764_v58, %v7312_v34  ;;  %v7371_v58 = vld [vmem:[%s6475_s29 + $0x10] sm:$0xff]  }
 0x302   : > { %v4847_v37 = vmul.f32 -1.442695, %v7334_v44  ;;  %v7342_v38 = vadd.f32 %v5765_v16, %v7312_v34 }
 0x303   : > { %6272 = vpow2.f32 %v4849_v20  ;;  %v4850_v27 = vmul.f32 -1.442695, %v7338_v24  ;;  %v7380_v20 = vld [vmem:[%s6475_s29 + $0x18] sm:$0xff]  }
 0x304   : > { %6274 = vpow2.f32 %v4847_v37  ;;  %v4848_v57 = vmul.f32 -1.442695, %v7342_v38  ;;  %v5736_v53 = vpop.f32.mrb[8].mxu1  ;;  %v4015_v37 = vunpack.c.l.bf16 %v7380_v20 }
 0x305   : > { %v6265_v12 = vpop.eup %6264  ;;  %6276 = vpow2.f32 %v4850_v27  ;;  %v5766_v47 = vadd.f32 %v5736_v53, %v7261_v25  ;;  %v3619_v60 = vpop.f32.mrb[9].mxu1  ;;  %v7386_v53 = vld [vmem:[%s6475_s29 + $0x20] sm:$0xff]  }
 0x306   : > { %v6267_v2 = vpop.eup %6266  ;;  %v3883_v13 = vadd.f32 1.0, %v6265_v12  ;;  %6278 = vpow2.f32 %v4848_v57  ;;  %v5767_v52 = vadd.f32 %v3619_v60, %v7263_v22  ;;  %v5737_v61 = vpop.f32.mrb[10].mxu1  ;;  %v4016_v57 = vunpack.c.h.bf16 %v7380_v20 }
 0x307   : > { %v6269_v9 = vpop.eup %6268  ;;  %v3881_v0 = vadd.f32 1.0, %v6267_v2  ;;  %v7359_v3 = vadd.f32 %v5766_v47, %v7312_v34  ;;  %v5768_v25 = vadd.f32 %v5737_v61, %v7265_v48  ;;  %v3622_v59 = vpop.f32.mrb[11].mxu1  ;;  %v4013_v48 = vunpack.c.l.bf16 %v7371_v58 }
 0x308   : > { %v6271_v40 = vpop.eup %6270  ;;  %6280 = vrcp.f32 %v3883_v13  ;;  %v3884_v29 = vadd.f32 1.0, %v6269_v9  ;;  %v7363_v11 = vadd.f32 %v5767_v52, %v7312_v34  ;;  %v5769_v22 = vadd.f32 %v3622_v59, %v7267_v26  ;;  %v7392_v52 = vld [vmem:[%s6475_s29 + $0x28] sm:$0xff]  }
 0x309   : > { %6282 = vrcp.f32 %v3881_v0  ;;  %v3882_v54 = vadd.f32 1.0, %v6271_v40  ;;  %v4853_v10 = vmul.f32 -1.442695, %v7359_v3  ;;  %v7368_v15 = vadd.f32 %v5768_v25, %v7312_v34 }
 0x30a   : > { %6284 = vrcp.f32 %v3884_v29  ;;  %v4851_v49 = vmul.f32 -1.442695, %v7363_v11  ;;  %v7376_v16 = vadd.f32 %v5769_v22, %v7312_v34 }
 0x30b   : > { %6286 = vrcp.f32 %v3882_v54  ;;  %v4854_v27 = vmul.f32 -1.442695, %v7368_v15 }
 0x30c   : > { %6288 = vpow2.f32 %v4853_v10  ;;  %v4852_v47 = vmul.f32 -1.442695, %v7376_v16  ;;  %v5740_v60 = vpop.f32.mrb[12].mxu1 }
 0x30d   : > { %v6273_v2 = vpop.eup %6272  ;;  %6290 = vpow2.f32 %v4851_v49  ;;  %v5770_v9 = vadd.f32 %v5740_v60, %v7269_v42  ;;  %v3635_v0 = vpop.f32.mrb[13].mxu1 }
 0x30e   : > { %v6275_v25 = vpop.eup %6274  ;;  %v3887_v40 = vadd.f32 1.0, %v6273_v2  ;;  %6292 = vpow2.f32 %v4854_v27  ;;  %v5771_v29 = vadd.f32 %v3635_v0, %v7271_v23  ;;  %v5741_v22 = vpop.f32.mrb[14].mxu1  ;;  %v7411_v0 = vld [vmem:[%s6475_s29 + $0x30] sm:$0xff]  }
 0x30f   : > { %v6277_v54 = vpop.eup %6276  ;;  %v3885_v10 = vadd.f32 1.0, %v6275_v25  ;;  %6294 = vpow2.f32 %v4852_v47  ;;  %v7399_v13 = vadd.f32 %v5770_v9, %v7312_v34  ;;  %v5772_v49 = vadd.f32 %v5741_v22, %v7273_v35  ;;  %v3638_v12 = vpop.f32.mrb[15].mxu1 }
 0x310   : > { %v6279_v42 = vpop.eup %6278  ;;  %6296 = vrcp.f32 %v3887_v40  ;;  %v3888_v60 = vadd.f32 1.0, %v6277_v54  ;;  %v7403_v59 = vadd.f32 %v5771_v29, %v7312_v34  ;;  %v5773_v27 = vadd.f32 %v3638_v12, %v7275_v4 }
 0x311   : > { %6298 = vrcp.f32 %v3885_v10  ;;  %v3886_v23 = vadd.f32 1.0, %v6279_v42  ;;  %v4857_v2 = vmul.f32 -1.442695, %v7399_v13  ;;  %v7408_v47 = vadd.f32 %v5772_v49, %v7312_v34  ;;  %v7422_v10 = vld [vmem:[%s6475_s29 + $0x38] sm:$0xff]  }
 0x312   : > { %v6281_v9 = vpop.eup %6280  ;;  %6300 = vrcp.f32 %v3888_v60  ;;  %v4855_v25 = vmul.f32 -1.442695, %v7403_v59  ;;  %v7416_v40 = vadd.f32 %v5773_v27, %v7312_v34 }
 0x313   : > { %v6283_v4 = vpop.eup %6282  ;;  %v3979_v29 = vmul.f32 %v6281_v9, %v7315_v39  ;;  %6302 = vrcp.f32 %v3886_v23  ;;  %v4858_v22 = vmul.f32 -1.442695, %v7408_v47 }
 0x314   : > { %v6285_v54 = vpop.eup %6284  ;;  %v3977_v42 = vmul.f32 %v6283_v4, %v7318_v62  ;;  %6304 = vpow2.f32 %v4857_v2  ;;  %v4856_v60 = vmul.f32 -1.442695, %v7416_v40  ;;  %v5744_v27 = vpop.f32.mrb[16].mxu1 }
 0x315   : > { %v6287_v35 = vpop.eup %6286  ;;  %v4043_v12 = vadd.f32 %v4011_v56, %v3979_v29  ;;  %v3980_v39 = vmul.f32 %v6285_v54, %v7322_v7  ;;  %6306 = vpow2.f32 %v4855_v25  ;;  %v5774_v23 = vadd.f32 %v5744_v27, %v7277_v14  ;;  %v3651_v9 = vpop.f32.mrb[17].mxu1 }
 0x316   : > { %v6289_v61 = vpop.eup %6288  ;;  %v4041_v49 = vadd.f32 %v4009_v1, %v3977_v42  ;;  %v3978_v62 = vmul.f32 %v6287_v35, %v7326_v6  ;;  %6308 = vpow2.f32 %v4858_v22  ;;  %v5775_v2 = vadd.f32 %v3651_v9, %v7279_v21  ;;  %v5745_v4 = vpop.f32.mrb[18].mxu1 }
 0x317   : > { %v6291_v26 = vpop.eup %6290  ;;  %v4044_v56 = vadd.f32 %v4012_v46, %v3980_v39  ;;  %v3891_v7 = vadd.f32 1.0, %v6289_v61  ;;  %6310 = vpow2.f32 %v4856_v60  ;;  %v7438_v25 = vadd.f32 %v5774_v23, %v7312_v34  ;;  %v3654_v14 = vpop.f32.mrb[19].mxu1  ;;  %v7463_v23 = vld [vmem:[%s6475_s29 + $0x40] sm:$0xff]  }
 0x318   : > { %v6293_v29 = vpop.eup %6292  ;;  %v4042_v21 = vadd.f32 %v4010_v18, %v3978_v62  ;;  %v3889_v6 = vadd.f32 1.0, %v6291_v26  ;;  %v7450_v1 = vadd.f32 %v5775_v2, %v7312_v34  ;;  %v5776_v28 = vadd.f32 %v5745_v4, %v7281_v32 }
 0x319   : > { %v6295_v46 = vpop.eup %6294  ;;  %v4951_v61 = vpack.c.bf16 %v4044_v56, %v4043_v12  ;;  %6312 = vrcp.f32 %v3891_v7  ;;  %v3892_v35 = vadd.f32 1.0, %v6293_v29  ;;  %v4861_v22 = vmul.f32 -1.442695, %v7438_v25 }
 0x31a   : > { %v6297_v54 = vpop.eup %6296  ;;  %v4946_v42 = vpack.c.bf16 %v4042_v21, %v4041_v49  ;;  %6314 = vrcp.f32 %v3889_v6  ;;  %v3890_v31 = vadd.f32 1.0, %v6295_v46  ;;  %v4859_v18 = vmul.f32 -1.442695, %v7450_v1 }
 0x31b   : > { %v6299_v26 = vpop.eup %6298  ;;  %5023 = vst [vmem:[%s7445_s20 + $0x8] sm:$0xff] %v4951_v61   ;;  %v3983_v60 = vmul.f32 %v6297_v54, %v7331_v30  ;;  %6316 = vrcp.f32 %v3892_v35  ;;  %v7458_v32 = vadd.f32 %v5776_v28, %v7312_v34  ;;  %v5777_v12 = vadd.f32 %v3654_v14, %v7283_v50 }
 0x31c   : > { %v6301_v27 = vpop.eup %6300  ;;  %v4024_v39 = vunpack.c.h.bf16 %v7422_v10  ;;  %v4025_v49 = vunpack.c.l.bf16 %v7463_v23  ;;  %4947 = vst [vmem:[%s7445_s20] sm:$0xff] %v4946_v42   ;;  %v3981_v9 = vmul.f32 %v6299_v26, %v7334_v44  ;;  %6318 = vrcp.f32 %v3890_v31  ;;  %v5748_v62 = vpop.f32.mrb[20].mxu1 }
 0x31d   : > { %v6303_v2 = vpop.eup %6302  ;;  %v4047_v30 = vadd.f32 %v4015_v37, %v3983_v60  ;;  %v3984_v4 = vmul.f32 %v6301_v27, %v7338_v24  ;;  %6320 = vpow2.f32 %v4861_v22  ;;  %v4862_v50 = vmul.f32 -1.442695, %v7458_v32  ;;  %v3667_v56 = vpop.f32.mrb[21].mxu1 }
 0x31e   : > { %v6305_v7 = vpop.eup %6304  ;;  %v4045_v14 = vadd.f32 %v4013_v48, %v3981_v9  ;;  %v3982_v29 = vmul.f32 %v6303_v2, %v7342_v38  ;;  %6322 = vpow2.f32 %v4859_v18  ;;  %v7476_v44 = vadd.f32 %v5777_v12, %v7312_v34  ;;  %v5749_v21 = vpop.f32.mrb[22].mxu1  ;;  %v7496_v9 = vld [vmem:[%s6475_s29 + $0x48] sm:$0xff]  }
 0x31f   : > { %v6307_v6 = vpop.eup %6306  ;;  %v4048_v37 = vadd.f32 %v4016_v57, %v3984_v4  ;;  %v3895_v24 = vadd.f32 1.0, %v6305_v7  ;;  %6324 = vpow2.f32 %v4862_v50  ;;  %v5778_v28 = vadd.f32 %v5748_v62, %v7285_v5  ;;  %v3670_v46 = vpop.f32.mrb[23].mxu1 }
 0x320   : > { %v6309_v61 = vpop.eup %6308  ;;  %v7628_v48 = vunpack.c.h.bf16 %v7371_v58  ;;  %v3893_v38 = vadd.f32 1.0, %v6307_v6  ;;  %v4860_v22 = vmul.f32 -1.442695, %v7476_v44  ;;  %v5779_v54 = vadd.f32 %v3667_v56, %v7287_v43 }
 0x321   : > { %v6311_v42 = vpop.eup %6310  ;;  %v4961_v31 = vpack.c.bf16 %v4048_v37, %v4047_v30  ;;  %6326 = vrcp.f32 %v3895_v24  ;;  %v3896_v20 = vadd.f32 1.0, %v6309_v61  ;;  %v7486_v57 = vadd.f32 %v5778_v28, %v7312_v34 }
 0x322   : > { %v4046_v35 = vadd.f32 %v7628_v48, %v3982_v29  ;;  %6328 = vrcp.f32 %v3893_v38  ;;  %v3894_v18 = vadd.f32 1.0, %v6311_v42  ;;  %v7489_v58 = vadd.f32 %v5779_v54, %v7312_v34 }
 0x323   : > { %v6313_v26 = vpop.eup %6312  ;;  %5025 = vst [vmem:[%s7445_s20 + $0x18] sm:$0xff] %v4961_v31   ;;  %6330 = vrcp.f32 %v3896_v20  ;;  %v4865_v43 = vmul.f32 -1.442695, %v7486_v57  ;;  %v5780_v60 = vadd.f32 %v5749_v21, %v7289_v17  ;;  %v5781_v12 = vadd.f32 %v3670_v46, %v7291_v33 }
 0x324   : > { %v4956_v5 = vpack.c.bf16 %v4046_v35, %v4045_v14  ;;  %v6315_v27 = vpop.eup %6314  ;;  %v4027_v62 = vunpack.c.l.bf16 %v7496_v9  ;;  %v3987_v2 = vmul.f32 %v6313_v26, %v7359_v3  ;;  %6332 = vrcp.f32 %v3894_v18  ;;  %v5752_v4 = vpop.f32.mrb[24].mxu1 }
 0x325   : > { %v4863_v30 = vmul.f32 -1.442695, %v7489_v58  ;;  %v6317_v50 = vpop.eup %6316  ;;  %v3985_v56 = vmul.f32 %v6315_v27, %v7363_v11  ;;  %6334 = vpow2.f32 %v4860_v22  ;;  %v7504_v17 = vadd.f32 %v5780_v60, %v7312_v34  ;;  %v3683_v7 = vpop.f32.mrb[25].mxu1 }
 0x326   : > { %5024 = vst [vmem:[%s7445_s20 + $0x10] sm:$0xff] %v4956_v5   ;;  %v7507_v33 = vadd.f32 %v5781_v12, %v7312_v34  ;;  %v6319_v14 = vpop.eup %6318  ;;  %v7629_v29 = vunpack.c.l.bf16 %v7392_v52  ;;  %v3988_v3 = vmul.f32 %v6317_v50, %v7368_v15  ;;  %6336 = vpow2.f32 %v4865_v43  ;;  %v5753_v37 = vpop.f32.mrb[26].mxu1 }
 0x327   : > { %v5782_v6 = vadd.f32 %v5752_v4, %v7293_v63  ;;  %v6321_v24 = vpop.eup %6320  ;;  %v7630_v11 = vunpack.c.l.bf16 %v7386_v53  ;;  %v3986_v46 = vmul.f32 %v6319_v14, %v7376_v16  ;;  %6338 = vpow2.f32 %v4863_v30  ;;  %v3686_v48 = vpop.f32.mrb[27].mxu1 }
 0x328   : > { %v4051_v21 = vadd.f32 %v7629_v29, %v3987_v2  ;;  %v4866_v61 = vmul.f32 -1.442695, %v7504_v17  ;;  %v6323_v35 = vpop.eup %6322  ;;  %v7631_v38 = vunpack.c.h.bf16 %v7392_v52  ;;  %v3899_v54 = vadd.f32 1.0, %v6321_v24 }
 0x329   : > { %v4049_v28 = vadd.f32 %v7630_v11, %v3985_v56  ;;  %v4864_v15 = vmul.f32 -1.442695, %v7507_v33  ;;  %v7521_v63 = vadd.f32 %v5782_v6, %v7312_v34  ;;  %v6325_v42 = vpop.eup %6324  ;;  %v7632_v31 = vunpack.c.h.bf16 %v7386_v53 }
 0x32a   : > { %v4052_v22 = vadd.f32 %v7631_v38, %v3988_v3  ;;  %v3897_v16 = vadd.f32 1.0, %v6323_v35  ;;  %6340 = vpow2.f32 %v4866_v61  ;;  %v5783_v5 = vadd.f32 %v3683_v7, %v7295_v8 }
 0x32b   : > { %v4050_v20 = vadd.f32 %v7632_v31, %v3986_v46  ;;  %6342 = vrcp.f32 %v3899_v54  ;;  %v3900_v52 = vadd.f32 1.0, %v6325_v42  ;;  %v4869_v26 = vmul.f32 -1.442695, %v7521_v63  ;;  %v6327_v43 = vpop.eup %6326 }
 0x32c   : > { %v4971_v18 = vpack.c.bf16 %v4052_v22, %v4051_v21  ;;  %6344 = vrcp.f32 %v3897_v16  ;;  %v7528_v12 = vadd.f32 %v5783_v5, %v7312_v34  ;;  %v5784_v53 = vadd.f32 %v5753_v37, %v7297_v55  ;;  %v6329_v27 = vpop.eup %6328  ;;  %v5756_v4 = vpop.f32.mrb[28].mxu1 }
 0x32d   : > { %v4966_v60 = vpack.c.bf16 %v4050_v20, %v4049_v28  ;;  %v4028_v2 = vunpack.c.h.bf16 %v7496_v9  ;;  %v3991_v8 = vmul.f32 %v6327_v43, %v7399_v13  ;;  %6346 = vrcp.f32 %v3900_v52  ;;  %v6331_v50 = vpop.eup %6330  ;;  %v3699_v55 = vpop.f32.mrb[29].mxu1 }
 0x32e   : > { %5027 = vst [vmem:[%s7445_s20 + $0x28] sm:$0xff] %v4971_v18   ;;  %v5785_v30 = vadd.f32 %v3686_v48, %v7299_v19  ;;  %v3989_v56 = vmul.f32 %v6329_v27, %v7403_v59  ;;  %6348 = vpow2.f32 %v4864_v15  ;;  %v4867_v7 = vmul.f32 -1.442695, %v7528_v12  ;;  %v6333_v29 = vpop.eup %6332  ;;  %v5757_v6 = vpop.f32.mrb[30].mxu1 }
 0x32f   : > { %5026 = vst [vmem:[%s7445_s20 + $0x20] sm:$0xff] %v4966_v60   ;;  %v7539_v14 = vadd.f32 %v5784_v53, %v7312_v34  ;;  %v7633_v21 = vunpack.c.l.bf16 %v7422_v10  ;;  %v3992_v13 = vmul.f32 %v6331_v50, %v7408_v47  ;;  %6350 = vpow2.f32 %v4869_v26  ;;  %v6335_v37 = vpop.eup %6334  ;;  %v3702_v46 = vpop.f32.mrb[31].mxu1 }
 0x330   : > { %v7545_v19 = vadd.f32 %v5785_v30, %v7312_v34  ;;  %v7634_v59 = vunpack.c.l.bf16 %v7411_v0  ;;  %v3990_v11 = vmul.f32 %v6333_v29, %v7416_v40  ;;  %6352 = vpow2.f32 %v4867_v7  ;;  %v6337_v61 = vpop.eup %6336 }
 0x331   : > { %v4055_v3 = vadd.f32 %v7633_v21, %v3991_v8  ;;  %v4870_v28 = vmul.f32 -1.442695, %v7539_v14  ;;  %v4056_v48 = vadd.f32 %v4024_v39, %v3992_v13  ;;  %v3898_v47 = vadd.f32 1.0, %v6335_v37  ;;  %v6339_v22 = vpop.eup %6338  ;;  %v6403_v13 = vld [vmem:[%s6475_s29 + $0x58] sm:$0xff]  }
 0x332   : > { %v4053_v24 = vadd.f32 %v7634_v59, %v3989_v56  ;;  %v4868_v35 = vmul.f32 -1.442695, %v7545_v19  ;;  %v5786_v38 = vadd.f32 %v5756_v4, %v7301_v51  ;;  %v7635_v54 = vunpack.c.h.bf16 %v7411_v0 }
 0x333   : > { %v3903_v42 = vadd.f32 1.0, %v6337_v61  ;;  %6354 = vpow2.f32 %v4870_v28  ;;  %v5787_v40 = vadd.f32 %v3699_v55, %v7303_v36  ;;  %v4981_v31 = vpack.c.bf16 %v4056_v48, %v4055_v3 }
 0x334   : > { %v4054_v15 = vadd.f32 %v7635_v54, %v3990_v11  ;;  %6356 = vrcp.f32 %v3898_v47  ;;  %v3901_v20 = vadd.f32 1.0, %v6339_v22  ;;  %v7559_v10 = vadd.f32 %v5786_v38, %v7312_v34  ;;  %v6341_v39 = vpop.eup %6340 }
 0x335   : > { %6358 = vrcp.f32 %v3903_v42  ;;  %v7562_v51 = vadd.f32 %v5787_v40, %v7312_v34  ;;  %v5788_v0 = vadd.f32 %v5757_v6, %v7305_v41  ;;  %v6343_v5 = vpop.eup %6342  ;;  %5029 = vst [vmem:[%s7445_s20 + $0x38] sm:$0xff] %v4981_v31   ;;  %v3904_v18 = vadd.f32 1.0, %v6341_v39 }
 0x336   : > { %v4976_v16 = vpack.c.bf16 %v4054_v15, %v4053_v24  ;;  %6360 = vrcp.f32 %v3901_v20  ;;  %v4873_v36 = vmul.f32 -1.442695, %v7559_v10  ;;  %v5789_v52 = vadd.f32 %v3702_v46, %v7307_v45  ;;  %v6345_v26 = vpop.eup %6344 }
 0x337   : > { %v3995_v43 = vmul.f32 %v6343_v5, %v7438_v25  ;;  %6362 = vpow2.f32 %v4868_v35  ;;  %v4871_v60 = vmul.f32 -1.442695, %v7562_v51  ;;  %v7572_v53 = vadd.f32 %v5788_v0, %v7312_v34  ;;  %v6347_v27 = vpop.eup %6346 }
 0x338   : > { %5028 = vst [vmem:[%s7445_s20 + $0x30] sm:$0xff] %v4976_v16   ;;  %v3993_v41 = vmul.f32 %v6345_v26, %v7450_v1  ;;  %6364 = vrcp.f32 %v3904_v18  ;;  %v7576_v8 = vadd.f32 %v5789_v52, %v7312_v34  ;;  %v6349_v30 = vpop.eup %6348  ;;  %v3996_v4 = vmul.f32 %v6347_v27, %v7458_v32 }
 0x339   : > { %v4059_v45 = vadd.f32 %v4027_v62, %v3995_v43  ;;  %6366 = vpow2.f32 %v4873_v36  ;;  %v4874_v25 = vmul.f32 -1.442695, %v7572_v53  ;;  %v6351_v50 = vpop.eup %6350  ;;  %v3902_v7 = vadd.f32 1.0, %v6349_v30  ;;  %v6406_v36 = vld [vmem:[%s6475_s29 + $0x60] sm:$0xff]  }
 0x33a   : > { %v4057_v56 = vadd.f32 %v4025_v49, %v3993_v41  ;;  %6368 = vpow2.f32 %v4871_v60  ;;  %v6353_v1 = vpop.eup %6352  ;;  %v4060_v34 = vadd.f32 %v4028_v2, %v3996_v4  ;;  %v3907_v55 = vadd.f32 1.0, %v6351_v50  ;;  %v6404_v2 = vld [vmem:[%s6475_s29 + $0x50] sm:$0xff]  }
 0x33b   : > { %6370 = vpow2.f32 %v4874_v25  ;;  %v4872_v32 = vmul.f32 -1.442695, %v7576_v8  ;;  %v3905_v62 = vadd.f32 1.0, %v6353_v1  ;;  %v4026_v21 = vunpack.c.h.bf16 %v7463_v23 }
 0x33c   : > { %6372 = vrcp.f32 %v3902_v7  ;;  %v4991_v3 = vpack.c.bf16 %v4060_v34, %v4059_v45  ;;  %v4031_v6 = vunpack.c.l.bf16 %v6403_v13  ;;  %v4029_v59 = vunpack.c.l.bf16 %v6404_v2 }
 0x33d   : > { %v6355_v29 = vpop.eup %6354  ;;  %6374 = vrcp.f32 %v3907_v55  ;;  %v4032_v23 = vunpack.c.h.bf16 %v6403_v13  ;;  %v4030_v31 = vunpack.c.h.bf16 %v6404_v2  ;;  %v4033_v52 = vunpack.c.l.bf16 %v6406_v36  ;;  %v6407_v55 = vld [vmem:[%s6475_s29 + $0x78] sm:$0xff]  }
 0x33e   : > { %v6357_v49 = vpop.eup %6356  ;;  %6376 = vrcp.f32 %v3905_v62  ;;  %v3908_v37 = vadd.f32 1.0, %v6355_v29  ;;  %5031 = vst [vmem:[%s7445_s20 + $0x48] sm:$0xff] %v4991_v3   ;;  %v4034_v1 = vunpack.c.h.bf16 %v6406_v36  ;;  %v4040_v13 = vunpack.c.h.bf16 %v6407_v55 }
 0x33f   : > { %v6359_v9 = vpop.eup %6358  ;;  %v3994_v24 = vmul.f32 %v6357_v49, %v7476_v44  ;;  %6378 = vpow2.f32 %v4872_v32  ;;  %v4039_v32 = vunpack.c.l.bf16 %v6407_v55 }
 0x340   : > { %v6361_v11 = vpop.eup %6360  ;;  %v3999_v28 = vmul.f32 %v6359_v9, %v7486_v57  ;;  %6380 = vrcp.f32 %v3908_v37 }
 0x341   : > { %v6363_v46 = vpop.eup %6362  ;;  %v4058_v61 = vadd.f32 %v4026_v21, %v3994_v24  ;;  %v3997_v48 = vmul.f32 %v6361_v11, %v7489_v58  ;;  %v6405_v58 = vld [vmem:[%s6475_s29 + $0x68] sm:$0xff]   ;;  %v6408_v21 = vld [vmem:[%s6475_s29 + $0x70] sm:$0xff]  }
 0x342   : > { %v6365_v47 = vpop.eup %6364  ;;  %v4063_v35 = vadd.f32 %v4031_v6, %v3999_v28  ;;  %v3906_v38 = vadd.f32 1.0, %v6363_v46  ;;  %v4035_v0 = vunpack.c.l.bf16 %v6405_v58  ;;  %v4036_v41 = vunpack.c.h.bf16 %v6405_v58 }
 0x343   : > { %v6367_v22 = vpop.eup %6366  ;;  %v4986_v54 = vpack.c.bf16 %v4058_v61, %v4057_v56  ;;  %v4061_v15 = vadd.f32 %v4029_v59, %v3997_v48  ;;  %v4000_v44 = vmul.f32 %v6365_v47, %v7504_v17  ;;  %v4037_v3 = vunpack.c.l.bf16 %v6408_v21 }
 0x344   : > { %v6369_v42 = vpop.eup %6368  ;;  %6382 = vrcp.f32 %v3906_v38  ;;  %v3911_v57 = vadd.f32 1.0, %v6367_v22  ;;  %v4038_v11 = vunpack.c.h.bf16 %v6408_v21 }
 0x345   : > { %v6371_v40 = vpop.eup %6370  ;;  %5030 = vst [vmem:[%s7445_s20 + $0x40] sm:$0xff] %v4986_v54   ;;  %v4064_v20 = vadd.f32 %v4032_v23, %v4000_v44  ;;  %v3909_v39 = vadd.f32 1.0, %v6369_v42 }
 0x346   : > { %v6373_v16 = vpop.eup %6372  ;;  %6384 = vrcp.f32 %v3911_v57  ;;  %v3912_v5 = vadd.f32 1.0, %v6371_v40 }
 0x347   : > { %v6375_v18 = vpop.eup %6374  ;;  %v5001_v26 = vpack.c.bf16 %v4064_v20, %v4063_v35  ;;  %v3998_v17 = vmul.f32 %v6373_v16, %v7507_v33  ;;  %6386 = vrcp.f32 %v3909_v39 }
 0x348   : > { %v6377_v43 = vpop.eup %6376  ;;  %v4003_v60 = vmul.f32 %v6375_v18, %v7521_v63  ;;  %6388 = vrcp.f32 %v3912_v5 }
 0x349   : > { %v6379_v27 = vpop.eup %6378  ;;  %5033 = vst [vmem:[%s7445_s20 + $0x58] sm:$0xff] %v5001_v26   ;;  %v4062_v30 = vadd.f32 %v4030_v31, %v3998_v17  ;;  %v4001_v45 = vmul.f32 %v6377_v43, %v7528_v12 }
 0x34a   : > { %v6381_v4 = vpop.eup %6380  ;;  %v4067_v25 = vadd.f32 %v4035_v0, %v4003_v60  ;;  %v3910_v50 = vadd.f32 1.0, %v6379_v27 }
 0x34b   : > { %v4996_v56 = vpack.c.bf16 %v4062_v30, %v4061_v15  ;;  %v4065_v7 = vadd.f32 %v4033_v52, %v4001_v45  ;;  %v4004_v33 = vmul.f32 %v6381_v4, %v7539_v14 }
 0x34c   : > { %6390 = vrcp.f32 %v3910_v50 }
 0x34d   : > { %5032 = vst [vmem:[%s7445_s20 + $0x50] sm:$0xff] %v4996_v56   ;;  %v4068_v63 = vadd.f32 %v4036_v41, %v4004_v33 }
 0x34e   : > { %v6383_v34 = vpop.eup %6382 }
 0x34f   : > { %v5011_v62 = vpack.c.bf16 %v4068_v63, %v4067_v25  ;;  %v4002_v29 = vmul.f32 %v6383_v34, %v7545_v19 }
 0x350   : > { %v6385_v12 = vpop.eup %6384 }
 0x351   : > { %v6387_v49 = vpop.eup %6386  ;;  %5035 = vst [vmem:[%s7445_s20 + $0x68] sm:$0xff] %v5011_v62   ;;  %v4066_v6 = vadd.f32 %v4034_v1, %v4002_v29  ;;  %v4007_v14 = vmul.f32 %v6385_v12, %v7559_v10 }
 0x352   : > { %v6389_v37 = vpop.eup %6388  ;;  %v4005_v9 = vmul.f32 %v6387_v49, %v7562_v51 }
 0x353   : > { %v5006_v2 = vpack.c.bf16 %v4066_v6, %v4065_v7  ;;  %v4071_v59 = vadd.f32 %v4039_v32, %v4007_v14  ;;  %v4008_v24 = vmul.f32 %v6389_v37, %v7572_v53 }
 0x354   : > { %v4069_v19 = vadd.f32 %v4037_v3, %v4005_v9 }
 0x355   : > { %5034 = vst [vmem:[%s7445_s20 + $0x60] sm:$0xff] %v5006_v2   ;;  %v4072_v28 = vadd.f32 %v4040_v13, %v4008_v24 }
 0x356   : > { %v6391_v46 = vpop.eup %6390 }
 0x357   : > { %v5021_v23 = vpack.c.bf16 %v4072_v28, %v4071_v59  ;;  %v4006_v61 = vmul.f32 %v6391_v46, %v7576_v8 }
 0x359   : > { %5037 = vst [vmem:[%s7445_s20 + $0x78] sm:$0xff] %v5021_v23   ;;  %v4070_v48 = vadd.f32 %v4038_v11, %v4006_v61 }
 0x35b   : > { %v5016_v47 = vpack.c.bf16 %v4070_v48, %v4069_v19 }
 0x35d   : > { %5036 = vst [vmem:[%s7445_s20 + $0x70] sm:$0xff] %v5016_v47  }
 0x35e PF: > { %s15_s18 = sadd.s32 1, %s6415_s18  }
 0x35f   : > { %p12_p4 = scmp.ge.s32.totalorder %s15_s18, 4  }
 0x361   :  { %14 = sbr.rel (!%p12_p4) target bundleno = 1 (0x1), region = 78 }

</bundles_post_ra>
